<compile_context>
chip_gen: v6e
topology: v6e:2x2x1
jax: 0.10.0
libtpu: 0.0.40
codegen_flags: <defaults>
</compile_context>

<pallas_src>
import jax
import jax.numpy as jnp
import numpy as np
from jax.experimental import pallas as pl
from jax.experimental.pallas import tpu as pltpu

EPS = 1e-5
LANES = 128

# Tap order for the K-packed conv1: CENTER FIRST so lanes [0:Cin] of the
# im2col row are exactly x[h, w, :] (reused as the residual in-kernel).
TAPS1 = ((1, 1), (0, 0), (0, 1), (0, 2), (1, 0), (1, 2), (2, 0), (2, 1), (2, 2))


# ------------------------------ Pallas kernel -------------------------------

def _basic_block_kernel(xcol_ref, w1_ref, b1_ref, w2_ref, b2_ref, o_ref, s_ref):
    """Fused BasicBlock for one image of the batch.

    xcol_ref : (1, H*W, Kp)    K-packed im2col of the input (center tap first)
    w1_ref   : (Kp, Cp)        conv1 weights, taps packed along K, bn1 scale folded
    b1_ref   : (1, Cp)         folded bn1 bias (f32)
    w2_ref   : (9, Cp, Cp)     conv2 taps (kh*3+kw), bn2 scale folded
    b2_ref   : (1, Cp)         folded bn2 bias (f32)
    o_ref    : (1, H*W, Cp)    output
    s_ref    : (3, H+2, W, Cp) VMEM scratch: three W-shifted copies of out1
                               with zero halo rows/cols folded in
    """
    _, H2, W, Cp = s_ref.shape
    H = H2 - 2
    HW = H * W
    sdt = s_ref.dtype

    # ---- conv1 + bn1 + relu : ONE MXU matmul (taps packed into K) ----------
    xcol = xcol_ref[0]                                            # (HW, Kp)
    h1 = jnp.dot(xcol, w1_ref[...], preferred_element_type=jnp.float32)
    out1 = jnp.maximum(h1 + b1_ref[...], 0.0)                     # (HW, Cp) f32

    # ---- stash three W-shifted copies of out1 in VMEM scratch --------------
    # s_ref[dw][i, w, :] == out1_zeropad[i, w + dw, :]  (zero halo included),
    # so every conv2 tap below is a free major-dim row slice (no relayout).
    o1 = out1.astype(sdt).reshape(H, W, Cp)
    zc = jnp.zeros((H, 1, Cp), sdt)
    zr = jnp.zeros((1, W, Cp), sdt)
    left = jnp.concatenate([zc, o1[:, :W - 1, :]], axis=1)   # (h,w) -> out1[h, w-1]
    right = jnp.concatenate([o1[:, 1:, :], zc], axis=1)      # (h,w) -> out1[h, w+1]
    s_ref[0] = jnp.concatenate([zr, left, zr], axis=0)
    s_ref[1] = jnp.concatenate([zr, o1, zr], axis=0)
    s_ref[2] = jnp.concatenate([zr, right, zr], axis=0)

    # ---- conv2 + bn2 : 9 MXU matmuls over VMEM-resident out1 ---------------
    acc2 = jnp.zeros((HW, Cp), jnp.float32)
    for dh in range(3):
        for dw in range(3):
            ys = s_ref[dw, dh:dh + H].reshape(HW, Cp)             # free slice
            acc2 = acc2 + jnp.dot(ys, w2_ref[dh * 3 + dw],
                                  preferred_element_type=jnp.float32)
    out2 = acc2 + b2_ref[...]

    # ---- residual add + ReLU ------------------------------------------------
    # Center tap is first in the K packing, so lanes [0:Cin] of xcol are x
    # itself.  Lanes >= Cin of the output are stripped in the wrapper, so the
    # residual add is done unmasked.  Identity() "+ 0.0" is a no-op, elided.
    res = xcol[:, :Cp].astype(jnp.float32)
    o_ref[...] = jnp.maximum(out2 + res, 0.0).reshape(1, HW, Cp).astype(o_ref.dtype)


# ------------------------------ glue (JAX) ----------------------------------

def _fold_bn(gamma, beta, mean, var):
    scale = gamma / jnp.sqrt(var + EPS)
    return scale, beta - mean * scale


def _pad_bias(b, cp):
    return jnp.pad(b, (0, cp - b.shape[0])).reshape(1, cp).astype(jnp.float32)


def basic_block_forward(x_nchw, params, compute_dtype=jnp.float32):
    """BasicBlock forward (stride=1, downsample=None). x_nchw: (N, C, H, W)."""
    N, Cin, H, W = x_nchw.shape
    P = params["w1"].shape[0]
    # downsample=None + residual add => inplanes == planes and stride == 1.
    assert params["w1"].shape == (P, Cin, 3, 3) and Cin == P, \
        "fused BasicBlock assumes stride=1, downsample=None (inplanes == planes)"
    assert W % 8 == 0, "W must be a multiple of 8 (sublane) for the fused kernel"
    # TODO(synk): stride>1 / downsample path and non-multiple-of-8 widths are
    # not implemented in the fused kernel.
    # TODO(synk): for larger H/W/C (deeper ResNet stages) tile the grid over H
    # with a halo-aware index_map and set vmem_limit_bytes (v7x: 64 MiB VMEM).

    Cp = max(LANES, ((Cin + LANES - 1) // LANES) * LANES)
    K = 9 * Cin
    Kp = max(LANES, ((K + LANES - 1) // LANES) * LANES)

    # ---- K-packed im2col of the input (center tap first -> residual reuse) --
    x = jnp.transpose(x_nchw, (0, 2, 3, 1)).astype(jnp.float32)       # NHWC
    xp = jnp.pad(x, ((0, 0), (1, 1), (1, 1), (0, 0)))                 # spatial pad 1
    cols = [xp[:, dh:dh + H, dw:dw + W, :] for dh, dw in TAPS1]
    xcol = jnp.concatenate(cols, axis=-1).reshape(N, H * W, K)
    xcol = jnp.pad(xcol, ((0, 0), (0, 0), (0, Kp - K))).astype(compute_dtype)

    # ---- fold eval-mode BN into weights (scale) + bias -----------------------
    s1, b1 = _fold_bn(params["g1"], params["be1"], params["m1"], params["v1"])
    s2, b2 = _fold_bn(params["g2"], params["be2"], params["m2"], params["v2"])
    b1p, b2p = _pad_bias(b1, Cp), _pad_bias(b2, Cp)

    # conv1 weights: (O, I, 3, 3) -> (tap, I, O) in TAPS1 order, scale folded,
    # packed along K, padded to (Kp, Cp).
    w1_t = jnp.transpose(params["w1"], (2, 3, 1, 0))                  # (3,3,I,O)
    w1_taps = jnp.stack([w1_t[dh, dw] for dh, dw in TAPS1], axis=0)   # (9, I, O)
    w1p = (w1_taps * s1[None, None, :]).reshape(K, P)
    w1p = jnp.pad(w1p, ((0, Kp - K), (0, Cp - P))).astype(compute_dtype)

    # conv2 weights: (O, I, 3, 3) -> (9, I, O) with tap index kh*3+kw, scale folded.
    w2_t = jnp.transpose(params["w2"], (2, 3, 1, 0)).reshape(9, P, P)
    w2p = jnp.pad(w2_t * s2[None, None, :],
                  ((0, 0), (0, Cp - P), (0, Cp - P))).astype(compute_dtype)

    elem = jnp.dtype(compute_dtype).itemsize
    cost = pl.CostEstimate(
        flops=N * (2 * H * W * Kp * Cp + 2 * 9 * H * W * Cp * Cp),
        transcendentals=0,
        bytes_accessed=(xcol.size * elem + N * H * W * Cp * 4
                        + (w1p.size + w2p.size) * elem + 2 * Cp * 4),
    )

    out = pl.pallas_call(
        _basic_block_kernel,
        out_shape=jax.ShapeDtypeStruct((N, H * W, Cp), jnp.float32),
        grid=(N,),
        in_specs=[
            pl.BlockSpec((1, H * W, Kp), lambda b: (b, 0, 0)),   # xcol (per image)
            pl.BlockSpec((Kp, Cp), lambda b: (0, 0)),            # w1 (grid-invariant)
            pl.BlockSpec((1, Cp), lambda b: (0, 0)),             # b1
            pl.BlockSpec((9, Cp, Cp), lambda b: (0, 0, 0)),      # w2
            pl.BlockSpec((1, Cp), lambda b: (0, 0)),             # b2
        ],
        out_specs=pl.BlockSpec((1, H * W, Cp), lambda b: (b, 0, 0)),
        scratch_shapes=[pltpu.VMEM((3, H + 2, W, Cp), compute_dtype)],
        compiler_params=pltpu.CompilerParams(
            dimension_semantics=("parallel",)),   # split batch across TCs (v7x)
        cost_estimate=cost,
    )(xcol, w1p, b1p, w2p, b2p)

    out = out[..., :Cin].reshape(N, H, W, Cin)          # strip channel pad
    return jnp.transpose(out, (0, 3, 1, 2))             # back to NCHW


# ------------------------- pure-JAX reference check --------------------------

def _ref_forward(x, p):
    def conv3x3(x, w):
        return jax.lax.conv_general_dilated(
            x, w, (1, 1), [(1, 1), (1, 1)],
            dimension_numbers=("NCHW", "OIHW", "NCHW"))

    def bn(x, g, b, m, v):
        s = g / jnp.sqrt(v + EPS)
        return x * s[None, :, None, None] + (b - m * s)[None, :, None, None]

    out = jax.nn.relu(bn(conv3x3(x, p["w1"]), p["g1"], p["be1"], p["m1"], p["v1"]))
    out = bn(conv3x3(out, p["w2"]), p["g2"], p["be2"], p["m2"], p["v2"])
    out = out + x
    out = out + 0.0          # Identity() shortcut
    return jax.nn.relu(out)


# ----------------------------------- main ------------------------------------

if __name__ == "__main__":
    # BasicBlock(inplanes=4, planes=4, stride=1, downsample=None)
    inplanes = planes = 4
    Nb, H, W = 2, 16, 16

    key = jax.random.PRNGKey(0)
    ks = jax.random.split(key, 11)

    params = {
        "w1": 0.1 * jax.random.normal(ks[0], (planes, inplanes, 3, 3), jnp.float32),
        "g1": 1.0 + 0.1 * jax.random.normal(ks[1], (planes,), jnp.float32),
        "be1": 0.1 * jax.random.normal(ks[2], (planes,), jnp.float32),
        "m1": 0.1 * jax.random.normal(ks[3], (planes,), jnp.float32),
        "v1": 0.5 + jax.random.uniform(ks[4], (planes,), jnp.float32),

        "w2": 0.1 * jax.random.normal(ks[5], (planes, planes, 3, 3), jnp.float32),
        "g2": 1.0 + 0.1 * jax.random.normal(ks[6], (planes,), jnp.float32),
        "be2": 0.1 * jax.random.normal(ks[7], (planes,), jnp.float32),
        "m2": 0.1 * jax.random.normal(ks[8], (planes,), jnp.float32),
        "v2": 0.5 + jax.random.uniform(ks[9], (planes,), jnp.float32),
    }

    x = jax.random.normal(ks[10], (Nb, inplanes, H, W), jnp.float32)  # NCHW

    fwd = jax.jit(basic_block_forward)
    out = jax.block_until_ready(fwd(x, params))

    ref = jax.block_until_ready(_ref_forward(x, params))
    np.testing.assert_allclose(np.asarray(out), np.asarray(ref),
                               rtol=1e-4, atol=1e-4)

    print("KERNEL_OK")
</pallas_src>

<mosaic_0001>
module attributes {stable_mosaic.version = 11 : i64} {
  func.func @_basic_block_kernel(%arg0: i32, %arg1: memref<1x256x128xf32, #tpu.memory_space<vmem>>, %arg2: memref<128x128xf32, #tpu.memory_space<vmem>>, %arg3: memref<1x128xf32, #tpu.memory_space<vmem>>, %arg4: memref<9x128x128xf32, #tpu.memory_space<vmem>>, %arg5: memref<1x128xf32, #tpu.memory_space<vmem>>, %arg6: memref<1x256x128xf32, #tpu.memory_space<vmem>>, %arg7: memref<3x18x16x128xf32, #tpu.memory_space<vmem>>) attributes {dimension_semantics = [#tpu.dimension_semantics<parallel>], iteration_bounds = array<i64: 2>, scalar_prefetch = 0 : i64, scratch_operands = 1 : i64, tpu.core_type = #tpu.core_type<tc>, window_params = [{transform_indices = @transform_0, window_bounds = array<i64: 1, 256, 128>}, {pipeline_mode = #tpu.pipeline_mode<synchronous>, transform_indices = @transform_1, window_bounds = array<i64: 128, 128>}, {pipeline_mode = #tpu.pipeline_mode<synchronous>, transform_indices = @transform_2, window_bounds = array<i64: 1, 128>}, {pipeline_mode = #tpu.pipeline_mode<synchronous>, transform_indices = @transform_3, window_bounds = array<i64: 9, 128, 128>}, {pipeline_mode = #tpu.pipeline_mode<synchronous>, transform_indices = @transform_4, window_bounds = array<i64: 1, 128>}, {transform_indices = @transform_5, window_bounds = array<i64: 1, 256, 128>}]} {
    %c0 = arith.constant 0 : index
    %c0_0 = arith.constant 0 : index
    %c0_1 = arith.constant 0 : index
    %0 = vector.load %arg1[%c0, %c0_0, %c0_1] : memref<1x256x128xf32, #tpu.memory_space<vmem>>, vector<1x256x128xf32>
    %1 = vector.shape_cast %0 : vector<1x256x128xf32> to vector<256x128xf32>
    %c0_2 = arith.constant 0 : index
    %c0_3 = arith.constant 0 : index
    %2 = vector.load %arg2[%c0_2, %c0_3] : memref<128x128xf32, #tpu.memory_space<vmem>>, vector<128x128xf32>
    %cst = arith.constant dense<0.000000e+00> : vector<256x128xf32>
    %3 = tpu.matmul %1, %2, %cst {dimension_numbers = #tpu.dot_dimension_numbers<[1], [0], [0], [1], [0, 0, 1, 1], [], []>} : vector<256x128xf32>, vector<128x128xf32>, vector<256x128xf32> -> vector<256x128xf32>
    %c0_4 = arith.constant 0 : index
    %c0_5 = arith.constant 0 : index
    %4 = vector.load %arg3[%c0_4, %c0_5] : memref<1x128xf32, #tpu.memory_space<vmem>>, vector<1x128xf32>
    %5 = vector.broadcast %4 : vector<1x128xf32> to vector<256x128xf32>
    %6 = arith.addf %3, %5 : vector<256x128xf32>
    %cst_6 = arith.constant 0.000000e+00 : f32
    %7 = vector.broadcast %cst_6 : f32 to vector<256x128xf32>
    %8 = arith.maximumf %6, %7 : vector<256x128xf32>
    %9 = vector.shape_cast %8 : vector<256x128xf32> to vector<16x16x128xf32>
    %cst_7 = arith.constant 0.000000e+00 : f32
    %10 = vector.broadcast %cst_7 : f32 to vector<16x1x128xf32>
    %cst_8 = arith.constant 0.000000e+00 : f32
    %11 = vector.broadcast %cst_8 : f32 to vector<1x16x128xf32>
    %12 = vector.extract_strided_slice %9 {offsets = [0, 0, 0], sizes = [16, 15, 128], strides = [1, 1, 1]} : vector<16x16x128xf32> to vector<16x15x128xf32>
    %13 = tpu.concatenate %10, %12 in 1 : vector<16x1x128xf32>, vector<16x15x128xf32> -> vector<16x16x128xf32>
    %14 = vector.extract_strided_slice %9 {offsets = [0, 1, 0], sizes = [16, 15, 128], strides = [1, 1, 1]} : vector<16x16x128xf32> to vector<16x15x128xf32>
    %15 = tpu.concatenate %14, %10 in 1 : vector<16x15x128xf32>, vector<16x1x128xf32> -> vector<16x16x128xf32>
    %16 = tpu.concatenate %11, %13, %11 in 0 : vector<1x16x128xf32>, vector<16x16x128xf32>, vector<1x16x128xf32> -> vector<18x16x128xf32>
    %c0_9 = arith.constant 0 : index
    %c0_10 = arith.constant 0 : index
    %c0_11 = arith.constant 0 : index
    %c0_12 = arith.constant 0 : index
    %17 = vector.load %arg7[%c0_9, %c0_10, %c0_11, %c0_12] : memref<3x18x16x128xf32, #tpu.memory_space<vmem>>, vector<1x18x16x128xf32>
    %18 = vector.shape_cast %17 : vector<1x18x16x128xf32> to vector<18x16x128xf32>
    %19 = vector.shape_cast %16 : vector<18x16x128xf32> to vector<1x18x16x128xf32>
    tpu.vector_store %arg7[%c0_9, %c0_10, %c0_11, %c0_12], %19 {strides = array<i32>} : memref<3x18x16x128xf32, #tpu.memory_space<vmem>>, vector<1x18x16x128xf32>,
    %20 = tpu.concatenate %11, %9, %11 in 0 : vector<1x16x128xf32>, vector<16x16x128xf32>, vector<1x16x128xf32> -> vector<18x16x128xf32>
    %c1 = arith.constant 1 : index
    %c0_13 = arith.constant 0 : index
    %c0_14 = arith.constant 0 : index
    %c0_15 = arith.constant 0 : index
    %21 = vector.load %arg7[%c1, %c0_13, %c0_14, %c0_15] : memref<3x18x16x128xf32, #tpu.memory_space<vmem>>, vector<1x18x16x128xf32>
    %22 = vector.shape_cast %21 : vector<1x18x16x128xf32> to vector<18x16x128xf32>
    %23 = vector.shape_cast %20 : vector<18x16x128xf32> to vector<1x18x16x128xf32>
    tpu.vector_store %arg7[%c1, %c0_13, %c0_14, %c0_15], %23 {strides = array<i32>} : memref<3x18x16x128xf32, #tpu.memory_space<vmem>>, vector<1x18x16x128xf32>,
    %24 = tpu.concatenate %11, %15, %11 in 0 : vector<1x16x128xf32>, vector<16x16x128xf32>, vector<1x16x128xf32> -> vector<18x16x128xf32>
    %c2 = arith.constant 2 : index
    %c0_16 = arith.constant 0 : index
    %c0_17 = arith.constant 0 : index
    %c0_18 = arith.constant 0 : index
    %25 = vector.load %arg7[%c2, %c0_16, %c0_17, %c0_18] : memref<3x18x16x128xf32, #tpu.memory_space<vmem>>, vector<1x18x16x128xf32>
    %26 = vector.shape_cast %25 : vector<1x18x16x128xf32> to vector<18x16x128xf32>
    %27 = vector.shape_cast %24 : vector<18x16x128xf32> to vector<1x18x16x128xf32>
    tpu.vector_store %arg7[%c2, %c0_16, %c0_17, %c0_18], %27 {strides = array<i32>} : memref<3x18x16x128xf32, #tpu.memory_space<vmem>>, vector<1x18x16x128xf32>,
    %cst_19 = arith.constant 0.000000e+00 : f32
    %28 = vector.broadcast %cst_19 : f32 to vector<256x128xf32>
    %c0_20 = arith.constant 0 : index
    %c0_21 = arith.constant 0 : index
    %c0_22 = arith.constant 0 : index
    %c0_23 = arith.constant 0 : index
    %29 = vector.load %arg7[%c0_20, %c0_21, %c0_22, %c0_23] : memref<3x18x16x128xf32, #tpu.memory_space<vmem>>, vector<1x16x16x128xf32>
    %30 = vector.shape_cast %29 : vector<1x16x16x128xf32> to vector<16x16x128xf32>
    %31 = vector.shape_cast %30 : vector<16x16x128xf32> to vector<256x128xf32>
    %c0_24 = arith.constant 0 : index
    %c0_25 = arith.constant 0 : index
    %c0_26 = arith.constant 0 : index
    %32 = vector.load %arg4[%c0_24, %c0_25, %c0_26] : memref<9x128x128xf32, #tpu.memory_space<vmem>>, vector<1x128x128xf32>
    %33 = vector.shape_cast %32 : vector<1x128x128xf32> to vector<128x128xf32>
    %cst_27 = arith.constant dense<0.000000e+00> : vector<256x128xf32>
    %34 = tpu.matmul %31, %33, %cst_27 {dimension_numbers = #tpu.dot_dimension_numbers<[1], [0], [0], [1], [0, 0, 1, 1], [], []>} : vector<256x128xf32>, vector<128x128xf32>, vector<256x128xf32> -> vector<256x128xf32>
    %35 = arith.addf %28, %34 : vector<256x128xf32>
    %c1_28 = arith.constant 1 : index
    %c0_29 = arith.constant 0 : index
    %c0_30 = arith.constant 0 : index
    %c0_31 = arith.constant 0 : index
    %36 = vector.load %arg7[%c1_28, %c0_29, %c0_30, %c0_31] : memref<3x18x16x128xf32, #tpu.memory_space<vmem>>, vector<1x16x16x128xf32>
    %37 = vector.shape_cast %36 : vector<1x16x16x128xf32> to vector<16x16x128xf32>
    %38 = vector.shape_cast %37 : vector<16x16x128xf32> to vector<256x128xf32>
    %c1_32 = arith.constant 1 : index
    %c0_33 = arith.constant 0 : index
    %c0_34 = arith.constant 0 : index
    %39 = vector.load %arg4[%c1_32, %c0_33, %c0_34] : memref<9x128x128xf32, #tpu.memory_space<vmem>>, vector<1x128x128xf32>
    %40 = vector.shape_cast %39 : vector<1x128x128xf32> to vector<128x128xf32>
    %cst_35 = arith.constant dense<0.000000e+00> : vector<256x128xf32>
    %41 = tpu.matmul %38, %40, %cst_35 {dimension_numbers = #tpu.dot_dimension_numbers<[1], [0], [0], [1], [0, 0, 1, 1], [], []>} : vector<256x128xf32>, vector<128x128xf32>, vector<256x128xf32> -> vector<256x128xf32>
    %42 = arith.addf %35, %41 : vector<256x128xf32>
    %c2_36 = arith.constant 2 : index
    %c0_37 = arith.constant 0 : index
    %c0_38 = arith.constant 0 : index
    %c0_39 = arith.constant 0 : index
    %43 = vector.load %arg7[%c2_36, %c0_37, %c0_38, %c0_39] : memref<3x18x16x128xf32, #tpu.memory_space<vmem>>, vector<1x16x16x128xf32>
    %44 = vector.shape_cast %43 : vector<1x16x16x128xf32> to vector<16x16x128xf32>
    %45 = vector.shape_cast %44 : vector<16x16x128xf32> to vector<256x128xf32>
    %c2_40 = arith.constant 2 : index
    %c0_41 = arith.constant 0 : index
    %c0_42 = arith.constant 0 : index
    %46 = vector.load %arg4[%c2_40, %c0_41, %c0_42] : memref<9x128x128xf32, #tpu.memory_space<vmem>>, vector<1x128x128xf32>
    %47 = vector.shape_cast %46 : vector<1x128x128xf32> to vector<128x128xf32>
    %cst_43 = arith.constant dense<0.000000e+00> : vector<256x128xf32>
    %48 = tpu.matmul %45, %47, %cst_43 {dimension_numbers = #tpu.dot_dimension_numbers<[1], [0], [0], [1], [0, 0, 1, 1], [], []>} : vector<256x128xf32>, vector<128x128xf32>, vector<256x128xf32> -> vector<256x128xf32>
    %49 = arith.addf %42, %48 : vector<256x128xf32>
    %c0_44 = arith.constant 0 : index
    %c1_45 = arith.constant 1 : index
    %c0_46 = arith.constant 0 : index
    %c0_47 = arith.constant 0 : index
    %50 = vector.load %arg7[%c0_44, %c1_45, %c0_46, %c0_47] : memref<3x18x16x128xf32, #tpu.memory_space<vmem>>, vector<1x16x16x128xf32>
    %51 = vector.shape_cast %50 : vector<1x16x16x128xf32> to vector<16x16x128xf32>
    %52 = vector.shape_cast %51 : vector<16x16x128xf32> to vector<256x128xf32>
    %c3 = arith.constant 3 : index
    %c0_48 = arith.constant 0 : index
    %c0_49 = arith.constant 0 : index
    %53 = vector.load %arg4[%c3, %c0_48, %c0_49] : memref<9x128x128xf32, #tpu.memory_space<vmem>>, vector<1x128x128xf32>
    %54 = vector.shape_cast %53 : vector<1x128x128xf32> to vector<128x128xf32>
    %cst_50 = arith.constant dense<0.000000e+00> : vector<256x128xf32>
    %55 = tpu.matmul %52, %54, %cst_50 {dimension_numbers = #tpu.dot_dimension_numbers<[1], [0], [0], [1], [0, 0, 1, 1], [], []>} : vector<256x128xf32>, vector<128x128xf32>, vector<256x128xf32> -> vector<256x128xf32>
    %56 = arith.addf %49, %55 : vector<256x128xf32>
    %c1_51 = arith.constant 1 : index
    %c1_52 = arith.constant 1 : index
    %c0_53 = arith.constant 0 : index
    %c0_54 = arith.constant 0 : index
    %57 = vector.load %arg7[%c1_51, %c1_52, %c0_53, %c0_54] : memref<3x18x16x128xf32, #tpu.memory_space<vmem>>, vector<1x16x16x128xf32>
    %58 = vector.shape_cast %57 : vector<1x16x16x128xf32> to vector<16x16x128xf32>
    %59 = vector.shape_cast %58 : vector<16x16x128xf32> to vector<256x128xf32>
    %c4 = arith.constant 4 : index
    %c0_55 = arith.constant 0 : index
    %c0_56 = arith.constant 0 : index
    %60 = vector.load %arg4[%c4, %c0_55, %c0_56] : memref<9x128x128xf32, #tpu.memory_space<vmem>>, vector<1x128x128xf32>
    %61 = vector.shape_cast %60 : vector<1x128x128xf32> to vector<128x128xf32>
    %cst_57 = arith.constant dense<0.000000e+00> : vector<256x128xf32>
    %62 = tpu.matmul %59, %61, %cst_57 {dimension_numbers = #tpu.dot_dimension_numbers<[1], [0], [0], [1], [0, 0, 1, 1], [], []>} : vector<256x128xf32>, vector<128x128xf32>, vector<256x128xf32> -> vector<256x128xf32>
    %63 = arith.addf %56, %62 : vector<256x128xf32>
    %c2_58 = arith.constant 2 : index
    %c1_59 = arith.constant 1 : index
    %c0_60 = arith.constant 0 : index
    %c0_61 = arith.constant 0 : index
    %64 = vector.load %arg7[%c2_58, %c1_59, %c0_60, %c0_61] : memref<3x18x16x128xf32, #tpu.memory_space<vmem>>, vector<1x16x16x128xf32>
    %65 = vector.shape_cast %64 : vector<1x16x16x128xf32> to vector<16x16x128xf32>
    %66 = vector.shape_cast %65 : vector<16x16x128xf32> to vector<256x128xf32>
    %c5 = arith.constant 5 : index
    %c0_62 = arith.constant 0 : index
    %c0_63 = arith.constant 0 : index
    %67 = vector.load %arg4[%c5, %c0_62, %c0_63] : memref<9x128x128xf32, #tpu.memory_space<vmem>>, vector<1x128x128xf32>
    %68 = vector.shape_cast %67 : vector<1x128x128xf32> to vector<128x128xf32>
    %cst_64 = arith.constant dense<0.000000e+00> : vector<256x128xf32>
    %69 = tpu.matmul %66, %68, %cst_64 {dimension_numbers = #tpu.dot_dimension_numbers<[1], [0], [0], [1], [0, 0, 1, 1], [], []>} : vector<256x128xf32>, vector<128x128xf32>, vector<256x128xf32> -> vector<256x128xf32>
    %70 = arith.addf %63, %69 : vector<256x128xf32>
    %c0_65 = arith.constant 0 : index
    %c2_66 = arith.constant 2 : index
    %c0_67 = arith.constant 0 : index
    %c0_68 = arith.constant 0 : index
    %71 = vector.load %arg7[%c0_65, %c2_66, %c0_67, %c0_68] : memref<3x18x16x128xf32, #tpu.memory_space<vmem>>, vector<1x16x16x128xf32>
    %72 = vector.shape_cast %71 : vector<1x16x16x128xf32> to vector<16x16x128xf32>
    %73 = vector.shape_cast %72 : vector<16x16x128xf32> to vector<256x128xf32>
    %c6 = arith.constant 6 : index
    %c0_69 = arith.constant 0 : index
    %c0_70 = arith.constant 0 : index
    %74 = vector.load %arg4[%c6, %c0_69, %c0_70] : memref<9x128x128xf32, #tpu.memory_space<vmem>>, vector<1x128x128xf32>
    %75 = vector.shape_cast %74 : vector<1x128x128xf32> to vector<128x128xf32>
    %cst_71 = arith.constant dense<0.000000e+00> : vector<256x128xf32>
    %76 = tpu.matmul %73, %75, %cst_71 {dimension_numbers = #tpu.dot_dimension_numbers<[1], [0], [0], [1], [0, 0, 1, 1], [], []>} : vector<256x128xf32>, vector<128x128xf32>, vector<256x128xf32> -> vector<256x128xf32>
    %77 = arith.addf %70, %76 : vector<256x128xf32>
    %c1_72 = arith.constant 1 : index
    %c2_73 = arith.constant 2 : index
    %c0_74 = arith.constant 0 : index
    %c0_75 = arith.constant 0 : index
    %78 = vector.load %arg7[%c1_72, %c2_73, %c0_74, %c0_75] : memref<3x18x16x128xf32, #tpu.memory_space<vmem>>, vector<1x16x16x128xf32>
    %79 = vector.shape_cast %78 : vector<1x16x16x128xf32> to vector<16x16x128xf32>
    %80 = vector.shape_cast %79 : vector<16x16x128xf32> to vector<256x128xf32>
    %c7 = arith.constant 7 : index
    %c0_76 = arith.constant 0 : index
    %c0_77 = arith.constant 0 : index
    %81 = vector.load %arg4[%c7, %c0_76, %c0_77] : memref<9x128x128xf32, #tpu.memory_space<vmem>>, vector<1x128x128xf32>
    %82 = vector.shape_cast %81 : vector<1x128x128xf32> to vector<128x128xf32>
    %cst_78 = arith.constant dense<0.000000e+00> : vector<256x128xf32>
    %83 = tpu.matmul %80, %82, %cst_78 {dimension_numbers = #tpu.dot_dimension_numbers<[1], [0], [0], [1], [0, 0, 1, 1], [], []>} : vector<256x128xf32>, vector<128x128xf32>, vector<256x128xf32> -> vector<256x128xf32>
    %84 = arith.addf %77, %83 : vector<256x128xf32>
    %c2_79 = arith.constant 2 : index
    %c2_80 = arith.constant 2 : index
    %c0_81 = arith.constant 0 : index
    %c0_82 = arith.constant 0 : index
    %85 = vector.load %arg7[%c2_79, %c2_80, %c0_81, %c0_82] : memref<3x18x16x128xf32, #tpu.memory_space<vmem>>, vector<1x16x16x128xf32>
    %86 = vector.shape_cast %85 : vector<1x16x16x128xf32> to vector<16x16x128xf32>
    %87 = vector.shape_cast %86 : vector<16x16x128xf32> to vector<256x128xf32>
    %c8 = arith.constant 8 : index
    %c0_83 = arith.constant 0 : index
    %c0_84 = arith.constant 0 : index
    %88 = vector.load %arg4[%c8, %c0_83, %c0_84] : memref<9x128x128xf32, #tpu.memory_space<vmem>>, vector<1x128x128xf32>
    %89 = vector.shape_cast %88 : vector<1x128x128xf32> to vector<128x128xf32>
    %cst_85 = arith.constant dense<0.000000e+00> : vector<256x128xf32>
    %90 = tpu.matmul %87, %89, %cst_85 {dimension_numbers = #tpu.dot_dimension_numbers<[1], [0], [0], [1], [0, 0, 1, 1], [], []>} : vector<256x128xf32>, vector<128x128xf32>, vector<256x128xf32> -> vector<256x128xf32>
    %91 = arith.addf %84, %90 : vector<256x128xf32>
    %c0_86 = arith.constant 0 : index
    %c0_87 = arith.constant 0 : index
    %92 = vector.load %arg5[%c0_86, %c0_87] : memref<1x128xf32, #tpu.memory_space<vmem>>, vector<1x128xf32>
    %93 = vector.broadcast %92 : vector<1x128xf32> to vector<256x128xf32>
    %94 = arith.addf %91, %93 : vector<256x128xf32>
    %95 = arith.addf %94, %1 : vector<256x128xf32>
    %cst_88 = arith.constant 0.000000e+00 : f32
    %96 = vector.broadcast %cst_88 : f32 to vector<256x128xf32>
    %97 = arith.maximumf %95, %96 : vector<256x128xf32>
    %98 = vector.shape_cast %97 : vector<256x128xf32> to vector<1x256x128xf32>
    %c0_89 = arith.constant 0 : index
    %c0_90 = arith.constant 0 : index
    %c0_91 = arith.constant 0 : index
    %99 = vector.load %arg6[%c0_89, %c0_90, %c0_91] : memref<1x256x128xf32, #tpu.memory_space<vmem>>, vector<1x256x128xf32>
    tpu.vector_store %arg6[%c0_89, %c0_90, %c0_91], %98 {strides = array<i32>} : memref<1x256x128xf32, #tpu.memory_space<vmem>>, vector<1x256x128xf32>,
    return
  }
  func.func @transform_0(%arg0: i32) -> (i32, i32, i32) {
    %c0_i32 = arith.constant 0 : i32
    %c0_i32_0 = arith.constant 0 : i32
    %c0_i32_1 = arith.constant 0 : i32
    return %arg0, %c0_i32, %c0_i32_0 : i32, i32, i32
  }
  func.func @transform_1(%arg0: i32) -> (i32, i32) {
    %c0_i32 = arith.constant 0 : i32
    %c0_i32_0 = arith.constant 0 : i32
    %c0_i32_1 = arith.constant 0 : i32
    return %c0_i32, %c0_i32_0 : i32, i32
  }
  func.func @transform_2(%arg0: i32) -> (i32, i32) {
    %c0_i32 = arith.constant 0 : i32
    %c0_i32_0 = arith.constant 0 : i32
    %c0_i32_1 = arith.constant 0 : i32
    return %c0_i32, %c0_i32_0 : i32, i32
  }
  func.func @transform_3(%arg0: i32) -> (i32, i32, i32) {
    %c0_i32 = arith.constant 0 : i32
    %c0_i32_0 = arith.constant 0 : i32
    %c0_i32_1 = arith.constant 0 : i32
    %c0_i32_2 = arith.constant 0 : i32
    return %c0_i32, %c0_i32_0, %c0_i32_1 : i32, i32, i32
  }
  func.func @transform_4(%arg0: i32) -> (i32, i32) {
    %c0_i32 = arith.constant 0 : i32
    %c0_i32_0 = arith.constant 0 : i32
    %c0_i32_1 = arith.constant 0 : i32
    return %c0_i32, %c0_i32_0 : i32, i32
  }
  func.func @transform_5(%arg0: i32) -> (i32, i32, i32) {
    %c0_i32 = arith.constant 0 : i32
    %c0_i32_0 = arith.constant 0 : i32
    %c0_i32_1 = arith.constant 0 : i32
    return %arg0, %c0_i32, %c0_i32_0 : i32, i32, i32
  }
}

</mosaic_0001>

<bundles_post_ra>
// kernel: basic_block_forward.1
= control target key start
LH: loop header
LB: loop body
LE: loop exit
PB: predicated region body
PF: predicated region fallthrough
CT: control target
= control target key end

     0   :  { %s5399_s18 = smov 0   ;;  %s7379_s0 = inlined_call_operand.vmem [shape: f32[2,256,128], index: 0, kind: input, shape index: {}]   ;;  %s7380_s1 = inlined_call_operand.vmem [shape: f32[128,128], index: 1, kind: input, shape index: {}]   ;;  %s7381_s2 = inlined_call_operand.vmem [shape: f32[1,128], index: 2, kind: input, shape index: {}]   ;;  %s7382_s3 = inlined_call_operand.vmem [shape: f32[9,128,128], index: 3, kind: input, shape index: {}]   ;;  %s7383_s4 = inlined_call_operand.vmem [shape: f32[1,128], index: 4, kind: input, shape index: {}]   ;;  %s7384_s5 = inlined_call_operand.vmem [shape: f32[2,256,128], index: 5, kind: output, shape index: {}]  }
   0x1 LB: > { %s3758_s19 = sadd.s32 4294967295, %s5366_s18   ;;  %p3762_p0 = scmp.ge.s32.totalorder %s5366_s18, 1  ;;  %s5366_s18 = sphi %s5399_s18, %s15_s18  }
   0x2   : > { %p187_p1 = scmp.lt.s32.totalorder %s5366_s18, 3 }
   0x4   : > { %p188_p2 = pnand %p3762_p0, %p187_p1 }
   0x6   : > { %191 = sbr.rel (%p188_p2) target bundleno = 760 (0x2f8), region = 40 }
   0xb   : > { %v272_v0 = vld [vmem:[%s7380_s1 + $0x78] sm:$0xff]  ;;  %v271_v1 = vld [vmem:[%s7380_s1 + $0x70] sm:$0xff]  ;;  %p215_p3 = scmp.lt.s32.totalorder %s3758_s19, 1  ;;  %v270_v2 = vld [vmem:[%s7380_s1 + $0x68] sm:$0xff]  ;;  %vm569_vm0 = vcmask 1040384   ;;  %vm666_vm2 = vcmask 1046528  }
   0xc   : > { %4519 = vmatprep.subr.mxu0 %v272_v0  ;;  %v269_v3 = vld [vmem:[%s7380_s1 + $0x60] sm:$0xff]  ;;  %v3783_v4 = vld [vmem:[%s7382_s3 + $0xf8] sm:$0xff]  ;;  %v267_v7 = vld [vmem:[%s7380_s1 + $0x50] sm:$0xff] }
   0xd   : > { %4520 = vmatpush3.msra.mxu0 %v272_v0  ;;  %s7665_s19 = smov (!%p215_p3, %s3758_s19), 1  ;;  %v268_v5 = vld [vmem:[%s7380_s1 + $0x58] sm:$0xff]  ;;  %4599 = vmatprep.subr.mxu1 %v3783_v4  ;;  %v266_v8 = vld [vmem:[%s7380_s1 + $0x48] sm:$0xff]  ;;  %v265_v9 = vld [vmem:[%s7380_s1 + $0x40] sm:$0xff] }
   0xe   : > { %4521 = vmatprep.subr.mxu0 %v271_v1  ;;  %s3899_s28 = sshll.u32 %s7665_s19, 8  ;;  %4600 = vmatpush3.msra.mxu1 %v3783_v4  ;;  %v264_v10 = vld [vmem:[%s7380_s1 + $0x38] sm:$0xff]  ;;  %v263_v11 = vld [vmem:[%s7380_s1 + $0x30] sm:$0xff]  ;;  %v3781_v13 = vld [vmem:[%s7382_s3 + $0xe8] sm:$0xff] }
   0xf   : > { %4522 = vmatpush3.msra.mxu0 %v271_v1  ;;  %s5427_s6 = scalar_lea.vmem %s7379_s0, %s3899_s28  ;;  %v3782_v12 = vld [vmem:[%s7382_s3 + $0xf0] sm:$0xff]  ;;  %v262_v14 = vld [vmem:[%s7380_s1 + $0x28] sm:$0xff]  ;;  %v3780_v15 = vld [vmem:[%s7382_s3 + $0xe0] sm:$0xff]  ;;  %s7166_s10 = scalar_lea.vmem %s7384_s5, %s3899_s28 }
  0x10   : > { %4523 = vmatprep.subr.mxu0 %v270_v2  ;;  %v225_v6 = vld [vmem:[%s5427_s6] sm:$0xff]  ;;  %4601 = vmatprep.subr.mxu1 %v3782_v12  ;;  %v3779_v17 = vld [vmem:[%s7382_s3 + $0xd8] sm:$0xff]  ;;  %v3778_v19 = vld [vmem:[%s7382_s3 + $0xd0] sm:$0xff] }
  0x11   : > { %4524 = vmatpush3.msra.mxu0 %v270_v2  ;;  %4551 = vmatprep.mubr.f32.mxu0 %v225_v6  ;;  %v261_v16 = vld [vmem:[%s7380_s1 + $0x20] sm:$0xff]  ;;  %v260_v18 = vld [vmem:[%s7380_s1 + $0x18] sm:$0xff]  ;;  %v259_v20 = vld [vmem:[%s7380_s1 + $0x10] sm:$0xff] }
  0x12   : > { %4525 = vmatprep.subr.mxu0 %v269_v3  ;;  %4602 = vmatpush3.msra.mxu1 %v3782_v12  ;;  %v3777_v21 = vld [vmem:[%s7382_s3 + $0xc8] sm:$0xff]  ;;  %v3776_v23 = vld [vmem:[%s7382_s3 + $0xc0] sm:$0xff]  ;;  %v3775_v25 = vld [vmem:[%s7382_s3 + $0xb8] sm:$0xff] }
  0x13   : > { %4526 = vmatpush3.msra.mxu0 %v269_v3  ;;  %4603 = vmatprep.subr.mxu1 %v3781_v13  ;;  %v258_v22 = vld [vmem:[%s7380_s1 + $0x8] sm:$0xff]  ;;  %v257_v24 = vld [vmem:[%s7380_s1] sm:$0xff]  ;;  %v920_v27 = vld [vmem:[%s7382_s3 + $0x78] sm:$0xff] }
  0x14   : > { %4527 = vmatprep.subr.mxu0 %v268_v5  ;;  %4604 = vmatpush3.msra.mxu1 %v3781_v13  ;;  %v226_v26 = vld [vmem:[%s5427_s6 + $0x8] sm:$0xff]  ;;  %v227_v28 = vld [vmem:[%s5427_s6 + $0x10] sm:$0xff]  ;;  %v228_v31 = vld [vmem:[%s5427_s6 + $0x18] sm:$0xff] }
  0x15   : > { %4528 = vmatpush3.msra.mxu0 %v268_v5  ;;  %4605 = vmatprep.subr.mxu1 %v3780_v15  ;;  %v919_v29 = vld [vmem:[%s7382_s3 + $0x70] sm:$0xff]  ;;  %v918_v32 = vld [vmem:[%s7382_s3 + $0x68] sm:$0xff]  ;;  %v229_v33 = vld [vmem:[%s5427_s6 + $0x20] sm:$0xff] }
  0x16   : > { %4529 = vmatprep.subr.mxu0 %v267_v7  ;;  %4606 = vmatpush3.msra.mxu1 %v3780_v15  ;;  %v3774_v30 = vld [vmem:[%s7382_s3 + $0xb0] sm:$0xff]  ;;  %v917_v34 = vld [vmem:[%s7382_s3 + $0x60] sm:$0xff]  ;;  %v3773_v35 = vld [vmem:[%s7382_s3 + $0xa8] sm:$0xff] }
  0x17   : > { %4530 = vmatpush3.msra.mxu0 %v267_v7  ;;  %4607 = vmatprep.subr.mxu1 %v3779_v17  ;;  %v230_v36 = vld [vmem:[%s5427_s6 + $0x28] sm:$0xff]  ;;  %v916_v37 = vld [vmem:[%s7382_s3 + $0x58] sm:$0xff]  ;;  %v231_v38 = vld [vmem:[%s5427_s6 + $0x30] sm:$0xff] }
  0x18   : > { %4531 = vmatprep.subr.mxu0 %v266_v8  ;;  %4608 = vmatpush3.msra.mxu1 %v3779_v17  ;;  %v915_v39 = vld [vmem:[%s7382_s3 + $0x50] sm:$0xff]  ;;  %v3772_v40 = vld [vmem:[%s7382_s3 + $0xa0] sm:$0xff]  ;;  %v232_v41 = vld [vmem:[%s5427_s6 + $0x38] sm:$0xff] }
  0x19   : > { %4532 = vmatpush3.msra.mxu0 %v266_v8  ;;  %4609 = vmatprep.subr.mxu1 %v3778_v19  ;;  %v914_v42 = vld [vmem:[%s7382_s3 + $0x48] sm:$0xff]  ;;  %v233_v43 = vld [vmem:[%s5427_s6 + $0x40] sm:$0xff]  ;;  %v3771_v45 = vld [vmem:[%s7382_s3 + $0x98] sm:$0xff] }
  0x1a   : > { %4533 = vmatprep.subr.mxu0 %v265_v9  ;;  %4610 = vmatpush3.msra.mxu1 %v3778_v19  ;;  %v913_v44 = vld [vmem:[%s7382_s3 + $0x40] sm:$0xff]  ;;  %v234_v46 = vld [vmem:[%s5427_s6 + $0x48] sm:$0xff]  ;;  %v912_v47 = vld [vmem:[%s7382_s3 + $0x38] sm:$0xff] }
  0x1b   : > { %4534 = vmatpush3.msra.mxu0 %v265_v9  ;;  %4611 = vmatprep.subr.mxu1 %v3777_v21  ;;  %v235_v48 = vld [vmem:[%s5427_s6 + $0x50] sm:$0xff]  ;;  %v236_v51 = vld [vmem:[%s5427_s6 + $0x58] sm:$0xff]  ;;  %v910_v52 = vld [vmem:[%s7382_s3 + $0x28] sm:$0xff] }
  0x1c   : > { %4535 = vmatprep.subr.mxu0 %v264_v10  ;;  %4612 = vmatpush3.msra.mxu1 %v3777_v21  ;;  %v911_v49 = vld [vmem:[%s7382_s3 + $0x30] sm:$0xff]  ;;  %v237_v53 = vld [vmem:[%s5427_s6 + $0x60] sm:$0xff]  ;;  %v3769_v55 = vld [vmem:[%s7382_s3 + $0x88] sm:$0xff] }
  0x1d   : > { %4536 = vmatpush3.msra.mxu0 %v264_v10  ;;  %4613 = vmatprep.subr.mxu1 %v3776_v23  ;;  %v3770_v50 = vld [vmem:[%s7382_s3 + $0x90] sm:$0xff]  ;;  %v909_v54 = vld [vmem:[%s7382_s3 + $0x20] sm:$0xff]  ;;  %v238_v56 = vld [vmem:[%s5427_s6 + $0x68] sm:$0xff] }
  0x1e   : > { %4537 = vmatprep.subr.mxu0 %v263_v11  ;;  %4614 = vmatpush3.msra.mxu1 %v3776_v23  ;;  %v908_v57 = vld [vmem:[%s7382_s3 + $0x18] sm:$0xff]  ;;  %v239_v58 = vld [vmem:[%s5427_s6 + $0x70] sm:$0xff]  ;;  %v906_v61 = vld [vmem:[%s7382_s3 + $0x8] sm:$0xff] }
  0x1f   : > { %4538 = vmatpush3.msra.mxu0 %v263_v11  ;;  %4615 = vmatprep.subr.mxu1 %v3775_v25  ;;  %v907_v59 = vld [vmem:[%s7382_s3 + $0x10] sm:$0xff]  ;;  %v240_v60 = vld [vmem:[%s5427_s6 + $0x78] sm:$0xff]  ;;  %v241_v62 = vld [vmem:[%s5427_s6 + $0x80] sm:$0xff] }
  0x20   : > { %4539 = vmatprep.subr.mxu0 %v262_v14  ;;  %4616 = vmatpush3.msra.mxu1 %v3775_v25  ;;  %v242_v63 = vld [vmem:[%s5427_s6 + $0x88] sm:$0xff]  ;;  %v243_v0 = vld [vmem:[%s5427_s6 + $0x90] sm:$0xff]  ;;  %v244_v1 = vld [vmem:[%s5427_s6 + $0x98] sm:$0xff] }
  0x21   : > { %4540 = vmatpush3.msra.mxu0 %v262_v14  ;;  %4617 = vmatprep.subr.mxu1 %v3774_v30  ;;  %v245_v2 = vld [vmem:[%s5427_s6 + $0xa0] sm:$0xff]  ;;  %v246_v3 = vld [vmem:[%s5427_s6 + $0xa8] sm:$0xff]  ;;  %v247_v4 = vld [vmem:[%s5427_s6 + $0xb0] sm:$0xff] }
  0x22   : > { %4541 = vmatprep.subr.mxu0 %v261_v16  ;;  %4618 = vmatpush3.msra.mxu1 %v3774_v30  ;;  %v248_v5 = vld [vmem:[%s5427_s6 + $0xb8] sm:$0xff]  ;;  %v249_v6 = vld [vmem:[%s5427_s6 + $0xc0] sm:$0xff]  ;;  %v250_v7 = vld [vmem:[%s5427_s6 + $0xc8] sm:$0xff] }
  0x23   : > { %4542 = vmatpush3.msra.mxu0 %v261_v16  ;;  %4619 = vmatprep.subr.mxu1 %v3773_v35  ;;  %v251_v8 = vld [vmem:[%s5427_s6 + $0xd0] sm:$0xff]  ;;  %v252_v9 = vld [vmem:[%s5427_s6 + $0xd8] sm:$0xff]  ;;  %v253_v10 = vld [vmem:[%s5427_s6 + $0xe0] sm:$0xff]  ;;  %v7385_v16 = vmov 0.0  }
  0x24   : > { %4543 = vmatprep.subr.mxu0 %v260_v18  ;;  %4620 = vmatpush3.msra.mxu1 %v3773_v35  ;;  %v254_v11 = vld [vmem:[%s5427_s6 + $0xe8] sm:$0xff]  ;;  %v255_v12 = vld [vmem:[%s5427_s6 + $0xf0] sm:$0xff]  ;;  %v256_v13 = vld [vmem:[%s5427_s6 + $0xf8] sm:$0xff] }
  0x25   : > { %4544 = vmatpush3.msra.mxu0 %v260_v18  ;;  %4621 = vmatprep.subr.mxu1 %v3772_v40  ;;  %v3768_v14 = vld [vmem:[%s7382_s3 + $0x80] sm:$0xff]  ;;  %v3799_v17 = vld [vmem:[%s7382_s3 + $0x178] sm:$0xff]  ;;  %v3798_v18 = vld [vmem:[%s7382_s3 + $0x170] sm:$0xff] }
  0x26   : > { %4545 = vmatprep.subr.mxu0 %v259_v20  ;;  %4622 = vmatpush3.msra.mxu1 %v3772_v40  ;;  %v905_v15 = vld [vmem:[%s7382_s3] sm:$0xff]  ;;  %v3797_v19 = vld [vmem:[%s7382_s3 + $0x168] sm:$0xff]  ;;  %v3795_v21 = vld [vmem:[%s7382_s3 + $0x158] sm:$0xff] }
  0x27   : > { %4546 = vmatpush3.msra.mxu0 %v259_v20  ;;  %4623 = vmatprep.subr.mxu1 %v3771_v45  ;;  %v3796_v20 = vld [vmem:[%s7382_s3 + $0x160] sm:$0xff]  ;;  %v3793_v23 = vld [vmem:[%s7382_s3 + $0x148] sm:$0xff]  ;;  %v3791_v25 = vld [vmem:[%s7382_s3 + $0x138] sm:$0xff] }
  0x28   : > { %4547 = vmatprep.subr.mxu0 %v258_v22  ;;  %4624 = vmatpush3.msra.mxu1 %v3771_v45  ;;  %v3812_v30 = vld [vmem:[%s7382_s3 + $0x1e0] sm:$0xff]  ;;  %v3809_v35 = vld [vmem:[%s7382_s3 + $0x1c8] sm:$0xff]  ;;  %v3786_v40 = vld [vmem:[%s7382_s3 + $0x110] sm:$0xff] }
  0x29   : > { %4548 = vmatpush3.msra.mxu0 %v258_v22  ;;  %4625 = vmatprep.subr.mxu1 %v3770_v50  ;;  %v3794_v22 = vld [vmem:[%s7382_s3 + $0x150] sm:$0xff]  ;;  %v3784_v45 = vld [vmem:[%s7382_s3 + $0x100] sm:$0xff]  ;;  %vm5718_vm1 = vmneg %vm569_vm0 }
  0x2a   : > { %4549 = vmatprep.subr.mxu0 %v257_v24  ;;  %4626 = vmatpush3.msra.mxu1 %v3770_v50  ;;  %v5702_v50 = vld [vmem:[%s7382_s3 + $0x2f8] sm:$0xff] }
  0x2b   : > { %4550 = vmatpush3.msra.mxu0 %v257_v24  ;;  %4627 = vmatprep.subr.mxu1 %v3769_v55  ;;  %v3792_v24 = vld [vmem:[%s7382_s3 + $0x140] sm:$0xff] }
  0x2c   : > { %4552 = vmatmul.mubr.f32.vlgmr.msra.gmra.mxu0 %v226_v26  ;;  %4679 = vmatprep.subr.mxu0 %v920_v27  ;;  %v3815_v26 = vld [vmem:[%s7382_s3 + $0x1f8] sm:$0xff] }
  0x2d   : > { %4554 = vmatprep.mubr.f32.mxu0 %v227_v28  ;;  %4680 = vmatpush3.msra.mxu0 %v920_v27  ;;  %v3814_v27 = vld [vmem:[%s7382_s3 + $0x1f0] sm:$0xff] }
  0x2e   : > { %4681 = vmatprep.subr.mxu0 %v919_v29  ;;  %4628 = vmatpush3.msra.mxu1 %v3769_v55  ;;  %v3790_v28 = vld [vmem:[%s7382_s3 + $0x130] sm:$0xff] }
  0x2f   : > { %4682 = vmatpush3.msra.mxu0 %v919_v29  ;;  %4629 = vmatprep.subr.mxu1 %v3768_v14  ;;  %v3813_v29 = vld [vmem:[%s7382_s3 + $0x1e8] sm:$0xff] }
  0x30   : > { %4555 = vmatmul.mubr.f32.gmra.mxu0 %v228_v31  ;;  %4683 = vmatprep.subr.mxu0 %v918_v32  ;;  %v3789_v31 = vld [vmem:[%s7382_s3 + $0x128] sm:$0xff] }
  0x31   : > { %4557 = vmatprep.mubr.f32.mxu0 %v229_v33  ;;  %4684 = vmatpush3.msra.mxu0 %v918_v32  ;;  %v3811_v32 = vld [vmem:[%s7382_s3 + $0x1d8] sm:$0xff]  ;;  %v3810_v33 = vld [vmem:[%s7382_s3 + $0x1d0] sm:$0xff] }
  0x32   : > { %4685 = vmatprep.subr.mxu0 %v917_v34  ;;  %4630 = vmatpush3.msra.mxu1 %v3768_v14 }
  0x33   : > { %4686 = vmatpush3.msra.mxu0 %v917_v34  ;;  %4631 = vmatprep.mubr.f32.mxu1 %v7385_v16  ;;  %v3788_v34 = vld [vmem:[%s7382_s3 + $0x120] sm:$0xff] }
  0x34   : > { %4558 = vmatmul.mubr.f32.gmra.mxu0 %v230_v36  ;;  %4687 = vmatprep.subr.mxu0 %v916_v37  ;;  %v3808_v36 = vld [vmem:[%s7382_s3 + $0x1c0] sm:$0xff] }
  0x35   : > { %4560 = vmatprep.mubr.f32.mxu0 %v231_v38  ;;  %4688 = vmatpush3.msra.mxu0 %v916_v37  ;;  %v3787_v37 = vld [vmem:[%s7382_s3 + $0x118] sm:$0xff] }
  0x36   : > { %4689 = vmatprep.subr.mxu0 %v915_v39  ;;  %4632 = vmatmul.mubr.f32.vlgmr.msra.gmra.mxu1 %v7385_v16  ;;  %v3807_v38 = vld [vmem:[%s7382_s3 + $0x1b8] sm:$0xff] }
  0x37   : > { %4690 = vmatpush3.msra.mxu0 %v915_v39  ;;  %4759 = vmatprep.subr.mxu1 %v3799_v17  ;;  %v3806_v39 = vld [vmem:[%s7382_s3 + $0x1b0] sm:$0xff] }
  0x38   : > { %4561 = vmatmul.mubr.f32.gmra.mxu0 %v232_v41  ;;  %4691 = vmatprep.subr.mxu0 %v914_v42  ;;  %v3805_v41 = vld [vmem:[%s7382_s3 + $0x1a8] sm:$0xff] }
  0x39   : > { %4563 = vmatprep.mubr.f32.mxu0 %v233_v43  ;;  %4692 = vmatpush3.msra.mxu0 %v914_v42  ;;  %v3804_v42 = vld [vmem:[%s7382_s3 + $0x1a0] sm:$0xff]  ;;  %v3785_v43 = vld [vmem:[%s7382_s3 + $0x108] sm:$0xff] }
  0x3a   : > { %4693 = vmatprep.subr.mxu0 %v913_v44  ;;  %4760 = vmatpush3.msra.mxu1 %v3799_v17 }
  0x3b   : > { %4694 = vmatpush3.msra.mxu0 %v913_v44  ;;  %4761 = vmatprep.subr.mxu1 %v3798_v18  ;;  %v3803_v44 = vld [vmem:[%s7382_s3 + $0x198] sm:$0xff] }
  0x3c   : > { %4564 = vmatmul.mubr.f32.gmra.mxu0 %v234_v46  ;;  %4695 = vmatprep.subr.mxu0 %v912_v47  ;;  %v3802_v46 = vld [vmem:[%s7382_s3 + $0x190] sm:$0xff] }
  0x3d   : > { %4566 = vmatprep.mubr.f32.mxu0 %v235_v48  ;;  %4696 = vmatpush3.msra.mxu0 %v912_v47  ;;  %v3801_v47 = vld [vmem:[%s7382_s3 + $0x188] sm:$0xff]  ;;  %v5693_v48 = vld [vmem:[%s7382_s3 + $0x278] sm:$0xff] }
  0x3e   : > { %4697 = vmatprep.subr.mxu0 %v911_v49  ;;  %4762 = vmatpush3.msra.mxu1 %v3798_v18 }
  0x3f   : > { %4698 = vmatpush3.msra.mxu0 %v911_v49  ;;  %4763 = vmatprep.subr.mxu1 %v3797_v19  ;;  %v3800_v49 = vld [vmem:[%s7382_s3 + $0x180] sm:$0xff] }
  0x40   : > { %4567 = vmatmul.mubr.f32.gmra.mxu0 %v236_v51  ;;  %4699 = vmatprep.subr.mxu0 %v910_v52  ;;  %v5708_v51 = vld [vmem:[%s7381_s2] ss:$0 sm:$0xff] }
  0x41   : > { %4569 = vmatprep.mubr.f32.mxu0 %v237_v53  ;;  %4700 = vmatpush3.msra.mxu0 %v910_v52 }
  0x42   : > { %4701 = vmatprep.subr.mxu0 %v909_v54  ;;  %4764 = vmatpush3.msra.mxu1 %v3797_v19 }
  0x43   : > { %4702 = vmatpush3.msra.mxu0 %v909_v54  ;;  %4765 = vmatprep.subr.mxu1 %v3796_v20 }
  0x44   : > { %4570 = vmatmul.mubr.f32.gmra.mxu0 %v238_v56  ;;  %4703 = vmatprep.subr.mxu0 %v908_v57 }
  0x45   : > { %4572 = vmatprep.mubr.f32.mxu0 %v239_v58  ;;  %4704 = vmatpush3.msra.mxu0 %v908_v57 }
  0x46   : > { %4705 = vmatprep.subr.mxu0 %v907_v59  ;;  %4766 = vmatpush3.msra.mxu1 %v3796_v20 }
  0x47   : > { %4706 = vmatpush3.msra.mxu0 %v907_v59  ;;  %4767 = vmatprep.subr.mxu1 %v3795_v21 }
  0x48   : > { %4573 = vmatmul.mubr.f32.gmra.mxu0 %v240_v60  ;;  %4707 = vmatprep.subr.mxu0 %v906_v61 }
  0x49   : > { %4575 = vmatprep.mubr.f32.mxu0 %v241_v62  ;;  %4708 = vmatpush3.msra.mxu0 %v906_v61 }
  0x4a   : > { %4709 = vmatprep.subr.mxu0 %v905_v15  ;;  %4768 = vmatpush3.msra.mxu1 %v3795_v21 }
  0x4b   : > { %4710 = vmatpush3.msra.mxu0 %v905_v15  ;;  %4769 = vmatprep.subr.mxu1 %v3794_v22 }
  0x4c   : > { %4576 = vmatmul.mubr.f32.gmra.mxu0 %v242_v63  ;;  %4770 = vmatpush3.msra.mxu1 %v3794_v22 }
  0x4d   : > { %4578 = vmatprep.mubr.f32.mxu0 %v243_v0  ;;  %4771 = vmatprep.subr.mxu1 %v3793_v23 }
  0x4e   : > { %4772 = vmatpush3.msra.mxu1 %v3793_v23  ;;  %4839 = vmatprep.subr.mxu0 %v3815_v26 }
  0x4f   : > { %4773 = vmatprep.subr.mxu1 %v3792_v24 }
  0x50   : > { %4579 = vmatmul.mubr.f32.gmra.mxu0 %v244_v1  ;;  %4774 = vmatpush3.msra.mxu1 %v3792_v24 }
  0x51   : > { %4581 = vmatprep.mubr.f32.mxu0 %v245_v2  ;;  %4775 = vmatprep.subr.mxu1 %v3791_v25 }
  0x52   : > { %4776 = vmatpush3.msra.mxu1 %v3791_v25 }
  0x53   : > { %4777 = vmatprep.subr.mxu1 %v3790_v28 }
  0x54   : > { %4582 = vmatmul.mubr.f32.gmra.mxu0 %v246_v3  ;;  %4778 = vmatpush3.msra.mxu1 %v3790_v28 }
  0x55   : > { %4584 = vmatprep.mubr.f32.mxu0 %v247_v4  ;;  %4779 = vmatprep.subr.mxu1 %v3789_v31 }
  0x56   : > { %4780 = vmatpush3.msra.mxu1 %v3789_v31 }
  0x57   : > { %4781 = vmatprep.subr.mxu1 %v3788_v34 }
  0x58   : > { %4585 = vmatmul.mubr.f32.gmra.mxu0 %v248_v5  ;;  %4782 = vmatpush3.msra.mxu1 %v3788_v34 }
  0x59   : > { %4587 = vmatprep.mubr.f32.mxu0 %v249_v6  ;;  %4783 = vmatprep.subr.mxu1 %v3787_v37 }
  0x5a   : > { %4784 = vmatpush3.msra.mxu1 %v3787_v37 }
  0x5b   : > { %4785 = vmatprep.subr.mxu1 %v3786_v40 }
  0x5c   : > { %4588 = vmatmul.mubr.f32.gmra.mxu0 %v250_v7  ;;  %4786 = vmatpush3.msra.mxu1 %v3786_v40 }
  0x5d   : > { %4590 = vmatprep.mubr.f32.mxu0 %v251_v8  ;;  %4787 = vmatprep.subr.mxu1 %v3785_v43 }
  0x5e   : > { %4788 = vmatpush3.msra.mxu1 %v3785_v43 }
  0x5f   : > { %4789 = vmatprep.subr.mxu1 %v3784_v45 }
  0x60   : > { %4591 = vmatmul.mubr.f32.gmra.mxu0 %v252_v9  ;;  %4790 = vmatpush3.msra.mxu1 %v3784_v45 }
  0x61   : > { %4593 = vmatprep.mubr.f32.mxu0 %v253_v10  ;;  %4919 = vmatprep.subr.mxu1 %v5693_v48 }
  0x64   : > { %4594 = vmatmul.mubr.f32.gmra.mxu0 %v254_v11 }
  0x65   : > { %4596 = vmatprep.mubr.f32.mxu0 %v255_v12 }
  0x68   : > { %4597 = vmatmul.mubr.f32.gmra.mxu0 %v256_v13 }
  0x69   : > { %4711 = vmatprep.mubr.f32.mxu0 %v7385_v16 }
  0x6c   : > { %4712 = vmatmul.mubr.f32.vlgmr.msra.gmra.mxu0 %v7385_v16 }
  0x6d   : > { %4840 = vmatpush3.msra.mxu0 %v3815_v26 }
  0x6e   : > { %4841 = vmatprep.subr.mxu0 %v3814_v27 }
  0x6f   : > { %4842 = vmatpush3.msra.mxu0 %v3814_v27 }
  0x70   : > { %4843 = vmatprep.subr.mxu0 %v3813_v29 }
  0x71   : > { %4844 = vmatpush3.msra.mxu0 %v3813_v29 }
  0x72   : > { %4845 = vmatprep.subr.mxu0 %v3812_v30 }
  0x73   : > { %4846 = vmatpush3.msra.mxu0 %v3812_v30 }
  0x74   : > { %4847 = vmatprep.subr.mxu0 %v3811_v32 }
  0x75   : > { %4848 = vmatpush3.msra.mxu0 %v3811_v32 }
  0x76   : > { %4849 = vmatprep.subr.mxu0 %v3810_v33 }
  0x77   : > { %4850 = vmatpush3.msra.mxu0 %v3810_v33 }
  0x78   : > { %4851 = vmatprep.subr.mxu0 %v3809_v35 }
  0x79   : > { %4852 = vmatpush3.msra.mxu0 %v3809_v35 }
  0x7a   : > { %4853 = vmatprep.subr.mxu0 %v3808_v36 }
  0x7b   : > { %4854 = vmatpush3.msra.mxu0 %v3808_v36 }
  0x7c   : > { %4855 = vmatprep.subr.mxu0 %v3807_v38 }
  0x7d   : > { %4856 = vmatpush3.msra.mxu0 %v3807_v38 }
  0x7e   : > { %4857 = vmatprep.subr.mxu0 %v3806_v39 }
  0x7f   : > { %4858 = vmatpush3.msra.mxu0 %v3806_v39 }
  0x80   : > { %4859 = vmatprep.subr.mxu0 %v3805_v41 }
  0x81   : > { %4860 = vmatpush3.msra.mxu0 %v3805_v41 }
  0x82   : > { %4861 = vmatprep.subr.mxu0 %v3804_v42 }
  0x83   : > { %4862 = vmatpush3.msra.mxu0 %v3804_v42 }
  0x84   : > { %4863 = vmatprep.subr.mxu0 %v3803_v44 }
  0x85   : > { %4864 = vmatpush3.msra.mxu0 %v3803_v44 }
  0x86   : > { %4865 = vmatprep.subr.mxu0 %v3802_v46 }
  0x87   : > { %4866 = vmatpush3.msra.mxu0 %v3802_v46 }
  0x88   : > { %4867 = vmatprep.subr.mxu0 %v3801_v47 }
  0x89   : > { %4868 = vmatpush3.msra.mxu0 %v3801_v47 }
  0x8a   : > { %4869 = vmatprep.subr.mxu0 %v3800_v49 }
  0x8b   : > { %4870 = vmatpush3.msra.mxu0 %v3800_v49 }
  0x8c   : > { %4999 = vmatprep.subr.mxu0 %v5702_v50 }
  0xec   : > { %v4553_v52 = vpop.f32.mrf.mxu0 }
  0xed   : > { %v352_v53 = vadd.f32 %v4553_v52, %v5708_v51 }
  0xee   : > { %v346_v54 = vpop.f32.mrf.mxu0 }
  0xef   : > { %v5711_v55 = vmax.f32 %v352_v53, 0.0  ;;  %v347_v56 = vadd.f32 %v5708_v51, %v346_v54 }
  0xf0   : > { %v4556_v57 = vpop.f32.mrf.mxu0 }
  0xf1   : > { %7444 = vst [vmem:[#allocation3_spill] sm:$0xff] %v5711_v55  ;;  %v5714_v58 = vmax.f32 %v347_v56, 0.0  ;;  %v362_v59 = vadd.f32 %v4556_v57, %v5708_v51  ;;  %v571_v1 = vrot.slane %v5711_v55, 7 }
  0xf2   : > { %v356_v60 = vpop.f32.mrf.mxu0 }
  0xf3   : > { %7445 = vst [vmem:[#allocation4_spill] sm:$0xff] %v5714_v58  ;;  %v5722_v62 = vmax.f32 %v362_v59, 0.0  ;;  %v357_v63 = vadd.f32 %v5708_v51, %v356_v60  ;;  %4634 = vmatprep.mubr.f32.mxu1 %v5714_v58  ;;  %v5727_v0 = vrot.slane %v5714_v58, 7 }
  0xf4   : > { %v4559_v2 = vpop.f32.mrf.mxu0  ;;  %4635 = vmatmul.mubr.f32.gmra.mxu1 %v5711_v55 }
  0xf5   : > { %v5731_v3 = vmax.f32 %v357_v63, 0.0  ;;  %v372_v4 = vadd.f32 %v4559_v2, %v5708_v51  ;;  %4714 = vmatprep.mubr.msk.f32.mxu0 %vm5718_vm1, %v5727_v0  ;;  %v5739_v5 = vsel %vm569_vm0, %v5727_v0, %v571_v1  ;;  %v574_v10 = vrot.slane %v5722_v62, 7 }
  0xf6   : > { %v366_v6 = vpop.f32.mrf.mxu0  ;;  %4715 = vmatmul.mubr.f32.gmra.mxu0 %v5739_v5 }
  0xf7   : > { %v5742_v7 = vmax.f32 %v372_v4, 0.0  ;;  %v367_v8 = vadd.f32 %v5708_v51, %v366_v6  ;;  %4637 = vmatprep.mubr.f32.mxu1 %v5731_v3  ;;  %v5747_v9 = vrot.slane %v5731_v3, 7 }
  0xf8   : > { %v4562_v11 = vpop.f32.mrf.mxu0  ;;  %4638 = vmatmul.mubr.f32.gmra.mxu1 %v5722_v62 }
  0xf9   : > { %7448 = vst [vmem:[#allocation5_spill] sm:$0xff] %v5747_v9  ;;  %v5751_v12 = vmax.f32 %v367_v8, 0.0  ;;  %v382_v13 = vadd.f32 %v4562_v11, %v5708_v51  ;;  %4717 = vmatprep.mubr.msk.f32.mxu0 %vm5718_vm1, %v5747_v9  ;;  %v5759_v14 = vsel %vm569_vm0, %v5747_v9, %v574_v10  ;;  %v577_v20 = vrot.slane %v5742_v7, 7 }
  0xfa   : > { %7449 = vst [vmem:[#allocation6_spill] sm:$0xff] %v5759_v14  ;;  %v376_v15 = vpop.f32.mrf.mxu0  ;;  %4718 = vmatmul.mubr.f32.gmra.mxu0 %v5759_v14 }
  0xfb   : > { %v5762_v17 = vmax.f32 %v382_v13, 0.0  ;;  %v377_v18 = vadd.f32 %v5708_v51, %v376_v15  ;;  %4640 = vmatprep.mubr.f32.mxu1 %v5751_v12  ;;  %v5767_v19 = vrot.slane %v5751_v12, 7 }
  0xfc   : > { %v4565_v21 = vpop.f32.mrf.mxu0  ;;  %4641 = vmatmul.mubr.f32.gmra.mxu1 %v5742_v7 }
  0xfd   : > { %7450 = vst [vmem:[#allocation7_spill] sm:$0xff] %v5767_v19  ;;  %v5771_v22 = vmax.f32 %v377_v18, 0.0  ;;  %v392_v23 = vadd.f32 %v4565_v21, %v5708_v51  ;;  %4720 = vmatprep.mubr.msk.f32.mxu0 %vm5718_vm1, %v5767_v19  ;;  %v5779_v24 = vsel %vm569_vm0, %v5767_v19, %v577_v20  ;;  %v580_v29 = vrot.slane %v5762_v17, 7 }
  0xfe   : > { %7451 = vst [vmem:[#allocation8_spill] sm:$0xff] %v5779_v24  ;;  %v386_v25 = vpop.f32.mrf.mxu0  ;;  %4721 = vmatmul.mubr.f32.gmra.mxu0 %v5779_v24 }
  0xff   : > { %v5782_v26 = vmax.f32 %v392_v23, 0.0  ;;  %v387_v27 = vadd.f32 %v5708_v51, %v386_v25  ;;  %4643 = vmatprep.mubr.f32.mxu1 %v5771_v22  ;;  %v5787_v28 = vrot.slane %v5771_v22, 7 }
 0x100   : > { %v4568_v30 = vpop.f32.mrf.mxu0  ;;  %4644 = vmatmul.mubr.f32.gmra.mxu1 %v5762_v17 }
 0x101   : > { %7452 = vst [vmem:[#allocation9_spill] sm:$0xff] %v5787_v28  ;;  %v5791_v31 = vmax.f32 %v387_v27, 0.0  ;;  %v402_v32 = vadd.f32 %v4568_v30, %v5708_v51  ;;  %4723 = vmatprep.mubr.msk.f32.mxu0 %vm5718_vm1, %v5787_v28  ;;  %v5799_v33 = vsel %vm569_vm0, %v5787_v28, %v580_v29  ;;  %v583_v38 = vrot.slane %v5782_v26, 7 }
 0x102   : > { %7453 = vst [vmem:[#allocation10_spill] sm:$0xff] %v5799_v33  ;;  %v396_v34 = vpop.f32.mrf.mxu0  ;;  %4724 = vmatmul.mubr.f32.gmra.mxu0 %v5799_v33 }
 0x103   : > { %v5802_v35 = vmax.f32 %v402_v32, 0.0  ;;  %v397_v36 = vadd.f32 %v5708_v51, %v396_v34  ;;  %4646 = vmatprep.mubr.f32.mxu1 %v5791_v31  ;;  %v5807_v37 = vrot.slane %v5791_v31, 7 }
 0x104   : > { %v4571_v39 = vpop.f32.mrf.mxu0  ;;  %4647 = vmatmul.mubr.f32.gmra.mxu1 %v5782_v26 }
 0x105   : > { %7454 = vst [vmem:[#allocation11_spill] sm:$0xff] %v5807_v37  ;;  %v5811_v40 = vmax.f32 %v397_v36, 0.0  ;;  %v412_v41 = vadd.f32 %v4571_v39, %v5708_v51  ;;  %4726 = vmatprep.mubr.msk.f32.mxu0 %vm5718_vm1, %v5807_v37  ;;  %v5819_v42 = vsel %vm569_vm0, %v5807_v37, %v583_v38  ;;  %v586_v47 = vrot.slane %v5802_v35, 7 }
 0x106   : > { %7455 = vst [vmem:[#allocation12_spill] sm:$0xff] %v5819_v42  ;;  %v406_v43 = vpop.f32.mrf.mxu0  ;;  %4727 = vmatmul.mubr.f32.gmra.mxu0 %v5819_v42 }
 0x107   : > { %v5822_v44 = vmax.f32 %v412_v41, 0.0  ;;  %v407_v45 = vadd.f32 %v5708_v51, %v406_v43  ;;  %4649 = vmatprep.mubr.f32.mxu1 %v5811_v40  ;;  %v5827_v46 = vrot.slane %v5811_v40, 7 }
 0x108   : > { %v4574_v49 = vpop.f32.mrf.mxu0  ;;  %4650 = vmatmul.mubr.f32.gmra.mxu1 %v5802_v35 }
 0x109   : > { %7456 = vst [vmem:[#allocation13_spill] sm:$0xff] %v5827_v46  ;;  %v5831_v52 = vmax.f32 %v407_v45, 0.0  ;;  %v422_v53 = vadd.f32 %v4574_v49, %v5708_v51  ;;  %4729 = vmatprep.mubr.msk.f32.mxu0 %vm5718_vm1, %v5827_v46  ;;  %v5839_v54 = vsel %vm569_vm0, %v5827_v46, %v586_v47  ;;  %v589_v63 = vrot.slane %v5822_v44, 7 }
 0x10a   : > { %7457 = vst [vmem:[#allocation14_spill] sm:$0xff] %v5839_v54  ;;  %v416_v56 = vpop.f32.mrf.mxu0  ;;  %4730 = vmatmul.mubr.f32.gmra.mxu0 %v5839_v54 }
 0x10b   : > { %v5842_v57 = vmax.f32 %v422_v53, 0.0  ;;  %v417_v59 = vadd.f32 %v5708_v51, %v416_v56  ;;  %4652 = vmatprep.mubr.f32.mxu1 %v5831_v52  ;;  %v5847_v60 = vrot.slane %v5831_v52, 7 }
 0x10c   : > { %v4577_v1 = vpop.f32.mrf.mxu0  ;;  %4653 = vmatmul.mubr.f32.gmra.mxu1 %v5822_v44 }
 0x10d   : > { %7458 = vst [vmem:[#allocation15_spill] sm:$0xff] %v5847_v60  ;;  %v5851_v2 = vmax.f32 %v417_v59, 0.0  ;;  %v432_v4 = vadd.f32 %v4577_v1, %v5708_v51  ;;  %4732 = vmatprep.mubr.msk.f32.mxu0 %vm5718_vm1, %v5847_v60  ;;  %v5859_v6 = vsel %vm569_vm0, %v5847_v60, %v589_v63  ;;  %v592_v15 = vrot.slane %v5842_v57, 7 }
 0x10e   : > { %7459 = vst [vmem:[#allocation16_spill] sm:$0xff] %v5859_v6  ;;  %v426_v8 = vpop.f32.mrf.mxu0  ;;  %4733 = vmatmul.mubr.f32.gmra.mxu0 %v5859_v6 }
 0x10f   : > { %v5862_v10 = vmax.f32 %v432_v4, 0.0  ;;  %v427_v11 = vadd.f32 %v5708_v51, %v426_v8  ;;  %4655 = vmatprep.mubr.f32.mxu1 %v5851_v2  ;;  %v5867_v13 = vrot.slane %v5851_v2, 7 }
 0x110   : > { %v4580_v18 = vpop.f32.mrf.mxu0  ;;  %4656 = vmatmul.mubr.f32.gmra.mxu1 %v5842_v57 }
 0x111   : > { %7460 = vst [vmem:[#allocation17_spill] sm:$0xff] %v5867_v13  ;;  %v5871_v20 = vmax.f32 %v427_v11, 0.0  ;;  %v442_v21 = vadd.f32 %v4580_v18, %v5708_v51  ;;  %4735 = vmatprep.mubr.msk.f32.mxu0 %vm5718_vm1, %v5867_v13  ;;  %v5879_v23 = vsel %vm569_vm0, %v5867_v13, %v592_v15  ;;  %v595_v32 = vrot.slane %v5862_v10, 7 }
 0x112   : > { %7461 = vst [vmem:[#allocation18_spill] sm:$0xff] %v5879_v23  ;;  %v436_v25 = vpop.f32.mrf.mxu0  ;;  %4736 = vmatmul.mubr.f32.gmra.mxu0 %v5879_v23 }
 0x113   : > { %v5882_v27 = vmax.f32 %v442_v21, 0.0  ;;  %v437_v29 = vadd.f32 %v5708_v51, %v436_v25  ;;  %4658 = vmatprep.mubr.f32.mxu1 %v5871_v20  ;;  %v5887_v30 = vrot.slane %v5871_v20, 7 }
 0x114   : > { %v4583_v34 = vpop.f32.mrf.mxu0  ;;  %4659 = vmatmul.mubr.f32.gmra.mxu1 %v5862_v10 }
 0x115   : > { %7462 = vst [vmem:[#allocation19_spill] sm:$0xff] %v5887_v30  ;;  %v5891_v36 = vmax.f32 %v437_v29, 0.0  ;;  %v452_v38 = vadd.f32 %v4583_v34, %v5708_v51  ;;  %4738 = vmatprep.mubr.msk.f32.mxu0 %vm5718_vm1, %v5887_v30  ;;  %v5899_v39 = vsel %vm569_vm0, %v5887_v30, %v595_v32  ;;  %v598_v49 = vrot.slane %v5882_v27, 7 }
 0x116   : > { %7463 = vst [vmem:[#allocation20_spill] sm:$0xff] %v5899_v39  ;;  %v446_v41 = vpop.f32.mrf.mxu0  ;;  %4739 = vmatmul.mubr.f32.gmra.mxu0 %v5899_v39 }
 0x117   : > { %v5902_v43 = vmax.f32 %v452_v38, 0.0  ;;  %v447_v45 = vadd.f32 %v5708_v51, %v446_v41  ;;  %4661 = vmatprep.mubr.f32.mxu1 %v5891_v36  ;;  %v5907_v47 = vrot.slane %v5891_v36, 7 }
 0x118   : > { %v4586_v53 = vpop.f32.mrf.mxu0  ;;  %4662 = vmatmul.mubr.f32.gmra.mxu1 %v5882_v27 }
 0x119   : > { %7464 = vst [vmem:[#allocation21_spill] sm:$0xff] %v5907_v47  ;;  %v5911_v56 = vmax.f32 %v447_v45, 0.0  ;;  %v462_v59 = vadd.f32 %v4586_v53, %v5708_v51  ;;  %4741 = vmatprep.mubr.msk.f32.mxu0 %vm5718_vm1, %v5907_v47  ;;  %v5919_v63 = vsel %vm569_vm0, %v5907_v47, %v598_v49  ;;  %v601_v15 = vrot.slane %v5902_v43, 7 }
 0x11a   : > { %7465 = vst [vmem:[#allocation22_spill] sm:$0xff] %v5919_v63  ;;  %v456_v1 = vpop.f32.mrf.mxu0  ;;  %4742 = vmatmul.mubr.f32.gmra.mxu0 %v5919_v63 }
 0x11b   : > { %v5922_v4 = vmax.f32 %v462_v59, 0.0  ;;  %v457_v8 = vadd.f32 %v5708_v51, %v456_v1  ;;  %4664 = vmatprep.mubr.f32.mxu1 %v5911_v56  ;;  %v5927_v11 = vrot.slane %v5911_v56, 7 }
 0x11c   : > { %v4589_v18 = vpop.f32.mrf.mxu0  ;;  %4665 = vmatmul.mubr.f32.gmra.mxu1 %v5902_v43 }
 0x11d   : > { %7466 = vst [vmem:[#allocation23_spill] sm:$0xff] %v5927_v11  ;;  %v5931_v21 = vmax.f32 %v457_v8, 0.0  ;;  %v472_v25 = vadd.f32 %v4589_v18, %v5708_v51  ;;  %4744 = vmatprep.mubr.msk.f32.mxu0 %vm5718_vm1, %v5927_v11  ;;  %v5939_v29 = vsel %vm569_vm0, %v5927_v11, %v601_v15  ;;  %v604_v45 = vrot.slane %v5922_v4, 7 }
 0x11e   : > { %7467 = vst [vmem:[#allocation24_spill] sm:$0xff] %v5939_v29  ;;  %v466_v32 = vpop.f32.mrf.mxu0  ;;  %4745 = vmatmul.mubr.f32.gmra.mxu0 %v5939_v29 }
 0x11f   : > { %v5942_v34 = vmax.f32 %v472_v25, 0.0  ;;  %v467_v38 = vadd.f32 %v5708_v51, %v466_v32  ;;  %4667 = vmatprep.mubr.f32.mxu1 %v5931_v21  ;;  %v5947_v41 = vrot.slane %v5931_v21, 7 }
 0x120   : > { %v4592_v49 = vpop.f32.mrf.mxu0  ;;  %4668 = vmatmul.mubr.f32.gmra.mxu1 %v5922_v4 }
 0x121   : > { %7468 = vst [vmem:[#allocation25_spill] sm:$0xff] %v5942_v34  ;;  %7469 = vst [vmem:[#allocation26_spill] sm:$0xff] %v5947_v41  ;;  %v5951_v53 = vmax.f32 %v467_v38, 0.0  ;;  %v482_v59 = vadd.f32 %v4592_v49, %v5708_v51  ;;  %4747 = vmatprep.mubr.msk.f32.mxu0 %vm5718_vm1, %v5947_v41  ;;  %v5959_v1 = vsel %vm569_vm0, %v5947_v41, %v604_v45  ;;  %v607_v32 = vrot.slane %v5942_v34, 7 }
 0x122   : > { %7470 = vst [vmem:[#allocation27_spill] sm:$0xff] %v5959_v1  ;;  %v476_v8 = vpop.f32.mrf.mxu0  ;;  %4748 = vmatmul.mubr.f32.gmra.mxu0 %v5959_v1 }
 0x123   : > { %v5962_v15 = vmax.f32 %v482_v59, 0.0  ;;  %v477_v18 = vadd.f32 %v5708_v51, %v476_v8  ;;  %4670 = vmatprep.mubr.f32.mxu1 %v5951_v53  ;;  %v5967_v25 = vrot.slane %v5951_v53, 7 }
 0x124   : > { %v4595_v38 = vpop.f32.mrf.mxu0  ;;  %4671 = vmatmul.mubr.f32.gmra.mxu1 %v5942_v34 }
 0x125   : > { %7471 = vst [vmem:[#allocation28_spill] sm:$0xff] %v5962_v15  ;;  %7472 = vst [vmem:[#allocation29_spill] sm:$0xff] %v5967_v25  ;;  %v5971_v49 = vmax.f32 %v477_v18, 0.0  ;;  %v492_v45 = vadd.f32 %v4595_v38, %v5708_v51  ;;  %4750 = vmatprep.mubr.msk.f32.mxu0 %vm5718_vm1, %v5967_v25  ;;  %v5979_v59 = vsel %vm569_vm0, %v5967_v25, %v607_v32  ;;  %v610_v38 = vrot.slane %v5962_v15, 7 }
 0x126   : > { %7474 = vst [vmem:[#allocation31_spill] sm:$0xff] %v5979_v59  ;;  %v486_v8 = vpop.f32.mrf.mxu0  ;;  %4751 = vmatmul.mubr.f32.gmra.mxu0 %v5979_v59 }
 0x127   : > { %7473 = vst [vmem:[#allocation30_spill] sm:$0xff] %v5971_v49  ;;  %v5982_v16 = vmax.f32 %v492_v45, 0.0  ;;  %v487_v1 = vadd.f32 %v5708_v51, %v486_v8  ;;  %4673 = vmatprep.mubr.f32.mxu1 %v5971_v49  ;;  %v5987_v18 = vrot.slane %v5971_v49, 7 }
 0x128   : > { %4674 = vmatmul.mubr.f32.gmra.mxu1 %v5962_v15  ;;  %v6000_v45 = vpop.f32.mrf.mxu0  ;;  %v667_v15 = vrot.slane %v5714_v58, 1  ;;  %v3830_v58 = vld [vmem:[%s7382_s3 + $0x270] sm:$0xff] }
 0x129   : > { %7475 = vst [vmem:[#allocation32_spill] sm:$0xff] %v5982_v16  ;;  %7476 = vst [vmem:[#allocation33_spill] sm:$0xff] %v5987_v18  ;;  %v5991_v34 = vmax.f32 %v487_v1, 0.0  ;;  %4753 = vmatprep.mubr.msk.f32.mxu0 %vm5718_vm1, %v5987_v18  ;;  %v5998_v32 = vsel %vm569_vm0, %v5987_v18, %v610_v38  ;;  %v613_v1 = vrot.slane %v5982_v16, 7 }
 0x12a   : > { %7478 = vst [vmem:[#allocation35_spill] sm:$0xff] %v5998_v32  ;;  %4754 = vmatmul.mubr.f32.gmra.mxu0 %v5998_v32  ;;  %v7481_v32 = vmov 0.0   ;;  %v6018_v18 = vpop.f32.mrf.mxu0 }
 0x12b   : > { %7477 = vst [vmem:[#allocation34_spill] sm:$0xff] %v5991_v34  ;;  %4676 = vmatprep.mubr.f32.mxu1 %v5991_v34  ;;  %v6005_v8 = vrot.slane %v5991_v34, 7  ;;  %v6022_v34 = vrot.slane %v5711_v55, 1 }
 0x12c   : > { %4677 = vmatmul.mubr.f32.gmra.mxu1 %v5982_v16 }
 0x12d   : > { %7479 = vst [vmem:[#allocation36_spill] sm:$0xff] %v6005_v8  ;;  %4756 = vmatprep.mubr.msk.f32.mxu0 %vm5718_vm1, %v6005_v8  ;;  %v6015_v38 = vsel %vm569_vm0, %v6005_v8, %v613_v1  ;;  %4791 = vmatprep.mubr.f32.mxu1 %v7481_v32  ;;  %v4633_v1 = vpop.f32.mrf.mxu1  ;;  %v4713_v8 = vpop.f32.mrf.mxu0  ;;  %v6033_v16 = vsel %vm666_vm2, %v667_v15, %v6022_v34 }
 0x12e   : > { %7480 = vst [vmem:[#allocation37_spill] sm:$0xff] %v6015_v38  ;;  %4757 = vmatmul.mubr.f32.gmra.mxu0 %v6015_v38  ;;  %v670_v38 = vrot.slane %v5731_v3, 1  ;;  %v6036_v55 = vadd.f32 %v4713_v8, %v4633_v1  ;;  %v6066_v8 = vrot.slane %v5742_v7, 1 }
 0x12f   : > { %4871 = vmatprep.mubr.msk.f32.mxu0 %vm5718_vm1, %v5727_v0  ;;  %v3829_v0 = vld [vmem:[%s7382_s3 + $0x268] sm:$0xff] }
 0x130   : > { %4792 = vmatmul.mubr.f32.vlgmr.msra.gmra.mxu1 %v7481_v32  ;;  %7482 = vst [vmem:[#allocation38_spill] sm:$0xff] %v6036_v55  ;;  %v6045_v32 = vrot.slane %v5722_v62, 1  ;;  %v6087_v55 = vrot.slane %v5762_v17, 1 }
 0x131   : > { %4920 = vmatpush3.msra.mxu1 %v5693_v48  ;;  %4794 = vmatprep.mubr.f32.mxu1 %v6033_v16  ;;  %v3828_v48 = vld [vmem:[%s7382_s3 + $0x260] sm:$0xff] }
 0x132   : > { %4872 = vmatmul.mubr.f32.vlgmr.msra.gmra.mxu0 %v5739_v5  ;;  %4921 = vmatprep.subr.mxu1 %v3830_v58  ;;  %v6057_v15 = vsel %vm666_vm2, %v670_v38, %v6045_v32  ;;  %v673_v5 = vrot.slane %v5751_v12, 1  ;;  %v3826_v38 = vld [vmem:[%s7382_s3 + $0x250] sm:$0xff] }
 0x133   : > { %4874 = vmatprep.mubr.msk.f32.mxu0 %vm5718_vm1, %v5747_v9  ;;  %4922 = vmatpush3.msra.mxu1 %v3830_v58  ;;  %v3827_v58 = vld [vmem:[%s7382_s3 + $0x258] sm:$0xff]  ;;  %v706_v9 = vrot.slane %v5971_v49, 1 }
 0x134   : > { %4795 = vmatmul.mubr.msk.f32.gmra.mxu1 %vm666_vm2, %v6022_v34  ;;  %4923 = vmatprep.subr.mxu1 %v3829_v0  ;;  %v6078_v1 = vsel %vm666_vm2, %v673_v5, %v6066_v8  ;;  %v3824_v5 = vld [vmem:[%s7382_s3 + $0x240] sm:$0xff] }
 0x135   : > { %4797 = vmatprep.mubr.f32.mxu1 %v6057_v15  ;;  %4924 = vmatpush3.msra.mxu1 %v3829_v0  ;;  %v676_v0 = vrot.slane %v5771_v22, 1 }
 0x136   : > { %4875 = vmatmul.mubr.f32.gmra.mxu0 %v5759_v14  ;;  %4925 = vmatprep.subr.mxu1 %v3828_v48 }
 0x137   : > { %4877 = vmatprep.mubr.msk.f32.mxu0 %vm5718_vm1, %v5767_v19  ;;  %4926 = vmatpush3.msra.mxu1 %v3828_v48  ;;  %v3825_v48 = vld [vmem:[%s7382_s3 + $0x248] sm:$0xff]  ;;  %v7486_v19 = vld [vmem:[#allocation25_spill] sm:$0xff] }
 0x138   : > { %4798 = vmatmul.mubr.msk.f32.gmra.mxu1 %vm666_vm2, %v6045_v32  ;;  %4927 = vmatprep.subr.mxu1 %v3827_v58  ;;  %v6277_v14 = vrot.slane %v7486_v19, 1 }
 0x139   : > { %4800 = vmatprep.mubr.f32.mxu1 %v6078_v1  ;;  %4928 = vmatpush3.msra.mxu1 %v3827_v58  ;;  %v6099_v58 = vsel %vm666_vm2, %v676_v0, %v6087_v55  ;;  %v3822_v0 = vld [vmem:[%s7382_s3 + $0x230] sm:$0xff] }
 0x13a   : > { %4878 = vmatmul.mubr.f32.gmra.mxu0 %v5779_v24  ;;  %4929 = vmatprep.subr.mxu1 %v3826_v38  ;;  %v679_v24 = vrot.slane %v5791_v31, 1  ;;  %7487 = vst [vmem:[#allocation41_spill] sm:$0xff] %v6277_v14 }
 0x13b   : > { %4880 = vmatprep.mubr.msk.f32.mxu0 %vm5718_vm1, %v5787_v28  ;;  %4930 = vmatpush3.msra.mxu1 %v3826_v38  ;;  %v3823_v38 = vld [vmem:[%s7382_s3 + $0x238] sm:$0xff]  ;;  %v6108_v28 = vrot.slane %v5782_v26, 1 }
 0x13c   : > { %4801 = vmatmul.mubr.msk.f32.gmra.mxu1 %vm666_vm2, %v6066_v8  ;;  %4931 = vmatprep.subr.mxu1 %v3825_v48 }
 0x13d   : > { %4803 = vmatprep.mubr.f32.mxu1 %v6099_v58  ;;  %4932 = vmatpush3.msra.mxu1 %v3825_v48  ;;  %v6120_v48 = vsel %vm666_vm2, %v679_v24, %v6108_v28  ;;  %v3821_v24 = vld [vmem:[%s7382_s3 + $0x228] sm:$0xff] }
 0x13e   : > { %4881 = vmatmul.mubr.f32.gmra.mxu0 %v5799_v33  ;;  %4933 = vmatprep.subr.mxu1 %v3824_v5  ;;  %v682_v33 = vrot.slane %v5811_v40, 1 }
 0x13f   : > { %4883 = vmatprep.mubr.msk.f32.mxu0 %vm5718_vm1, %v5807_v37  ;;  %4934 = vmatpush3.msra.mxu1 %v3824_v5  ;;  %v3846_v5 = vld [vmem:[%s7382_s3 + $0x2f0] sm:$0xff]  ;;  %v6129_v37 = vrot.slane %v5802_v35, 1 }
 0x140   : > { %4804 = vmatmul.mubr.msk.f32.gmra.mxu1 %vm666_vm2, %v6087_v55  ;;  %4935 = vmatprep.subr.mxu1 %v3823_v38 }
 0x141   : > { %4806 = vmatprep.mubr.f32.mxu1 %v6120_v48  ;;  %4936 = vmatpush3.msra.mxu1 %v3823_v38  ;;  %v6142_v38 = vsel %vm666_vm2, %v682_v33, %v6129_v37 }
 0x142   : > { %4884 = vmatmul.mubr.f32.gmra.mxu0 %v5819_v42  ;;  %4937 = vmatprep.subr.mxu1 %v3822_v0  ;;  %v685_v42 = vrot.slane %v5831_v52, 1 }
 0x143   : > { %4886 = vmatprep.mubr.msk.f32.mxu0 %vm5718_vm1, %v5827_v46  ;;  %5000 = vmatpush3.msra.mxu0 %v5702_v50  ;;  %v3845_v50 = vld [vmem:[%s7382_s3 + $0x2e8] sm:$0xff]  ;;  %v6151_v46 = vrot.slane %v5822_v44, 1 }
 0x144   : > { %4807 = vmatmul.mubr.msk.f32.gmra.mxu1 %vm666_vm2, %v6108_v28  ;;  %5001 = vmatprep.subr.mxu0 %v3846_v5 }
 0x145   : > { %4809 = vmatprep.mubr.f32.mxu1 %v6142_v38  ;;  %4938 = vmatpush3.msra.mxu1 %v3822_v0  ;;  %v6160_v33 = vsel %vm666_vm2, %v685_v42, %v6151_v46  ;;  %v688_v0 = vrot.slane %v5851_v2, 1  ;;  %v3843_v42 = vld [vmem:[%s7382_s3 + $0x2d8] sm:$0xff] }
 0x146   : > { %4887 = vmatmul.mubr.f32.gmra.mxu0 %v5839_v54  ;;  %4939 = vmatprep.subr.mxu1 %v3821_v24  ;;  %v3844_v54 = vld [vmem:[%s7382_s3 + $0x2e0] sm:$0xff] }
 0x147   : > { %4889 = vmatprep.mubr.msk.f32.mxu0 %vm5718_vm1, %v5847_v60  ;;  %5002 = vmatpush3.msra.mxu0 %v3846_v5  ;;  %v6169_v5 = vrot.slane %v5842_v57, 1  ;;  %v3820_v60 = vld [vmem:[%s7382_s3 + $0x220] sm:$0xff] }
 0x148   : > { %4810 = vmatmul.mubr.msk.f32.gmra.mxu1 %vm666_vm2, %v6129_v37  ;;  %5003 = vmatprep.subr.mxu0 %v3845_v50 }
 0x149   : > { %4812 = vmatprep.mubr.f32.mxu1 %v6160_v33  ;;  %5004 = vmatpush3.msra.mxu0 %v3845_v50  ;;  %v6184_v50 = vsel %vm666_vm2, %v688_v0, %v6169_v5 }
 0x14a   : > { %4890 = vmatmul.mubr.f32.gmra.mxu0 %v5859_v6  ;;  %4940 = vmatpush3.msra.mxu1 %v3821_v24  ;;  %v691_v24 = vrot.slane %v5871_v20, 1  ;;  %v6193_v6 = vrot.slane %v5862_v10, 1 }
 0x14b   : > { %4892 = vmatprep.mubr.msk.f32.mxu0 %vm5718_vm1, %v5867_v13  ;;  %5005 = vmatprep.subr.mxu0 %v3844_v54  ;;  %v3842_v13 = vld [vmem:[%s7382_s3 + $0x2d0] sm:$0xff] }
 0x14c   : > { %4813 = vmatmul.mubr.msk.f32.gmra.mxu1 %vm666_vm2, %v6151_v46  ;;  %5006 = vmatpush3.msra.mxu0 %v3844_v54  ;;  %v3819_v54 = vld [vmem:[%s7382_s3 + $0x218] sm:$0xff]  ;;  %v6205_v0 = vsel %vm666_vm2, %v691_v24, %v6193_v6  ;;  %v697_v24 = vrot.slane %v5911_v56, 1 }
 0x14d   : > { %4815 = vmatprep.mubr.f32.mxu1 %v6184_v50  ;;  %5007 = vmatprep.subr.mxu0 %v3843_v42 }
 0x14e   : > { %4893 = vmatmul.mubr.f32.gmra.mxu0 %v5879_v23  ;;  %4941 = vmatprep.subr.mxu1 %v3820_v60  ;;  %v694_v23 = vrot.slane %v5891_v36, 1 }
 0x14f   : > { %4895 = vmatprep.mubr.msk.f32.mxu0 %vm5718_vm1, %v5887_v30  ;;  %5008 = vmatpush3.msra.mxu0 %v3843_v42  ;;  %v3841_v42 = vld [vmem:[%s7382_s3 + $0x2c8] sm:$0xff]  ;;  %v6214_v30 = vrot.slane %v5882_v27, 1 }
 0x150   : > { %4816 = vmatmul.mubr.msk.f32.gmra.mxu1 %vm666_vm2, %v6169_v5  ;;  %5009 = vmatprep.subr.mxu0 %v3842_v13 }
 0x151   : > { %4818 = vmatprep.mubr.f32.mxu1 %v6205_v0  ;;  %4942 = vmatpush3.msra.mxu1 %v3820_v60  ;;  %v6223_v60 = vsel %vm666_vm2, %v694_v23, %v6214_v30  ;;  %v3839_v23 = vld [vmem:[%s7382_s3 + $0x2b8] sm:$0xff] }
 0x152   : > { %4896 = vmatmul.mubr.f32.gmra.mxu0 %v5899_v39  ;;  %4943 = vmatprep.subr.mxu1 %v3819_v54  ;;  %v3840_v39 = vld [vmem:[%s7382_s3 + $0x2c0] sm:$0xff] }
 0x153   : > { %4898 = vmatprep.mubr.msk.f32.mxu0 %vm5718_vm1, %v5907_v47  ;;  %5010 = vmatpush3.msra.mxu0 %v3842_v13  ;;  %v6232_v13 = vrot.slane %v5902_v43, 1  ;;  %v3818_v47 = vld [vmem:[%s7382_s3 + $0x210] sm:$0xff] }
 0x154   : > { %4819 = vmatmul.mubr.msk.f32.gmra.mxu1 %vm666_vm2, %v6193_v6  ;;  %5011 = vmatprep.subr.mxu0 %v3841_v42 }
 0x155   : > { %4821 = vmatprep.mubr.f32.mxu1 %v6223_v60  ;;  %5012 = vmatpush3.msra.mxu0 %v3841_v42  ;;  %v6247_v42 = vsel %vm666_vm2, %v697_v24, %v6232_v13 }
 0x156   : > { %4899 = vmatmul.mubr.f32.gmra.mxu0 %v5919_v63  ;;  %4944 = vmatpush3.msra.mxu1 %v3819_v54  ;;  %v700_v54 = vrot.slane %v5931_v21, 1  ;;  %v6256_v63 = vrot.slane %v5922_v4, 1 }
 0x157   : > { %4901 = vmatprep.mubr.msk.f32.mxu0 %vm5718_vm1, %v5927_v11  ;;  %5013 = vmatprep.subr.mxu0 %v3840_v39  ;;  %v3838_v11 = vld [vmem:[%s7382_s3 + $0x2b0] sm:$0xff] }
 0x158   : > { %4822 = vmatmul.mubr.msk.f32.gmra.mxu1 %vm666_vm2, %v6214_v30  ;;  %5014 = vmatpush3.msra.mxu0 %v3840_v39  ;;  %7483 = vst [vmem:[#allocation39_spill] sm:$0xff] %v6256_v63  ;;  %v3817_v39 = vld [vmem:[%s7382_s3 + $0x208] sm:$0xff]  ;;  %v6268_v24 = vsel %vm666_vm2, %v700_v54, %v6256_v63  ;;  %v502_v54 = vadd.f32 %v6000_v45, %v5708_v51 }
 0x159   : > { %4824 = vmatprep.mubr.f32.mxu1 %v6247_v42  ;;  %5015 = vmatprep.subr.mxu0 %v3839_v23  ;;  %7484 = vst [vmem:[#allocation40_spill] sm:$0xff] %v6268_v24 }
 0x15a   : > { %4902 = vmatmul.mubr.f32.gmra.mxu0 %v5939_v29  ;;  %4945 = vmatprep.subr.mxu1 %v3818_v47  ;;  %v703_v29 = vrot.slane %v5951_v53, 1  ;;  %v6307_v45 = vmax.f32 %v502_v54, 0.0  ;;  %v3834_v54 = vld [vmem:[%s7382_s3 + $0x290] sm:$0xff] }
 0x15b   : > { %4904 = vmatprep.mubr.msk.f32.mxu0 %vm5718_vm1, %v5947_v41  ;;  %5016 = vmatpush3.msra.mxu0 %v3839_v23  ;;  %v3837_v23 = vld [vmem:[%s7382_s3 + $0x2a8] sm:$0xff]  ;;  %v7485_v41 = vld [vmem:[#allocation27_spill] sm:$0xff] }
 0x15c   : > { %4825 = vmatmul.mubr.msk.f32.gmra.mxu1 %vm666_vm2, %v6232_v13  ;;  %5017 = vmatprep.subr.mxu0 %v3838_v11 }
 0x15d   : > { %4827 = vmatprep.mubr.f32.mxu1 %v6268_v24  ;;  %4946 = vmatpush3.msra.mxu1 %v3818_v47  ;;  %v497_v47 = vadd.f32 %v5708_v51, %v6018_v18  ;;  %v7489_v51 = vld [vmem:[#allocation28_spill] sm:$0xff]  ;;  %v7491_v18 = vld [vmem:[#allocation33_spill] sm:$0xff] }
 0x15e   : > { %4905 = vmatmul.mubr.f32.gmra.mxu0 %v7485_v41  ;;  %4947 = vmatprep.subr.mxu1 %v3817_v39  ;;  %v6290_v41 = vsel %vm666_vm2, %v703_v29, %v6277_v14  ;;  %v3835_v29 = vld [vmem:[%s7382_s3 + $0x298] sm:$0xff] }
 0x15f   : > { %4907 = vmatprep.mubr.msk.f32.mxu0 %vm5718_vm1, %v5967_v25  ;;  %5018 = vmatpush3.msra.mxu0 %v3838_v11  ;;  %7488 = vst [vmem:[#allocation42_spill] sm:$0xff] %v6290_v41  ;;  %v3836_v25 = vld [vmem:[%s7382_s3 + $0x2a0] sm:$0xff]  ;;  %v6299_v11 = vrot.slane %v7489_v51, 1  ;;  %v6309_v49 = vmax.f32 %v497_v47, 0.0 }
 0x160   : > { %4828 = vmatmul.mubr.msk.f32.gmra.mxu1 %vm666_vm2, %v6256_v63  ;;  %5019 = vmatprep.subr.mxu0 %v3837_v23  ;;  %v7494_v47 = vld [vmem:[#allocation35_spill] sm:$0xff] }
 0x161   : > { %4830 = vmatprep.mubr.f32.mxu1 %v6290_v41  ;;  %5020 = vmatpush3.msra.mxu0 %v3837_v23  ;;  %7490 = vst [vmem:[#allocation43_spill] sm:$0xff] %v6299_v11  ;;  %v3816_v23 = vld [vmem:[%s7382_s3 + $0x200] sm:$0xff] }
 0x162   : > { %4908 = vmatmul.mubr.f32.gmra.mxu0 %v5979_v59  ;;  %4948 = vmatpush3.msra.mxu1 %v3817_v39  ;;  %v6318_v39 = vsel %vm666_vm2, %v706_v9, %v6299_v11  ;;  %v7493_v59 = vld [vmem:[#allocation34_spill] sm:$0xff]  ;;  %v6333_v9 = vrot.slane %v6309_v49, 7 }
 0x163   : > { %4910 = vmatprep.mubr.msk.f32.mxu0 %vm5718_vm1, %v7491_v18  ;;  %5021 = vmatprep.subr.mxu0 %v3836_v25  ;;  %7492 = vst [vmem:[#allocation44_spill] sm:$0xff] %v6318_v39  ;;  %v709_v51 = vrot.slane %v7493_v59, 1  ;;  %v7495_v18 = vld [vmem:[#allocation32_spill] sm:$0xff]  ;;  %v3863_v59 = vld [vmem:[%s7382_s3 + $0x378] sm:$0xff] }
 0x164   : > { %4831 = vmatmul.mubr.msk.f32.gmra.mxu1 %vm666_vm2, %v6277_v14  ;;  %5022 = vmatpush3.msra.mxu0 %v3836_v25  ;;  %v6327_v19 = vrot.slane %v7495_v18, 1  ;;  %v7497_v14 = vld [vmem:[#allocation36_spill] sm:$0xff]  ;;  %v616_v25 = vrot.slane %v6307_v45, 7 }
 0x165   : > { %4833 = vmatprep.mubr.f32.mxu1 %v6318_v39  ;;  %5023 = vmatprep.subr.mxu0 %v3835_v29  ;;  %v7500_v18 = vld [vmem:[#allocation4_spill] sm:$0xff] }
 0x166   : > { %4911 = vmatmul.mubr.f32.gmra.mxu0 %v7494_v47  ;;  %7496 = vst [vmem:[#allocation45_spill] sm:$0xff] %v6327_v19  ;;  %4949 = vmatprep.subr.mxu1 %v3816_v23  ;;  %v6343_v47 = vsel %vm666_vm2, %v709_v51, %v6327_v19  ;;  %v6355_v51 = vsel %vm569_vm0, %v6333_v9, %v616_v25  ;;  %v7501_v25 = vld [vmem:[#allocation3_spill] sm:$0xff] }
 0x167   : > { %4913 = vmatprep.mubr.msk.f32.mxu0 %vm5718_vm1, %v7497_v14  ;;  %5024 = vmatpush3.msra.mxu0 %v3835_v29  ;;  %7498 = vst [vmem:[#allocation46_spill] sm:$0xff] %v6343_v47  ;;  %v3833_v29 = vld [vmem:[%s7382_s3 + $0x288] sm:$0xff]  ;;  %v7499_v14 = vld [vmem:[#allocation37_spill] sm:$0xff] }
 0x168   : > { %4834 = vmatmul.mubr.msk.f32.gmra.mxu1 %vm666_vm2, %v6299_v11  ;;  %5025 = vmatprep.subr.mxu0 %v3834_v54 }
 0x169   : > { %4836 = vmatprep.mubr.f32.mxu1 %v6343_v47  ;;  %4950 = vmatpush3.msra.mxu1 %v3816_v23  ;;  %v3832_v23 = vld [vmem:[%s7382_s3 + $0x280] sm:$0xff] }
 0x16a   : > { %4914 = vmatmul.mubr.f32.gmra.mxu0 %v7499_v14  ;;  %5079 = vmatprep.subr.mxu1 %v3863_v59  ;;  %v3879_v14 = vld [vmem:[%s7382_s3 + $0x3f8] sm:$0xff] }
 0x16b   : > { %4916 = vmatprep.mubr.msk.f32.mxu0 %vm5718_vm1, %v6333_v9  ;;  %5026 = vmatpush3.msra.mxu0 %v3834_v54  ;;  %v3862_v54 = vld [vmem:[%s7382_s3 + $0x370] sm:$0xff] }
 0x16c   : > { %4837 = vmatmul.mubr.msk.f32.gmra.mxu1 %vm666_vm2, %v6327_v19  ;;  %5027 = vmatprep.subr.mxu0 %v3833_v29 }
 0x16d   : > { %4951 = vmatprep.mubr.f32.mxu1 %v7500_v18  ;;  %5028 = vmatpush3.msra.mxu0 %v3833_v29  ;;  %v3861_v18 = vld [vmem:[%s7382_s3 + $0x368] sm:$0xff] }
 0x16e   : > { %4917 = vmatmul.mubr.f32.gmra.mxu0 %v6355_v51  ;;  %5029 = vmatprep.subr.mxu0 %v3832_v23  ;;  %v3857_v29 = vld [vmem:[%s7382_s3 + $0x348] sm:$0xff] }
 0x16f   : > { %5031 = vmatprep.mubr.f32.mxu0 %v6033_v16  ;;  %5030 = vmatpush3.msra.mxu0 %v3832_v23  ;;  %v3860_v16 = vld [vmem:[%s7382_s3 + $0x360] sm:$0xff] }
 0x170   : > { %4952 = vmatmul.mubr.f32.vlgmr.msra.gmra.mxu1 %v7501_v25  ;;  %5159 = vmatprep.subr.mxu0 %v3879_v14  ;;  %v3856_v23 = vld [vmem:[%s7382_s3 + $0x340] sm:$0xff]  ;;  %v3854_v25 = vld [vmem:[%s7382_s3 + $0x330] sm:$0xff] }
 0x171   : > { %5080 = vmatpush3.msra.mxu1 %v3863_v59  ;;  %4954 = vmatprep.mubr.f32.mxu1 %v5731_v3  ;;  %v3859_v59 = vld [vmem:[%s7382_s3 + $0x358] sm:$0xff] }
 0x172   : > { %5032 = vmatmul.mubr.msk.f32.vlgmr.msra.gmra.mxu0 %vm666_vm2, %v6022_v34  ;;  %5081 = vmatprep.subr.mxu1 %v3862_v54  ;;  %v3858_v34 = vld [vmem:[%s7382_s3 + $0x350] sm:$0xff] }
 0x173   : > { %5034 = vmatprep.mubr.f32.mxu0 %v6057_v15  ;;  %5082 = vmatpush3.msra.mxu1 %v3862_v54  ;;  %v3855_v54 = vld [vmem:[%s7382_s3 + $0x338] sm:$0xff] }
 0x174   : > { %4955 = vmatmul.mubr.f32.gmra.mxu1 %v5722_v62  ;;  %5083 = vmatprep.subr.mxu1 %v3861_v18 }
 0x175   : > { %4957 = vmatprep.mubr.f32.mxu1 %v5751_v12  ;;  %5084 = vmatpush3.msra.mxu1 %v3861_v18  ;;  %v3878_v18 = vld [vmem:[%s7382_s3 + $0x3f0] sm:$0xff] }
 0x176   : > { %5035 = vmatmul.mubr.msk.f32.gmra.mxu0 %vm666_vm2, %v6045_v32  ;;  %5085 = vmatprep.subr.mxu1 %v3860_v16 }
 0x177   : > { %5037 = vmatprep.mubr.f32.mxu0 %v6078_v1  ;;  %5086 = vmatpush3.msra.mxu1 %v3860_v16  ;;  %v3853_v16 = vld [vmem:[%s7382_s3 + $0x328] sm:$0xff] }
 0x178   : > { %4958 = vmatmul.mubr.f32.gmra.mxu1 %v5742_v7  ;;  %5087 = vmatprep.subr.mxu1 %v3859_v59 }
 0x179   : > { %4960 = vmatprep.mubr.f32.mxu1 %v5771_v22  ;;  %5088 = vmatpush3.msra.mxu1 %v3859_v59  ;;  %v3877_v59 = vld [vmem:[%s7382_s3 + $0x3e8] sm:$0xff] }
 0x17a   : > { %5038 = vmatmul.mubr.msk.f32.gmra.mxu0 %vm666_vm2, %v6066_v8  ;;  %5089 = vmatprep.subr.mxu1 %v3858_v34 }
 0x17b   : > { %5040 = vmatprep.mubr.f32.mxu0 %v6099_v58  ;;  %5090 = vmatpush3.msra.mxu1 %v3858_v34  ;;  %v3875_v34 = vld [vmem:[%s7382_s3 + $0x3d8] sm:$0xff] }
 0x17c   : > { %4961 = vmatmul.mubr.f32.gmra.mxu1 %v5762_v17  ;;  %5091 = vmatprep.subr.mxu1 %v3857_v29 }
 0x17d   : > { %4963 = vmatprep.mubr.f32.mxu1 %v5791_v31  ;;  %5092 = vmatpush3.msra.mxu1 %v3857_v29  ;;  %v3852_v29 = vld [vmem:[%s7382_s3 + $0x320] sm:$0xff] }
 0x17e   : > { %5041 = vmatmul.mubr.msk.f32.gmra.mxu0 %vm666_vm2, %v6087_v55  ;;  %5093 = vmatprep.subr.mxu1 %v3856_v23 }
 0x17f   : > { %5043 = vmatprep.mubr.f32.mxu0 %v6120_v48  ;;  %5094 = vmatpush3.msra.mxu1 %v3856_v23  ;;  %v3874_v23 = vld [vmem:[%s7382_s3 + $0x3d0] sm:$0xff] }
 0x180   : > { %4964 = vmatmul.mubr.f32.gmra.mxu1 %v5782_v26  ;;  %5095 = vmatprep.subr.mxu1 %v3855_v54 }
 0x181   : > { %4966 = vmatprep.mubr.f32.mxu1 %v5811_v40  ;;  %5096 = vmatpush3.msra.mxu1 %v3855_v54  ;;  %v3851_v54 = vld [vmem:[%s7382_s3 + $0x318] sm:$0xff] }
 0x182   : > { %5044 = vmatmul.mubr.msk.f32.gmra.mxu0 %vm666_vm2, %v6108_v28  ;;  %5097 = vmatprep.subr.mxu1 %v3854_v25 }
 0x183   : > { %5046 = vmatprep.mubr.f32.mxu0 %v6142_v38  ;;  %5160 = vmatpush3.msra.mxu0 %v3879_v14  ;;  %v3876_v14 = vld [vmem:[%s7382_s3 + $0x3e0] sm:$0xff] }
 0x184   : > { %4967 = vmatmul.mubr.f32.gmra.mxu1 %v5802_v35  ;;  %5161 = vmatprep.subr.mxu0 %v3878_v18 }
 0x185   : > { %4969 = vmatprep.mubr.f32.mxu1 %v5831_v52  ;;  %5098 = vmatpush3.msra.mxu1 %v3854_v25  ;;  %v3873_v25 = vld [vmem:[%s7382_s3 + $0x3c8] sm:$0xff] }
 0x186   : > { %5047 = vmatmul.mubr.msk.f32.gmra.mxu0 %vm666_vm2, %v6129_v37  ;;  %5099 = vmatprep.subr.mxu1 %v3853_v16 }
 0x187   : > { %5049 = vmatprep.mubr.f32.mxu0 %v6160_v33  ;;  %5162 = vmatpush3.msra.mxu0 %v3878_v18  ;;  %v3872_v18 = vld [vmem:[%s7382_s3 + $0x3c0] sm:$0xff] }
 0x188   : > { %4970 = vmatmul.mubr.f32.gmra.mxu1 %v5822_v44  ;;  %5163 = vmatprep.subr.mxu0 %v3877_v59 }
 0x189   : > { %4972 = vmatprep.mubr.f32.mxu1 %v5851_v2  ;;  %5164 = vmatpush3.msra.mxu0 %v3877_v59  ;;  %v3850_v59 = vld [vmem:[%s7382_s3 + $0x310] sm:$0xff] }
 0x18a   : > { %5050 = vmatmul.mubr.msk.f32.gmra.mxu0 %vm666_vm2, %v6151_v46  ;;  %5100 = vmatpush3.msra.mxu1 %v3853_v16  ;;  %v3871_v16 = vld [vmem:[%s7382_s3 + $0x3b8] sm:$0xff] }
 0x18b   : > { %5052 = vmatprep.mubr.f32.mxu0 %v6184_v50  ;;  %5165 = vmatprep.subr.mxu0 %v3876_v14 }
 0x18c   : > { %4973 = vmatmul.mubr.f32.gmra.mxu1 %v5842_v57  ;;  %5166 = vmatpush3.msra.mxu0 %v3876_v14  ;;  %v3870_v14 = vld [vmem:[%s7382_s3 + $0x3b0] sm:$0xff] }
 0x18d   : > { %4975 = vmatprep.mubr.f32.mxu1 %v5871_v20  ;;  %5167 = vmatprep.subr.mxu0 %v3875_v34 }
 0x18e   : > { %5053 = vmatmul.mubr.msk.f32.gmra.mxu0 %vm666_vm2, %v6169_v5  ;;  %5101 = vmatprep.subr.mxu1 %v3852_v29 }
 0x18f   : > { %5055 = vmatprep.mubr.f32.mxu0 %v6205_v0  ;;  %5168 = vmatpush3.msra.mxu0 %v3875_v34  ;;  %v3849_v34 = vld [vmem:[%s7382_s3 + $0x308] sm:$0xff] }
 0x190   : > { %4976 = vmatmul.mubr.f32.gmra.mxu1 %v5862_v10  ;;  %5169 = vmatprep.subr.mxu0 %v3874_v23 }
 0x191   : > { %4978 = vmatprep.mubr.f32.mxu1 %v5891_v36  ;;  %5102 = vmatpush3.msra.mxu1 %v3852_v29  ;;  %v3869_v29 = vld [vmem:[%s7382_s3 + $0x3a8] sm:$0xff] }
 0x192   : > { %5056 = vmatmul.mubr.msk.f32.gmra.mxu0 %vm666_vm2, %v6193_v6  ;;  %5103 = vmatprep.subr.mxu1 %v3851_v54 }
 0x193   : > { %5058 = vmatprep.mubr.f32.mxu0 %v6223_v60  ;;  %5170 = vmatpush3.msra.mxu0 %v3874_v23  ;;  %v7502_v23 = vld [vmem:[#allocation25_spill] sm:$0xff] }
 0x194   : > { %4979 = vmatmul.mubr.f32.gmra.mxu1 %v5882_v27  ;;  %5171 = vmatprep.subr.mxu0 %v3873_v25 }
 0x195   : > { %4981 = vmatprep.mubr.f32.mxu1 %v5911_v56  ;;  %5172 = vmatpush3.msra.mxu0 %v3873_v25  ;;  %v7503_v25 = vld [vmem:[#allocation30_spill] sm:$0xff] }
 0x196   : > { %5059 = vmatmul.mubr.msk.f32.gmra.mxu0 %vm666_vm2, %v6214_v30  ;;  %5104 = vmatpush3.msra.mxu1 %v3851_v54  ;;  %v3868_v54 = vld [vmem:[%s7382_s3 + $0x3a0] sm:$0xff] }
 0x197   : > { %5061 = vmatprep.mubr.f32.mxu0 %v6247_v42  ;;  %5173 = vmatprep.subr.mxu0 %v3872_v18 }
 0x198   : > { %4982 = vmatmul.mubr.f32.gmra.mxu1 %v5902_v43  ;;  %5174 = vmatpush3.msra.mxu0 %v3872_v18  ;;  %v7504_v18 = vld [vmem:[#allocation41_spill] sm:$0xff] }
 0x199   : > { %4984 = vmatprep.mubr.f32.mxu1 %v5931_v21  ;;  %5175 = vmatprep.subr.mxu0 %v3871_v16 }
 0x19a   : > { %5062 = vmatmul.mubr.msk.f32.gmra.mxu0 %vm666_vm2, %v6232_v13  ;;  %5105 = vmatprep.subr.mxu1 %v3850_v59 }
 0x19b   : > { %5064 = vmatprep.mubr.f32.mxu0 %v6268_v24  ;;  %5176 = vmatpush3.msra.mxu0 %v3871_v16  ;;  %v3867_v16 = vld [vmem:[%s7382_s3 + $0x398] sm:$0xff]  ;;  %v7516_v24 = vld [vmem:[#allocation11_spill] sm:$0xff] }
 0x19c   : > { %4985 = vmatmul.mubr.f32.gmra.mxu1 %v5922_v4  ;;  %5177 = vmatprep.subr.mxu0 %v3870_v14 }
 0x19d   : > { %4987 = vmatprep.mubr.f32.mxu1 %v5951_v53  ;;  %5106 = vmatpush3.msra.mxu1 %v3850_v59  ;;  %v3848_v59 = vld [vmem:[%s7382_s3 + $0x300] sm:$0xff] }
 0x19e   : > { %5065 = vmatmul.mubr.msk.f32.gmra.mxu0 %vm666_vm2, %v6256_v63  ;;  %5107 = vmatprep.subr.mxu1 %v3849_v34 }
 0x19f   : > { %5067 = vmatprep.mubr.f32.mxu0 %v6290_v41  ;;  %5178 = vmatpush3.msra.mxu0 %v3870_v14  ;;  %v7505_v14 = vld [vmem:[#allocation28_spill] sm:$0xff]  ;;  %v7506_v41 = vld [vmem:[#allocation34_spill] sm:$0xff] }
 0x1a0   : > { %4988 = vmatmul.mubr.f32.gmra.mxu1 %v7502_v23  ;;  %5179 = vmatprep.subr.mxu0 %v3869_v29 }
 0x1a1   : > { %4990 = vmatprep.mubr.f32.mxu1 %v7503_v25  ;;  %5180 = vmatpush3.msra.mxu0 %v3869_v29  ;;  %v712_v29 = vrot.slane %v6309_v49, 1 }
 0x1a2   : > { %5068 = vmatmul.mubr.msk.f32.gmra.mxu0 %vm666_vm2, %v7504_v18  ;;  %5108 = vmatpush3.msra.mxu1 %v3849_v34  ;;  %v3866_v34 = vld [vmem:[%s7382_s3 + $0x390] sm:$0xff]  ;;  %v7508_v18 = vld [vmem:[#allocation32_spill] sm:$0xff] }
 0x1a3   : > { %5070 = vmatprep.mubr.f32.mxu0 %v6318_v39  ;;  %5181 = vmatprep.subr.mxu0 %v3868_v54  ;;  %v6523_v39 = vrot.slane %v6307_v45, 1 }
 0x1a4   : > { %4991 = vmatmul.mubr.f32.gmra.mxu1 %v7505_v14  ;;  %5182 = vmatpush3.msra.mxu0 %v3868_v54  ;;  %v3895_v54 = vld [vmem:[%s7382_s3 + $0x478] sm:$0xff] }
 0x1a5   : > { %4993 = vmatprep.mubr.f32.mxu1 %v7506_v41  ;;  %5183 = vmatprep.subr.mxu0 %v3867_v16  ;;  %7507 = vst [vmem:[#allocation4_spill] sm:$0xff] %v6523_v39 }
 0x1a6   : > { %5071 = vmatmul.mubr.msk.f32.gmra.mxu0 %vm666_vm2, %v6299_v11  ;;  %5109 = vmatprep.subr.mxu1 %v3848_v59  ;;  %v3865_v11 = vld [vmem:[%s7382_s3 + $0x388] sm:$0xff] }
 0x1a7   : > { %5073 = vmatprep.mubr.f32.mxu0 %v6343_v47  ;;  %5184 = vmatpush3.msra.mxu0 %v3867_v16  ;;  %v6538_v16 = vsel %vm666_vm2, %v712_v29, %v6523_v39  ;;  %v3864_v47 = vld [vmem:[%s7382_s3 + $0x380] sm:$0xff]  ;;  %v7511_v29 = vld [vmem:[#allocation6_spill] sm:$0xff] }
 0x1a8   : > { %4994 = vmatmul.mubr.f32.gmra.mxu1 %v7508_v18  ;;  %5185 = vmatprep.subr.mxu0 %v3866_v34  ;;  %7509 = vst [vmem:[#allocation3_spill] sm:$0xff] %v6538_v16 }
 0x1a9   : > { %4996 = vmatprep.mubr.f32.mxu1 %v6309_v49  ;;  %5110 = vmatpush3.msra.mxu1 %v3848_v59  ;;  %v7510_v59 = vld [vmem:[#allocation5_spill] sm:$0xff] }
 0x1aa   : > { %5074 = vmatmul.mubr.msk.f32.gmra.mxu0 %vm666_vm2, %v6327_v19  ;;  %5239 = vmatprep.subr.mxu1 %v3895_v54  ;;  %v7515_v19 = vld [vmem:[#allocation10_spill] sm:$0xff] }
 0x1ab   : > { %5076 = vmatprep.mubr.f32.mxu0 %v6538_v16  ;;  %5186 = vmatpush3.msra.mxu0 %v3866_v34  ;;  %v3894_v34 = vld [vmem:[%s7382_s3 + $0x470] sm:$0xff]  ;;  %v7512_v16 = vld [vmem:[#allocation7_spill] sm:$0xff] }
 0x1ac   : > { %4997 = vmatmul.mubr.f32.gmra.mxu1 %v6307_v45  ;;  %5187 = vmatprep.subr.mxu0 %v3865_v11 }
 0x1ad   : > { %5111 = vmatprep.mubr.msk.f32.mxu1 %vm5718_vm1, %v7510_v59  ;;  %5188 = vmatpush3.msra.mxu0 %v3865_v11  ;;  %v3893_v11 = vld [vmem:[%s7382_s3 + $0x468] sm:$0xff]  ;;  %v6561_v59 = vpop.f32.mrf.mxu1 }
 0x1ae   : > { %5077 = vmatmul.mubr.msk.f32.gmra.mxu0 %vm666_vm2, %v6523_v39  ;;  %5189 = vmatprep.subr.mxu0 %v3864_v47 }
 0x1af   : > { %5191 = vmatprep.mubr.f32.mxu0 %v5731_v3  ;;  %5190 = vmatpush3.msra.mxu0 %v3864_v47  ;;  %v3892_v3 = vld [vmem:[%s7382_s3 + $0x460] sm:$0xff]  ;;  %v6568_v47 = vpop.f32.mrf.mxu0 }
 0x1b0   : > { %5112 = vmatmul.mubr.f32.vlgmr.msra.gmra.mxu1 %v7511_v29  ;;  %v7514_v29 = vld [vmem:[#allocation9_spill] sm:$0xff] }
 0x1b1   : > { %5240 = vmatpush3.msra.mxu1 %v3895_v54  ;;  %5114 = vmatprep.mubr.msk.f32.mxu1 %vm5718_vm1, %v7512_v16  ;;  %v7513_v16 = vld [vmem:[#allocation8_spill] sm:$0xff] }
 0x1b2   : > { %5192 = vmatmul.mubr.f32.vlgmr.msra.gmra.mxu0 %v5722_v62  ;;  %5241 = vmatprep.subr.mxu1 %v3894_v34  ;;  %v3891_v62 = vld [vmem:[%s7382_s3 + $0x458] sm:$0xff] }
 0x1b3   : > { %5194 = vmatprep.mubr.f32.mxu0 %v5751_v12  ;;  %5242 = vmatpush3.msra.mxu1 %v3894_v34 }
 0x1b4   : > { %v4636_v54 = vpop.f32.mrf.mxu1  ;;  %5115 = vmatmul.mubr.f32.gmra.mxu1 %v7513_v16  ;;  %5243 = vmatprep.subr.mxu1 %v3893_v11  ;;  %v3890_v16 = vld [vmem:[%s7382_s3 + $0x450] sm:$0xff] }
 0x1b5   : > { %5117 = vmatprep.mubr.msk.f32.mxu1 %vm5718_vm1, %v7514_v29  ;;  %5244 = vmatpush3.msra.mxu1 %v3893_v11 }
 0x1b6   : > { %v1046_v12 = vpop.f32.mrf.mxu1  ;;  %v4716_v34 = vpop.f32.mrf.mxu0  ;;  %5195 = vmatmul.mubr.f32.gmra.mxu0 %v5742_v7  ;;  %5245 = vmatprep.subr.mxu1 %v3892_v3  ;;  %v3889_v7 = vld [vmem:[%s7382_s3 + $0x448] sm:$0xff] }
 0x1b7   : > { %v6578_v39 = vadd.f32 %v4716_v34, %v4636_v54  ;;  %5197 = vmatprep.mubr.f32.mxu0 %v5771_v22  ;;  %5246 = vmatpush3.msra.mxu1 %v3892_v3 }
 0x1b8   : > { %v4639_v29 = vpop.f32.mrf.mxu1  ;;  %v1271_v11 = vpop.f32.mrf.mxu0  ;;  %5118 = vmatmul.mubr.f32.gmra.mxu1 %v7515_v19  ;;  %5247 = vmatprep.subr.mxu1 %v3891_v62  ;;  %v3888_v19 = vld [vmem:[%s7382_s3 + $0x440] sm:$0xff] }
 0x1b9   : > { %v6585_v63 = vadd.f32 %v1271_v11, %v1046_v12  ;;  %5120 = vmatprep.mubr.msk.f32.mxu1 %vm5718_vm1, %v7516_v24  ;;  %5248 = vmatpush3.msra.mxu1 %v3891_v62  ;;  %v7517_v12 = vld [vmem:[#allocation12_spill] sm:$0xff]  ;;  %v7518_v11 = vld [vmem:[#allocation13_spill] sm:$0xff] }
 0x1ba   : > { %v1056_v22 = vpop.f32.mrf.mxu1  ;;  %v4719_v3 = vpop.f32.mrf.mxu0  ;;  %5198 = vmatmul.mubr.f32.gmra.mxu0 %v5762_v17  ;;  %5249 = vmatprep.subr.mxu1 %v3890_v16  ;;  %v3887_v17 = vld [vmem:[%s7382_s3 + $0x438] sm:$0xff] }
 0x1bb   : > { %v6594_v54 = vadd.f32 %v4719_v3, %v4639_v29  ;;  %5200 = vmatprep.mubr.f32.mxu0 %v5791_v31  ;;  %5250 = vmatpush3.msra.mxu1 %v3890_v16 }
 0x1bc   : > { %v4642_v24 = vpop.f32.mrf.mxu1  ;;  %v1281_v62 = vpop.f32.mrf.mxu0  ;;  %5121 = vmatmul.mubr.f32.gmra.mxu1 %v7517_v12  ;;  %5251 = vmatprep.subr.mxu1 %v3889_v7 }
 0x1bd   : > { %v6601_v34 = vadd.f32 %v1281_v62, %v1056_v22  ;;  %5123 = vmatprep.mubr.msk.f32.mxu1 %vm5718_vm1, %v7518_v11  ;;  %5252 = vmatpush3.msra.mxu1 %v3889_v7  ;;  %v3886_v22 = vld [vmem:[%s7382_s3 + $0x430] sm:$0xff]  ;;  %v7519_v62 = vld [vmem:[#allocation14_spill] sm:$0xff]  ;;  %v7520_v11 = vld [vmem:[#allocation15_spill] sm:$0xff] }
 0x1be   : > { %v1066_v31 = vpop.f32.mrf.mxu1  ;;  %v4722_v16 = vpop.f32.mrf.mxu0  ;;  %5201 = vmatmul.mubr.f32.gmra.mxu0 %v5782_v26  ;;  %5253 = vmatprep.subr.mxu1 %v3888_v19  ;;  %v3885_v26 = vld [vmem:[%s7382_s3 + $0x428] sm:$0xff] }
 0x1bf   : > { %v6610_v29 = vadd.f32 %v4722_v16, %v4642_v24  ;;  %5203 = vmatprep.mubr.f32.mxu0 %v5811_v40  ;;  %5254 = vmatpush3.msra.mxu1 %v3888_v19 }
 0x1c0   : > { %v4645_v3 = vpop.f32.mrf.mxu1  ;;  %v1291_v7 = vpop.f32.mrf.mxu0  ;;  %5124 = vmatmul.mubr.f32.gmra.mxu1 %v7519_v62  ;;  %5255 = vmatprep.subr.mxu1 %v3887_v17 }
 0x1c1   : > { %v6617_v12 = vadd.f32 %v1291_v7, %v1066_v31  ;;  %5126 = vmatprep.mubr.msk.f32.mxu1 %vm5718_vm1, %v7520_v11  ;;  %5256 = vmatpush3.msra.mxu1 %v3887_v17  ;;  %v3884_v31 = vld [vmem:[%s7382_s3 + $0x420] sm:$0xff]  ;;  %v7521_v7 = vld [vmem:[#allocation16_spill] sm:$0xff]  ;;  %v7522_v11 = vld [vmem:[#allocation17_spill] sm:$0xff] }
 0x1c2   : > { %v1076_v40 = vpop.f32.mrf.mxu1  ;;  %v4725_v19 = vpop.f32.mrf.mxu0  ;;  %5204 = vmatmul.mubr.f32.gmra.mxu0 %v5802_v35  ;;  %5257 = vmatprep.subr.mxu1 %v3886_v22  ;;  %v3883_v35 = vld [vmem:[%s7382_s3 + $0x418] sm:$0xff] }
 0x1c3   : > { %v6626_v24 = vadd.f32 %v4725_v19, %v4645_v3  ;;  %5206 = vmatprep.mubr.f32.mxu0 %v5831_v52  ;;  %5258 = vmatpush3.msra.mxu1 %v3886_v22 }
 0x1c4   : > { %v4648_v16 = vpop.f32.mrf.mxu1  ;;  %v1301_v17 = vpop.f32.mrf.mxu0  ;;  %5127 = vmatmul.mubr.f32.gmra.mxu1 %v7521_v7  ;;  %5259 = vmatprep.subr.mxu1 %v3885_v26 }
 0x1c5   : > { %v6633_v62 = vadd.f32 %v1301_v17, %v1076_v40  ;;  %5129 = vmatprep.mubr.msk.f32.mxu1 %vm5718_vm1, %v7522_v11  ;;  %5260 = vmatpush3.msra.mxu1 %v3885_v26  ;;  %v3882_v40 = vld [vmem:[%s7382_s3 + $0x410] sm:$0xff]  ;;  %v7523_v17 = vld [vmem:[#allocation18_spill] sm:$0xff]  ;;  %v7524_v11 = vld [vmem:[#allocation19_spill] sm:$0xff] }
 0x1c6   : > { %v1086_v52 = vpop.f32.mrf.mxu1  ;;  %v4728_v22 = vpop.f32.mrf.mxu0  ;;  %5207 = vmatmul.mubr.f32.gmra.mxu0 %v5822_v44  ;;  %5261 = vmatprep.subr.mxu1 %v3884_v31  ;;  %v3881_v44 = vld [vmem:[%s7382_s3 + $0x408] sm:$0xff] }
 0x1c7   : > { %v6642_v3 = vadd.f32 %v4728_v22, %v4648_v16  ;;  %5209 = vmatprep.mubr.f32.mxu0 %v5851_v2  ;;  %5262 = vmatpush3.msra.mxu1 %v3884_v31 }
 0x1c8   : > { %v4651_v19 = vpop.f32.mrf.mxu1  ;;  %v1311_v26 = vpop.f32.mrf.mxu0  ;;  %5130 = vmatmul.mubr.f32.gmra.mxu1 %v7523_v17  ;;  %5263 = vmatprep.subr.mxu1 %v3883_v35 }
 0x1c9   : > { %v6649_v7 = vadd.f32 %v1311_v26, %v1086_v52  ;;  %5132 = vmatprep.mubr.msk.f32.mxu1 %vm5718_vm1, %v7524_v11  ;;  %5264 = vmatpush3.msra.mxu1 %v3883_v35  ;;  %v3880_v52 = vld [vmem:[%s7382_s3 + $0x400] sm:$0xff]  ;;  %v7525_v26 = vld [vmem:[#allocation20_spill] sm:$0xff]  ;;  %v7526_v11 = vld [vmem:[#allocation21_spill] sm:$0xff] }
 0x1ca   : > { %v1096_v2 = vpop.f32.mrf.mxu1  ;;  %v4731_v31 = vpop.f32.mrf.mxu0  ;;  %5210 = vmatmul.mubr.f32.gmra.mxu0 %v5842_v57  ;;  %5265 = vmatprep.subr.mxu1 %v3882_v40 }
 0x1cb   : > { %v6658_v16 = vadd.f32 %v4731_v31, %v4651_v19  ;;  %5212 = vmatprep.mubr.f32.mxu0 %v5871_v20  ;;  %5266 = vmatpush3.msra.mxu1 %v3882_v40 }
 0x1cc   : > { %v4654_v22 = vpop.f32.mrf.mxu1  ;;  %v1321_v35 = vpop.f32.mrf.mxu0  ;;  %5133 = vmatmul.mubr.f32.gmra.mxu1 %v7525_v26  ;;  %5267 = vmatprep.subr.mxu1 %v3881_v44  ;;  %v7527_v26 = vld [vmem:[#allocation22_spill] sm:$0xff] }
 0x1cd   : > { %v6665_v17 = vadd.f32 %v1321_v35, %v1096_v2  ;;  %5135 = vmatprep.mubr.msk.f32.mxu1 %vm5718_vm1, %v7526_v11  ;;  %5268 = vmatpush3.msra.mxu1 %v3881_v44  ;;  %v7528_v35 = vld [vmem:[#allocation23_spill] sm:$0xff] }
 0x1ce   : > { %v1106_v57 = vpop.f32.mrf.mxu1  ;;  %v4734_v19 = vpop.f32.mrf.mxu0  ;;  %5213 = vmatmul.mubr.f32.gmra.mxu0 %v5862_v10  ;;  %5269 = vmatprep.subr.mxu1 %v3880_v52 }
 0x1cf   : > { %v6671_v20 = vadd.f32 %v4734_v19, %v4654_v22  ;;  %5215 = vmatprep.mubr.f32.mxu0 %v5891_v36  ;;  %5270 = vmatpush3.msra.mxu1 %v3880_v52  ;;  %v7529_v22 = vld [vmem:[#allocation24_spill] sm:$0xff] }
 0x1d0   : > { %v4657_v40 = vpop.f32.mrf.mxu1  ;;  %v1331_v31 = vpop.f32.mrf.mxu0  ;;  %5136 = vmatmul.mubr.f32.gmra.mxu1 %v7527_v26 }
 0x1d1   : > { %v6675_v2 = vadd.f32 %v1331_v31, %v1106_v57  ;;  %5138 = vmatprep.mubr.msk.f32.mxu1 %vm5718_vm1, %v7528_v35  ;;  %v7530_v57 = vld [vmem:[#allocation26_spill] sm:$0xff] }
 0x1d2   : > { %v1116_v44 = vpop.f32.mrf.mxu1  ;;  %v4737_v11 = vpop.f32.mrf.mxu0  ;;  %5216 = vmatmul.mubr.f32.gmra.mxu0 %v5882_v27 }
 0x1d3   : > { %v6681_v10 = vadd.f32 %v4737_v11, %v4657_v40  ;;  %5218 = vmatprep.mubr.f32.mxu0 %v5911_v56  ;;  %v7531_v40 = vld [vmem:[#allocation27_spill] sm:$0xff] }
 0x1d4   : > { %v4660_v36 = vpop.f32.mrf.mxu1  ;;  %v1341_v52 = vpop.f32.mrf.mxu0  ;;  %5139 = vmatmul.mubr.f32.gmra.mxu1 %v7529_v22 }
 0x1d5   : > { %v6685_v19 = vadd.f32 %v1341_v52, %v1116_v44  ;;  %5141 = vmatprep.mubr.msk.f32.mxu1 %vm5718_vm1, %v7530_v57  ;;  %v7532_v44 = vld [vmem:[#allocation29_spill] sm:$0xff] }
 0x1d6   : > { %v1126_v31 = vpop.f32.mrf.mxu1  ;;  %v4740_v26 = vpop.f32.mrf.mxu0  ;;  %5219 = vmatmul.mubr.f32.gmra.mxu0 %v5902_v43 }
 0x1d7   : > { %v6691_v35 = vadd.f32 %v4740_v26, %v4660_v36  ;;  %5221 = vmatprep.mubr.f32.mxu0 %v5931_v21  ;;  %v7533_v36 = vld [vmem:[#allocation31_spill] sm:$0xff] }
 0x1d8   : > { %v4663_v27 = vpop.f32.mrf.mxu1  ;;  %v1351_v56 = vpop.f32.mrf.mxu0  ;;  %5142 = vmatmul.mubr.f32.gmra.mxu1 %v7531_v40 }
 0x1d9   : > { %v6695_v11 = vadd.f32 %v1351_v56, %v1126_v31  ;;  %5144 = vmatprep.mubr.msk.f32.mxu1 %vm5718_vm1, %v7532_v44  ;;  %v7534_v31 = vld [vmem:[#allocation33_spill] sm:$0xff] }
 0x1da   : > { %v1136_v52 = vpop.f32.mrf.mxu1  ;;  %v4743_v22 = vpop.f32.mrf.mxu0  ;;  %5222 = vmatmul.mubr.f32.gmra.mxu0 %v5922_v4 }
 0x1db   : > { %v6701_v57 = vadd.f32 %v4743_v22, %v4663_v27  ;;  %5224 = vmatprep.mubr.f32.mxu0 %v5951_v53  ;;  %v7535_v27 = vld [vmem:[#allocation35_spill] sm:$0xff] }
 0x1dc   : > { %v4666_v43 = vpop.f32.mrf.mxu1  ;;  %v1361_v21 = vpop.f32.mrf.mxu0  ;;  %5145 = vmatmul.mubr.f32.gmra.mxu1 %v7533_v36 }
 0x1dd   : > { %v6705_v26 = vadd.f32 %v1361_v21, %v1136_v52  ;;  %5147 = vmatprep.mubr.msk.f32.mxu1 %vm5718_vm1, %v7534_v31  ;;  %v7536_v52 = vld [vmem:[#allocation36_spill] sm:$0xff] }
 0x1de   : > { %v1146_v56 = vpop.f32.mrf.mxu1  ;;  %v4746_v40 = vpop.f32.mrf.mxu0  ;;  %5225 = vmatmul.mubr.f32.gmra.mxu0 %v7502_v23 }
 0x1df   : > { %v6711_v44 = vadd.f32 %v4746_v40, %v4666_v43  ;;  %5227 = vmatprep.mubr.f32.mxu0 %v7503_v25  ;;  %v7537_v43 = vld [vmem:[#allocation37_spill] sm:$0xff] }
 0x1e0   : > { %v4669_v4 = vpop.f32.mrf.mxu1  ;;  %v1371_v53 = vpop.f32.mrf.mxu0  ;;  %5148 = vmatmul.mubr.f32.gmra.mxu1 %v7535_v27 }
 0x1e1   : > { %v6715_v22 = vadd.f32 %v1371_v53, %v1146_v56  ;;  %5150 = vmatprep.mubr.msk.f32.mxu1 %vm5718_vm1, %v7536_v52  ;;  %v7538_v52 = vmov 0.0  }
 0x1e2   : > { %v1156_v21 = vpop.f32.mrf.mxu1  ;;  %v4749_v36 = vpop.f32.mrf.mxu0  ;;  %5228 = vmatmul.mubr.f32.gmra.mxu0 %v7505_v14 }
 0x1e3   : > { %v6721_v31 = vadd.f32 %v4749_v36, %v4669_v4  ;;  %5230 = vmatprep.mubr.f32.mxu0 %v7506_v41 }
 0x1e4   : > { %v4672_v23 = vpop.f32.mrf.mxu1  ;;  %v1381_v25 = vpop.f32.mrf.mxu0  ;;  %5151 = vmatmul.mubr.f32.gmra.mxu1 %v7537_v43 }
 0x1e5   : > { %v6725_v40 = vadd.f32 %v1381_v25, %v1156_v21  ;;  %5153 = vmatprep.mubr.msk.f32.mxu1 %vm5718_vm1, %v6333_v9 }
 0x1e6   : > { %v1166_v56 = vpop.f32.mrf.mxu1  ;;  %v4752_v53 = vpop.f32.mrf.mxu0  ;;  %5231 = vmatmul.mubr.f32.gmra.mxu0 %v7508_v18 }
 0x1e7   : > { %v6731_v27 = vadd.f32 %v4752_v53, %v4672_v23  ;;  %5233 = vmatprep.mubr.f32.mxu0 %v6309_v49 }
 0x1e8   : > { %v4675_v14 = vpop.f32.mrf.mxu1  ;;  %v1391_v41 = vpop.f32.mrf.mxu0  ;;  %5154 = vmatmul.mubr.f32.gmra.mxu1 %v6355_v51 }
 0x1e9   : > { %v6735_v4 = vadd.f32 %v1391_v41, %v1166_v56  ;;  %5156 = vmatprep.mubr.f32.mxu1 %v7538_v52  ;;  %v1262_v56 = vadd.f32 %v6568_v47, %v6561_v59 }
 0x1ea   : > { %v1176_v21 = vpop.f32.mrf.mxu1  ;;  %v4755_v36 = vpop.f32.mrf.mxu0  ;;  %5234 = vmatmul.mubr.f32.gmra.mxu0 %v6307_v45 }
 0x1eb   : > { %v6739_v61 = vadd.f32 %v4755_v36, %v4675_v14  ;;  %5236 = vmatprep.mubr.f32.mxu0 %v7538_v52  ;;  %v7540_v14 = vld [vmem:[#allocation38_spill] sm:$0xff] }
 0x1ec   : > { %v4678_v9 = vpop.f32.mrf.mxu1  ;;  %v1401_v18 = vpop.f32.mrf.mxu0  ;;  %5157 = vmatmul.mubr.f32.gmra.mxu1 %v7538_v52 }
 0x1ed   : > { %v6743_v49 = vadd.f32 %v1401_v18, %v1176_v21  ;;  %5271 = vmatprep.mubr.f32.mxu1 %v6057_v15 }
 0x1ee   : > { %v1186_v51 = vpop.f32.mrf.mxu1  ;;  %v4758_v23 = vpop.f32.mrf.mxu0  ;;  %5237 = vmatmul.mubr.f32.gmra.mxu0 %v7538_v52 }
 0x1ef   : > { %v6747_v25 = vadd.f32 %v4758_v23, %v4678_v9 }
 0x1f0   : > { %v1411_v43 = vpop.f32.mrf.mxu0  ;;  %v4793_v45 = vpop.f32.mrf.mxu1  ;;  %5272 = vmatmul.mubr.msk.f32.vlgmr.msra.gmra.mxu1 %vm666_vm2, %v6045_v32 }
 0x1f1   : > { %7539 = vst [vmem:[#allocation25_spill] sm:$0xff] %v6747_v25  ;;  %v6753_v53 = vadd.f32 %v1411_v43, %v1186_v51  ;;  %v1695_v41 = vadd.f32 %v4793_v45, %v7540_v14  ;;  %5274 = vmatprep.mubr.f32.mxu1 %v6078_v1 }
 0x1f2   : > { %v1535_v15 = vpop.f32.mrf.mxu1  ;;  %v4873_v21 = vpop.f32.mrf.mxu0 }
 0x1f3   : > { %v1694_v36 = vadd.f32 %v1535_v15, %v1262_v56  ;;  %v6757_v18 = vadd.f32 %v4873_v21, %v1695_v41 }
 0x1f4   : > { %v4796_v9 = vpop.f32.mrf.mxu1  ;;  %v1842_v23 = vpop.f32.mrf.mxu0  ;;  %5275 = vmatmul.mubr.msk.f32.gmra.mxu1 %vm666_vm2, %v6066_v8 }
 0x1f5   : > { %v1697_v32 = vadd.f32 %v4796_v9, %v6578_v39  ;;  %v6762_v25 = vadd.f32 %v1842_v23, %v1694_v36  ;;  %5277 = vmatprep.mubr.f32.mxu1 %v6099_v58 }
 0x1f6   : > { %v1545_v59 = vpop.f32.mrf.mxu1  ;;  %v4876_v47 = vpop.f32.mrf.mxu0 }
 0x1f7   : > { %v1696_v1 = vadd.f32 %v1545_v59, %v6585_v63  ;;  %v6766_v51 = vadd.f32 %v4876_v47, %v1697_v32 }
 0x1f8   : > { %v4799_v43 = vpop.f32.mrf.mxu1  ;;  %v1852_v45 = vpop.f32.mrf.mxu0  ;;  %5278 = vmatmul.mubr.msk.f32.gmra.mxu1 %vm666_vm2, %v6087_v55 }
 0x1f9   : > { %v1699_v56 = vadd.f32 %v4799_v43, %v6594_v54  ;;  %v6771_v8 = vadd.f32 %v1852_v45, %v1696_v1  ;;  %5280 = vmatprep.mubr.f32.mxu1 %v6120_v48 }
 0x1fa   : > { %v1555_v39 = vpop.f32.mrf.mxu1  ;;  %v4879_v14 = vpop.f32.mrf.mxu0 }
 0x1fb   : > { %v1698_v58 = vadd.f32 %v1555_v39, %v6601_v34  ;;  %v6775_v41 = vadd.f32 %v4879_v14, %v1699_v56 }
 0x1fc   : > { %v4802_v63 = vpop.f32.mrf.mxu1  ;;  %v1862_v15 = vpop.f32.mrf.mxu0  ;;  %5281 = vmatmul.mubr.msk.f32.gmra.mxu1 %vm666_vm2, %v6108_v28 }
 0x1fd   : > { %v1701_v21 = vadd.f32 %v4802_v63, %v6610_v29  ;;  %v6780_v55 = vadd.f32 %v1862_v15, %v1698_v58  ;;  %5283 = vmatprep.mubr.f32.mxu1 %v6142_v38 }
 0x1fe   : > { %v1565_v54 = vpop.f32.mrf.mxu1  ;;  %v4882_v36 = vpop.f32.mrf.mxu0 }
 0x1ff   : > { %v1700_v48 = vadd.f32 %v1565_v54, %v6617_v12  ;;  %v6784_v9 = vadd.f32 %v4882_v36, %v1701_v21 }
 0x200   : > { %v4805_v34 = vpop.f32.mrf.mxu1  ;;  %v1872_v23 = vpop.f32.mrf.mxu0  ;;  %5284 = vmatmul.mubr.msk.f32.gmra.mxu1 %vm666_vm2, %v6129_v37 }
 0x201   : > { %v1703_v32 = vadd.f32 %v4805_v34, %v6626_v24  ;;  %v6789_v28 = vadd.f32 %v1872_v23, %v1700_v48  ;;  %5286 = vmatprep.mubr.f32.mxu1 %v6160_v33 }
 0x202   : > { %v1575_v29 = vpop.f32.mrf.mxu1  ;;  %v4885_v59 = vpop.f32.mrf.mxu0 }
 0x203   : > { %v1702_v38 = vadd.f32 %v1575_v29, %v6633_v62  ;;  %v6793_v47 = vadd.f32 %v4885_v59, %v1703_v32 }
 0x204   : > { %v4808_v12 = vpop.f32.mrf.mxu1  ;;  %v1882_v1 = vpop.f32.mrf.mxu0  ;;  %5287 = vmatmul.mubr.msk.f32.gmra.mxu1 %vm666_vm2, %v6151_v46 }
 0x205   : > { %v1705_v43 = vadd.f32 %v4808_v12, %v6642_v3  ;;  %v6798_v37 = vadd.f32 %v1882_v1, %v1702_v38  ;;  %5289 = vmatprep.mubr.f32.mxu1 %v6184_v50 }
 0x206   : > { %v1585_v24 = vpop.f32.mrf.mxu1  ;;  %v4888_v45 = vpop.f32.mrf.mxu0 }
 0x207   : > { %v1704_v33 = vadd.f32 %v1585_v24, %v6649_v7  ;;  %v6802_v56 = vadd.f32 %v4888_v45, %v1705_v43  ;;  %v7542_v24 = vld [vmem:[#allocation39_spill] sm:$0xff] }
 0x208   : > { %v4811_v62 = vpop.f32.mrf.mxu1  ;;  %v1892_v39 = vpop.f32.mrf.mxu0  ;;  %5290 = vmatmul.mubr.msk.f32.gmra.mxu1 %vm666_vm2, %v6169_v5 }
 0x209   : > { %v1707_v14 = vadd.f32 %v4811_v62, %v6658_v16  ;;  %v6807_v46 = vadd.f32 %v1892_v39, %v1704_v33  ;;  %5292 = vmatprep.mubr.f32.mxu1 %v6205_v0 }
 0x20a   : > { %v1595_v3 = vpop.f32.mrf.mxu1  ;;  %v4891_v58 = vpop.f32.mrf.mxu0 }
 0x20b   : > { %v1706_v50 = vadd.f32 %v1595_v3, %v6665_v17  ;;  %v6811_v63 = vadd.f32 %v4891_v58, %v1707_v14  ;;  %v7544_v58 = vld [vmem:[#allocation41_spill] sm:$0xff] }
 0x20c   : > { %v4814_v7 = vpop.f32.mrf.mxu1  ;;  %v1902_v15 = vpop.f32.mrf.mxu0  ;;  %5293 = vmatmul.mubr.msk.f32.gmra.mxu1 %vm666_vm2, %v6193_v6 }
 0x20d   : > { %v1709_v21 = vadd.f32 %v4814_v7, %v6671_v20  ;;  %v6816_v5 = vadd.f32 %v1902_v15, %v1706_v50  ;;  %5295 = vmatprep.mubr.f32.mxu1 %v6223_v60 }
 0x20e   : > { %v1605_v16 = vpop.f32.mrf.mxu1  ;;  %v4894_v54 = vpop.f32.mrf.mxu0 }
 0x20f   : > { %v1708_v0 = vadd.f32 %v1605_v16, %v6675_v2  ;;  %v6820_v36 = vadd.f32 %v4894_v54, %v1709_v21 }
 0x210   : > { %v4817_v17 = vpop.f32.mrf.mxu1  ;;  %v1912_v48 = vpop.f32.mrf.mxu0  ;;  %5296 = vmatmul.mubr.msk.f32.gmra.mxu1 %vm666_vm2, %v6214_v30 }
 0x211   : > { %v1711_v34 = vadd.f32 %v4817_v17, %v6681_v10  ;;  %v6825_v6 = vadd.f32 %v1912_v48, %v1708_v0  ;;  %5298 = vmatprep.mubr.f32.mxu1 %v6247_v42  ;;  %v7541_v10 = vld [vmem:[#allocation40_spill] sm:$0xff]  ;;  %v7546_v17 = vld [vmem:[#allocation43_spill] sm:$0xff] }
 0x212   : > { %v1615_v20 = vpop.f32.mrf.mxu1  ;;  %v4897_v23 = vpop.f32.mrf.mxu0 }
 0x213   : > { %v1710_v60 = vadd.f32 %v1615_v20, %v6685_v19  ;;  %v6829_v32 = vadd.f32 %v4897_v23, %v1711_v34 }
 0x214   : > { %v4820_v2 = vpop.f32.mrf.mxu1  ;;  %v1922_v29 = vpop.f32.mrf.mxu0  ;;  %5299 = vmatmul.mubr.msk.f32.gmra.mxu1 %vm666_vm2, %v6232_v13 }
 0x215   : > { %v1713_v59 = vadd.f32 %v4820_v2, %v6691_v35  ;;  %v6834_v30 = vadd.f32 %v1922_v29, %v1710_v60  ;;  %5301 = vmatprep.mubr.f32.mxu1 %v7541_v10  ;;  %v7543_v35 = vld [vmem:[#allocation42_spill] sm:$0xff] }
 0x216   : > { %v1625_v38 = vpop.f32.mrf.mxu1  ;;  %v4900_v12 = vpop.f32.mrf.mxu0 }
 0x217   : > { %v1712_v42 = vadd.f32 %v1625_v38, %v6695_v11  ;;  %v6838_v1 = vadd.f32 %v4900_v12, %v1713_v59  ;;  %v7548_v59 = vld [vmem:[#allocation45_spill] sm:$0xff] }
 0x218   : > { %v4823_v19 = vpop.f32.mrf.mxu1  ;;  %v1932_v43 = vpop.f32.mrf.mxu0  ;;  %5302 = vmatmul.mubr.msk.f32.gmra.mxu1 %vm666_vm2, %v7542_v24 }
 0x219   : > { %v1715_v45 = vadd.f32 %v4823_v19, %v6701_v57  ;;  %v6843_v13 = vadd.f32 %v1932_v43, %v1712_v42  ;;  %5304 = vmatprep.mubr.f32.mxu1 %v7543_v35  ;;  %v7545_v57 = vld [vmem:[#allocation44_spill] sm:$0xff] }
 0x21a   : > { %v1635_v33 = vpop.f32.mrf.mxu1  ;;  %v4903_v62 = vpop.f32.mrf.mxu0 }
 0x21b   : > { %v1714_v39 = vadd.f32 %v1635_v33, %v6705_v26  ;;  %v6847_v14 = vadd.f32 %v4903_v62, %v1715_v45  ;;  %v7550_v45 = vld [vmem:[#allocation4_spill] sm:$0xff] }
 0x21c   : > { %v4826_v11 = vpop.f32.mrf.mxu1  ;;  %v1942_v3 = vpop.f32.mrf.mxu0  ;;  %5305 = vmatmul.mubr.msk.f32.gmra.mxu1 %vm666_vm2, %v7544_v58  ;;  %v7551_v58 = vld [vmem:[#allocation25_spill] sm:$0xff] }
 0x21d   : > { %v1717_v50 = vadd.f32 %v4826_v11, %v6711_v44  ;;  %v6852_v7 = vadd.f32 %v1942_v3, %v1714_v39  ;;  %5307 = vmatprep.mubr.f32.mxu1 %v7545_v57  ;;  %v7547_v44 = vld [vmem:[#allocation46_spill] sm:$0xff] }
 0x21e   : > { %v1645_v15 = vpop.f32.mrf.mxu1  ;;  %v4906_v21 = vpop.f32.mrf.mxu0 }
 0x21f   : > { %v1716_v16 = vadd.f32 %v1645_v15, %v6715_v22  ;;  %v6856_v54 = vadd.f32 %v4906_v21, %v1717_v50 }
 0x220   : > { %v4829_v26 = vpop.f32.mrf.mxu1  ;;  %v1952_v0 = vpop.f32.mrf.mxu0  ;;  %5308 = vmatmul.mubr.msk.f32.gmra.mxu1 %vm666_vm2, %v7546_v17 }
 0x221   : > { %v1719_v48 = vadd.f32 %v4829_v26, %v6721_v31  ;;  %v6861_v34 = vadd.f32 %v1952_v0, %v1716_v16  ;;  %5310 = vmatprep.mubr.f32.mxu1 %v7547_v44  ;;  %v7549_v31 = vld [vmem:[#allocation3_spill] sm:$0xff] }
 0x222   : > { %v1655_v20 = vpop.f32.mrf.mxu1  ;;  %v4909_v23 = vpop.f32.mrf.mxu0 }
 0x223   : > { %v1718_v60 = vadd.f32 %v1655_v20, %v6725_v40  ;;  %v6865_v2 = vadd.f32 %v4909_v23, %v1719_v48 }
 0x224   : > { %v4832_v22 = vpop.f32.mrf.mxu1  ;;  %v1962_v29 = vpop.f32.mrf.mxu0  ;;  %5311 = vmatmul.mubr.msk.f32.gmra.mxu1 %vm666_vm2, %v7548_v59 }
 0x225   : > { %v1721_v10 = vadd.f32 %v4832_v22, %v6731_v27  ;;  %v6870_v38 = vadd.f32 %v1962_v29, %v1718_v60  ;;  %5313 = vmatprep.mubr.f32.mxu1 %v7549_v31 }
 0x226   : > { %v1665_v12 = vpop.f32.mrf.mxu1  ;;  %v4912_v42 = vpop.f32.mrf.mxu0 }
 0x227   : > { %v1720_v19 = vadd.f32 %v1665_v12, %v6735_v4  ;;  %v6874_v43 = vadd.f32 %v4912_v42, %v1721_v10 }
 0x228   : > { %v4835_v40 = vpop.f32.mrf.mxu1  ;;  %v1972_v24 = vpop.f32.mrf.mxu0  ;;  %5314 = vmatmul.mubr.msk.f32.gmra.mxu1 %vm666_vm2, %v7550_v45 }
 0x229   : > { %v1723_v35 = vadd.f32 %v4835_v40, %v6739_v61  ;;  %v6879_v33 = vadd.f32 %v1972_v24, %v1720_v19  ;;  %5316 = vmatprep.mubr.f32.mxu1 %v7538_v52 }
 0x22a   : > { %v1675_v27 = vpop.f32.mrf.mxu1  ;;  %v4915_v62 = vpop.f32.mrf.mxu0 }
 0x22b   : > { %v1722_v39 = vadd.f32 %v1675_v27, %v6743_v49  ;;  %v6883_v11 = vadd.f32 %v4915_v62, %v1723_v35 }
 0x22c   : > { %v4838_v4 = vpop.f32.mrf.mxu1  ;;  %v1982_v3 = vpop.f32.mrf.mxu0  ;;  %5317 = vmatmul.mubr.f32.gmra.mxu1 %v7538_v52 }
 0x22d   : > { %v1725_v50 = vadd.f32 %v4838_v4, %v7551_v58  ;;  %v6887_v57 = vadd.f32 %v1982_v3, %v1722_v39 }
 0x22e   : > { %v1685_v15 = vpop.f32.mrf.mxu1  ;;  %v4918_v61 = vpop.f32.mrf.mxu0 }
 0x22f   : > { %v1724_v21 = vadd.f32 %v1685_v15, %v6753_v53  ;;  %v6890_v16 = vadd.f32 %v4918_v61, %v1725_v50 }
 0x230   : > { %v1992_v26 = vpop.f32.mrf.mxu0  ;;  %v4953_v0 = vpop.f32.mrf.mxu1 }
 0x231   : > { %v6892_v17 = vadd.f32 %v1992_v26, %v1724_v21  ;;  %v6895_v49 = vadd.f32 %v4953_v0, %v6757_v18 }
 0x232   : > { %v2149_v48 = vpop.f32.mrf.mxu1  ;;  %v6897_v44 = vpop.f32.mrf.mxu0 }
 0x233   : > { %v6900_v52 = vadd.f32 %v2149_v48, %v6762_v25 }
 0x234   : > { %v4956_v20 = vpop.f32.mrf.mxu1  ;;  %v6902_v23 = vpop.f32.mrf.mxu0 }
 0x235   : > { %v6905_v53 = vadd.f32 %v4956_v20, %v6766_v51 }
 0x236   : > { %v2159_v60 = vpop.f32.mrf.mxu1  ;;  %v6907_v22 = vpop.f32.mrf.mxu0 }
 0x237   : > { %v6910_v29 = vadd.f32 %v2159_v60, %v6771_v8 }
 0x238   : > { %v4959_v18 = vpop.f32.mrf.mxu1  ;;  %v6912_v59 = vpop.f32.mrf.mxu0 }
 0x239   : > { %v6915_v10 = vadd.f32 %v4959_v18, %v6775_v41 }
 0x23a   : > { %v2169_v25 = vpop.f32.mrf.mxu1  ;;  %v6917_v31 = vpop.f32.mrf.mxu0 }
 0x23b   : > { %v6920_v12 = vadd.f32 %v2169_v25, %v6780_v55 }
 0x23c   : > { %v4962_v51 = vpop.f32.mrf.mxu1  ;;  %v6922_v42 = vpop.f32.mrf.mxu0 }
 0x23d   : > { %v6925_v19 = vadd.f32 %v4962_v51, %v6784_v9 }
 0x23e   : > { %v2179_v8 = vpop.f32.mrf.mxu1  ;;  %v6927_v40 = vpop.f32.mrf.mxu0 }
 0x23f   : > { %v6930_v24 = vadd.f32 %v2179_v8, %v6789_v28 }
 0x240   : > { %v4965_v41 = vpop.f32.mrf.mxu1  ;;  %v6932_v45 = vpop.f32.mrf.mxu0 }
 0x241   : > { %v6935_v35 = vadd.f32 %v4965_v41, %v6793_v47 }
 0x242   : > { %v2189_v55 = vpop.f32.mrf.mxu1  ;;  %v6937_v27 = vpop.f32.mrf.mxu0 }
 0x243   : > { %v6940_v62 = vadd.f32 %v2189_v55, %v6798_v37 }
 0x244   : > { %v4968_v9 = vpop.f32.mrf.mxu1  ;;  %v6942_v39 = vpop.f32.mrf.mxu0 }
 0x245   : > { %v6945_v4 = vadd.f32 %v4968_v9, %v6802_v56 }
 0x246   : > { %v2199_v28 = vpop.f32.mrf.mxu1  ;;  %v6947_v3 = vpop.f32.mrf.mxu0 }
 0x247   : > { %v6950_v58 = vadd.f32 %v2199_v28, %v6807_v46 }
 0x248   : > { %v4971_v47 = vpop.f32.mrf.mxu1  ;;  %v6952_v50 = vpop.f32.mrf.mxu0 }
 0x249   : > { %v6955_v15 = vadd.f32 %v4971_v47, %v6811_v63 }
 0x24a   : > { %v2209_v37 = vpop.f32.mrf.mxu1  ;;  %v6957_v61 = vpop.f32.mrf.mxu0 }
 0x24b   : > { %v6960_v21 = vadd.f32 %v2209_v37, %v6816_v5 }
 0x24c   : > { %v4974_v56 = vpop.f32.mrf.mxu1  ;;  %v6962_v26 = vpop.f32.mrf.mxu0 }
 0x24d   : > { %v6965_v0 = vadd.f32 %v4974_v56, %v6820_v36 }
 0x24e   : > { %v2219_v46 = vpop.f32.mrf.mxu1  ;;  %v6967_v48 = vpop.f32.mrf.mxu0 }
 0x24f   : > { %7552 = vst [vmem:[#allocation30_spill] sm:$0xff] %v6967_v48  ;;  %v6970_v20 = vadd.f32 %v2219_v46, %v6825_v6 }
 0x250   : > { %v4977_v63 = vpop.f32.mrf.mxu1  ;;  %v6972_v60 = vpop.f32.mrf.mxu0 }
 0x251   : > { %7553 = vst [vmem:[#allocation28_spill] sm:$0xff] %v6970_v20  ;;  %7554 = vst [vmem:[#allocation34_spill] sm:$0xff] %v6972_v60  ;;  %v6975_v18 = vadd.f32 %v4977_v63, %v6829_v32 }
 0x252   : > { %v2229_v5 = vpop.f32.mrf.mxu1  ;;  %v6977_v25 = vpop.f32.mrf.mxu0 }
 0x253   : > { %7555 = vst [vmem:[#allocation32_spill] sm:$0xff] %v6975_v18  ;;  %7556 = vst [vmem:[#allocation5_spill] sm:$0xff] %v6977_v25  ;;  %v6980_v51 = vadd.f32 %v2229_v5, %v6834_v30 }
 0x254   : > { %v4980_v36 = vpop.f32.mrf.mxu1  ;;  %v6982_v8 = vpop.f32.mrf.mxu0 }
 0x255   : > { %7557 = vst [vmem:[#allocation6_spill] sm:$0xff] %v6980_v51  ;;  %7558 = vst [vmem:[#allocation7_spill] sm:$0xff] %v6982_v8  ;;  %v6985_v41 = vadd.f32 %v4980_v36, %v6838_v1 }
 0x256   : > { %v2239_v6 = vpop.f32.mrf.mxu1  ;;  %v6987_v55 = vpop.f32.mrf.mxu0 }
 0x257   : > { %7559 = vst [vmem:[#allocation8_spill] sm:$0xff] %v6985_v41  ;;  %7560 = vst [vmem:[#allocation9_spill] sm:$0xff] %v6987_v55  ;;  %v6990_v9 = vadd.f32 %v2239_v6, %v6843_v13 }
 0x258   : > { %v4983_v32 = vpop.f32.mrf.mxu1  ;;  %v6992_v28 = vpop.f32.mrf.mxu0 }
 0x259   : > { %7561 = vst [vmem:[#allocation10_spill] sm:$0xff] %v6990_v9  ;;  %7562 = vst [vmem:[#allocation11_spill] sm:$0xff] %v6992_v28  ;;  %v6995_v47 = vadd.f32 %v4983_v32, %v6847_v14 }
 0x25a   : > { %v2249_v30 = vpop.f32.mrf.mxu1  ;;  %v6997_v37 = vpop.f32.mrf.mxu0 }
 0x25b   : > { %7563 = vst [vmem:[#allocation12_spill] sm:$0xff] %v6995_v47  ;;  %7564 = vst [vmem:[#allocation13_spill] sm:$0xff] %v6997_v37  ;;  %v7000_v56 = vadd.f32 %v2249_v30, %v6852_v7 }
 0x25c   : > { %v4986_v1 = vpop.f32.mrf.mxu1  ;;  %v7002_v46 = vpop.f32.mrf.mxu0 }
 0x25d   : > { %7565 = vst [vmem:[#allocation14_spill] sm:$0xff] %v7000_v56  ;;  %7566 = vst [vmem:[#allocation15_spill] sm:$0xff] %v7002_v46  ;;  %v7005_v63 = vadd.f32 %v4986_v1, %v6856_v54 }
 0x25e   : > { %v2259_v13 = vpop.f32.mrf.mxu1  ;;  %v7007_v5 = vpop.f32.mrf.mxu0 }
 0x25f   : > { %7567 = vst [vmem:[#allocation16_spill] sm:$0xff] %v7005_v63  ;;  %7568 = vst [vmem:[#allocation17_spill] sm:$0xff] %v7007_v5  ;;  %v7010_v36 = vadd.f32 %v2259_v13, %v6861_v34 }
 0x260   : > { %v4989_v14 = vpop.f32.mrf.mxu1  ;;  %v7012_v6 = vpop.f32.mrf.mxu0 }
 0x261   : > { %7569 = vst [vmem:[#allocation18_spill] sm:$0xff] %v7010_v36  ;;  %7570 = vst [vmem:[#allocation19_spill] sm:$0xff] %v7012_v6  ;;  %v7015_v32 = vadd.f32 %v4989_v14, %v6865_v2 }
 0x262   : > { %v2269_v7 = vpop.f32.mrf.mxu1  ;;  %v7017_v30 = vpop.f32.mrf.mxu0 }
 0x263   : > { %7571 = vst [vmem:[#allocation20_spill] sm:$0xff] %v7015_v32  ;;  %7572 = vst [vmem:[#allocation21_spill] sm:$0xff] %v7017_v30  ;;  %v7020_v46 = vadd.f32 %v2269_v7, %v6870_v38 }
 0x264   : > { %v4992_v54 = vpop.f32.mrf.mxu1  ;;  %v7022_v1 = vpop.f32.mrf.mxu0 }
 0x265   : > { %7573 = vst [vmem:[#allocation22_spill] sm:$0xff] %v7020_v46  ;;  %7574 = vst [vmem:[#allocation23_spill] sm:$0xff] %v7022_v1  ;;  %v7025_v5 = vadd.f32 %v4992_v54, %v6874_v43 }
 0x266   : > { %v2279_v34 = vpop.f32.mrf.mxu1  ;;  %v7027_v13 = vpop.f32.mrf.mxu0 }
 0x267   : > { %7575 = vst [vmem:[#allocation24_spill] sm:$0xff] %v7025_v5  ;;  %7576 = vst [vmem:[#allocation26_spill] sm:$0xff] %v7027_v13  ;;  %v7030_v6 = vadd.f32 %v2279_v34, %v6879_v33 }
 0x268   : > { %v4995_v2 = vpop.f32.mrf.mxu1  ;;  %v7032_v14 = vpop.f32.mrf.mxu0 }
 0x269   : > { %7577 = vst [vmem:[#allocation27_spill] sm:$0xff] %v7030_v6  ;;  %7578 = vst [vmem:[#allocation29_spill] sm:$0xff] %v7032_v14  ;;  %v7035_v30 = vadd.f32 %v4995_v2, %v6883_v11 }
 0x26a   : > { %v2289_v38 = vpop.f32.mrf.mxu1  ;;  %v7037_v7 = vpop.f32.mrf.mxu0 }
 0x26b   : > { %7579 = vst [vmem:[#allocation31_spill] sm:$0xff] %v7035_v30  ;;  %7580 = vst [vmem:[#allocation33_spill] sm:$0xff] %v7037_v7  ;;  %v7040_v1 = vadd.f32 %v2289_v38, %v6887_v57 }
 0x26c   : > { %v4998_v43 = vpop.f32.mrf.mxu1  ;;  %v7042_v54 = vpop.f32.mrf.mxu0 }
 0x26d   : > { %7581 = vst [vmem:[#allocation35_spill] sm:$0xff] %v7040_v1  ;;  %7582 = vst [vmem:[#allocation36_spill] sm:$0xff] %v7042_v54  ;;  %v7045_v13 = vadd.f32 %v4998_v43, %v6890_v16 }
 0x26e   : > { %v2299_v33 = vpop.f32.mrf.mxu1  ;;  %v7047_v34 = vpop.f32.mrf.mxu0 }
 0x26f   : > { %7583 = vst [vmem:[#allocation37_spill] sm:$0xff] %v7045_v13  ;;  %7584 = vst [vmem:[#allocation38_spill] sm:$0xff] %v7047_v34  ;;  %v7050_v14 = vadd.f32 %v2299_v33, %v6892_v17 }
 0x270   : > { %v7052_v11 = vpop.f32.mrf.mxu0  ;;  %v5113_v2 = vpop.f32.mrf.mxu1 }
 0x271   : > { %7585 = vst [vmem:[#allocation40_spill] sm:$0xff] %v7050_v14  ;;  %7586 = vst [vmem:[#allocation39_spill] sm:$0xff] %v7052_v11 }
 0x272   : > { %v2763_v30 = vpop.f32.mrf.mxu1  ;;  %v5193_v7 = vpop.f32.mrf.mxu0 }
 0x274   : > { %v5116_v6 = vpop.f32.mrf.mxu1  ;;  %v3070_v57 = vpop.f32.mrf.mxu0 }
 0x276   : > { %v2773_v38 = vpop.f32.mrf.mxu1  ;;  %v5196_v1 = vpop.f32.mrf.mxu0 }
 0x278   : > { %v5119_v5 = vpop.f32.mrf.mxu1  ;;  %v7054_v54 = vpop.f32.mrf.mxu0 }
 0x27a   : > { %v2783_v16 = vpop.f32.mrf.mxu1  ;;  %v7058_v13 = vpop.f32.mrf.mxu0 }
 0x27c   : > { %v7056_v43 = vpop.f32.mrf.mxu1  ;;  %v7064_v33 = vpop.f32.mrf.mxu0 }
 0x27e   : > { %v7060_v34 = vpop.f32.mrf.mxu1  ;;  %v7070_v46 = vpop.f32.mrf.mxu0 }
 0x280   : > { %v7062_v17 = vpop.f32.mrf.mxu1  ;;  %v7076_v63 = vpop.f32.mrf.mxu0 }
 0x282   : > { %v7066_v11 = vpop.f32.mrf.mxu1  ;;  %v7082_v47 = vpop.f32.mrf.mxu0 }
 0x284   : > { %v7068_v14 = vpop.f32.mrf.mxu1  ;;  %v7088_v55 = vpop.f32.mrf.mxu0 }
 0x286   : > { %v7072_v32 = vpop.f32.mrf.mxu1  ;;  %v7094_v51 = vpop.f32.mrf.mxu0 }
 0x288   : > { %v7074_v36 = vpop.f32.mrf.mxu1  ;;  %v7100_v60 = vpop.f32.mrf.mxu0 }
 0x289   : > { %7595 = vst [vmem:[#allocation25_spill] sm:$0xff] %v7100_v60 }
 0x28a   : > { %v7078_v56 = vpop.f32.mrf.mxu1 }
 0x28b   : > { %7587 = vst [vmem:[#allocation42_spill] sm:$0xff] %v7078_v56 }
 0x28c   : > { %v7080_v37 = vpop.f32.mrf.mxu1 }
 0x28d   : > { %7588 = vst [vmem:[#allocation41_spill] sm:$0xff] %v7080_v37 }
 0x28e   : > { %v7084_v28 = vpop.f32.mrf.mxu1 }
 0x28f   : > { %7589 = vst [vmem:[#allocation44_spill] sm:$0xff] %v7084_v28  ;;  %v7106_v28 = vpop.f32.mrf.mxu0 }
 0x290   : > { %v7086_v9 = vpop.f32.mrf.mxu1 }
 0x291   : > { %7590 = vst [vmem:[#allocation43_spill] sm:$0xff] %v7086_v9 }
 0x292   : > { %v7090_v41 = vpop.f32.mrf.mxu1 }
 0x293   : > { %7591 = vst [vmem:[#allocation46_spill] sm:$0xff] %v7090_v41  ;;  %v7112_v41 = vpop.f32.mrf.mxu0 }
 0x294   : > { %v7092_v8 = vpop.f32.mrf.mxu1  ;;  %7600 = vst [vmem:[#allocation51_spill] sm:$0xff] %v7112_v41 }
 0x295   : > { %7592 = vst [vmem:[#allocation45_spill] sm:$0xff] %v7092_v8 }
 0x296   : > { %v7096_v25 = vpop.f32.mrf.mxu1 }
 0x297   : > { %7593 = vst [vmem:[#allocation3_spill] sm:$0xff] %v7096_v25  ;;  %v7118_v25 = vpop.f32.mrf.mxu0 }
 0x298   : > { %v7098_v18 = vpop.f32.mrf.mxu1  ;;  %7603 = vst [vmem:[#allocation54_spill] sm:$0xff] %v7118_v25 }
 0x299   : > { %7594 = vst [vmem:[#allocation4_spill] sm:$0xff] %v7098_v18 }
 0x29a   : > { %v7102_v37 = vpop.f32.mrf.mxu1 }
 0x29b   : > { %7596 = vst [vmem:[#allocation47_spill] sm:$0xff] %v7102_v37  ;;  %v7126_v37 = vpop.f32.mrf.mxu0 }
 0x29c   : > { %v7104_v20 = vpop.f32.mrf.mxu1  ;;  %7606 = vst [vmem:[#allocation57_spill] sm:$0xff] %v7126_v37 }
 0x29d   : > { %7597 = vst [vmem:[#allocation48_spill] sm:$0xff] %v7104_v20  ;;  %v2616_v20 = vadd.f32 %v6897_v44, %v6895_v49  ;;  %v2617_v49 = vadd.f32 %v6912_v59, %v6910_v29  ;;  %v2619_v29 = vadd.f32 %v6922_v42, %v6920_v12 }
 0x29e   : > { %v7108_v9 = vpop.f32.mrf.mxu1 }
 0x29f   : > { %7598 = vst [vmem:[#allocation49_spill] sm:$0xff] %v7108_v9  ;;  %v2923_v41 = vadd.f32 %v5113_v2, %v2616_v20 }
 0x2a0   : > { %v7110_v56 = vpop.f32.mrf.mxu1 }
 0x2a1   : > { %7599 = vst [vmem:[#allocation50_spill] sm:$0xff] %v7110_v56  ;;  %v2615_v56 = vadd.f32 %v6902_v23, %v6900_v52  ;;  %v3230_v44 = vadd.f32 %v5193_v7, %v2923_v41  ;;  %v7147_v23 = vld [vmem:[%s7383_s4] ss:$0 sm:$0xff] }
 0x2a2   : > { %v7114_v8 = vpop.f32.mrf.mxu1 }
 0x2a3   : > { %7601 = vst [vmem:[#allocation52_spill] sm:$0xff] %v7114_v8  ;;  %v2922_v25 = vadd.f32 %v2763_v30, %v2615_v56  ;;  %v2926_v30 = vadd.f32 %v2783_v16, %v2619_v29 }
 0x2a4   : > { %v7116_v48 = vpop.f32.mrf.mxu1 }
 0x2a5   : > { %7602 = vst [vmem:[#allocation53_spill] sm:$0xff] %v7116_v48  ;;  %v2618_v48 = vadd.f32 %v6907_v22, %v6905_v53  ;;  %v3229_v53 = vadd.f32 %v3070_v57, %v2922_v25  ;;  %v2924_v22 = vadd.f32 %v2773_v38, %v2617_v49  ;;  %v5328_v57 = vld [vmem:[%s5427_s6 + $0x8] sm:$0xff] }
 0x2a6   : > { %v7120_v18 = vpop.f32.mrf.mxu1 }
 0x2a7   : > { %7604 = vst [vmem:[#allocation55_spill] sm:$0xff] %v7120_v18  ;;  %v7136_v18 = vpop.f32.mrf.mxu0  ;;  %v2925_v37 = vadd.f32 %v5116_v6, %v2618_v48  ;;  %v2622_v6 = vadd.f32 %v6927_v40, %v6925_v19  ;;  %v3231_v7 = vadd.f32 %v7054_v54, %v2924_v22  ;;  %v2621_v19 = vadd.f32 %v6932_v45, %v6930_v24 }
 0x2a8   : > { %v7122_v60 = vpop.f32.mrf.mxu1 }
 0x2a9   : > { %7605 = vst [vmem:[#allocation56_spill] sm:$0xff] %v7122_v60  ;;  %v7149_v20 = vpop.f32.mrf.mxu0  ;;  %v3232_v41 = vadd.f32 %v5196_v1, %v2925_v37  ;;  %v5329_v1 = vld [vmem:[%s5427_s6] sm:$0xff]  ;;  %v2928_v24 = vadd.f32 %v7060_v34, %v2621_v19 }
 0x2aa   : > { %v7128_v9 = vpop.f32.mrf.mxu1 }
 0x2ab   : > { %7607 = vst [vmem:[#allocation58_spill] sm:$0xff] %v7128_v9  ;;  %v2620_v9 = vadd.f32 %v6917_v31, %v6915_v10  ;;  %v7157_v2 = vpop.f32.mrf.mxu0 }
 0x2ac   : > { %v7132_v8 = vpop.f32.mrf.mxu1 }
 0x2ad   : > { %v2927_v59 = vadd.f32 %v5119_v5, %v2620_v9  ;;  %v2929_v9 = vadd.f32 %v7056_v43, %v2622_v6  ;;  %v2626_v6 = vadd.f32 %v6947_v3, %v6945_v4 }
 0x2ae   : > { %v7138_v60 = vpop.f32.mrf.mxu1 }
 0x2af   : > { %v3234_v40 = vadd.f32 %v7058_v13, %v2927_v59  ;;  %v7178_v13 = vpop.f32.mrf.mxu0  ;;  %v2623_v59 = vadd.f32 %v6942_v39, %v6940_v62  ;;  %v2933_v3 = vadd.f32 %v7068_v14, %v2626_v6 }
 0x2b0   : > { %v5273_v52 = vpop.f32.mrf.mxu1 }
 0x2b1   : > { %v3537_v56 = vadd.f32 %v5273_v52, %v3230_v44  ;;  %v2624_v44 = vadd.f32 %v6937_v27, %v6935_v35  ;;  %v3233_v52 = vadd.f32 %v7064_v33, %v2926_v30  ;;  %v3236_v35 = vadd.f32 %v7070_v46, %v2929_v9  ;;  %v7194_v46 = vpop.f32.mrf.mxu0 }
 0x2b2   : > { %v3377_v48 = vpop.f32.mrf.mxu1  ;;  %v3235_v30 = vadd.f32 %v7076_v63, %v2928_v24  ;;  %v2930_v62 = vadd.f32 %v7066_v11, %v2623_v59 }
 0x2b3   : > { %v3576_v10 = vadd.f32 %v7147_v23, %v3537_v56  ;;  %v3536_v31 = vadd.f32 %v3377_v48, %v3229_v53  ;;  %v5330_v53 = vld [vmem:[%s5427_s6 + $0x18] sm:$0xff]  ;;  %v2931_v27 = vadd.f32 %v7062_v17, %v2624_v44  ;;  %v5331_v48 = vld [vmem:[%s5427_s6 + $0x10] sm:$0xff]  ;;  %v2627_v44 = vadd.f32 %v6962_v26, %v6960_v21 }
 0x2b4   : > { %v5276_v25 = vpop.f32.mrf.mxu1  ;;  %v7610_v21 = vld [vmem:[#allocation42_spill] sm:$0xff] }
 0x2b5   : > { %v3608_v38 = vadd.f32 %v5328_v57, %v3576_v10  ;;  %v3575_v12 = vadd.f32 %v7147_v23, %v3536_v31  ;;  %v3539_v42 = vadd.f32 %v5276_v25, %v3232_v41  ;;  %v5332_v25 = vld [vmem:[%s5427_s6 + $0x28] sm:$0xff]  ;;  %v3238_v4 = vadd.f32 %v7082_v47, %v2931_v27  ;;  %v7210_v47 = vpop.f32.mrf.mxu0 }
 0x2b6   : > { %v3387_v37 = vpop.f32.mrf.mxu1  ;;  %v2934_v26 = vadd.f32 %v7610_v21, %v2627_v44 }
 0x2b7   : > { %v3640_v5 = vmax.f32 %v3608_v38, 0.0  ;;  %v3607_v54 = vadd.f32 %v5329_v1, %v3575_v12  ;;  %v3578_v16 = vadd.f32 %v7147_v23, %v3539_v42  ;;  %v3538_v49 = vadd.f32 %v3387_v37, %v3231_v7  ;;  %v5333_v42 = vld [vmem:[%s5427_s6 + $0x20] sm:$0xff]  ;;  %v5334_v1 = vld [vmem:[%s5427_s6 + $0x38] sm:$0xff]  ;;  %v7226_v59 = vpop.f32.mrf.mxu0 }
 0x2b8   : > { %v5279_v45 = vpop.f32.mrf.mxu1  ;;  %v2625_v12 = vadd.f32 %v6952_v50, %v6950_v58  ;;  %v2628_v37 = vadd.f32 %v6957_v61, %v6955_v15  ;;  %v3240_v15 = vadd.f32 %v7094_v51, %v2933_v3 }
 0x2b9   : > { %3672 = vst [vmem:[%s7166_s10 + $0x8] sm:$0xff] %v3640_v5  ;;  %v3639_v43 = vmax.f32 %v3607_v54, 0.0  ;;  %v3610_v22 = vadd.f32 %v5330_v53, %v3578_v16  ;;  %v3577_v56 = vadd.f32 %v7147_v23, %v3538_v49  ;;  %v3541_v29 = vadd.f32 %v5279_v45, %v3234_v40  ;;  %v7608_v53 = vld [vmem:[#allocation30_spill] sm:$0xff] }
 0x2ba   : > { %v3397_v34 = vpop.f32.mrf.mxu1  ;;  %v3237_v5 = vadd.f32 %v7088_v55, %v2930_v62  ;;  %v2932_v58 = vadd.f32 %v7072_v32, %v2625_v12  ;;  %v2935_v61 = vadd.f32 %v7074_v36, %v2628_v37 }
 0x2bb   : > { %3671 = vst [vmem:[%s7166_s10] sm:$0xff] %v3639_v43  ;;  %v3642_v33 = vmax.f32 %v3610_v22, 0.0  ;;  %v3609_v41 = vadd.f32 %v5331_v48, %v3577_v56  ;;  %v3580_v10 = vadd.f32 %v7147_v23, %v3541_v29  ;;  %v3540_v31 = vadd.f32 %v3397_v34, %v3233_v52  ;;  %v5335_v52 = vld [vmem:[%s5427_s6 + $0x30] sm:$0xff]  ;;  %v7611_v48 = vld [vmem:[#allocation28_spill] sm:$0xff] }
 0x2bc   : > { %v5282_v39 = vpop.f32.mrf.mxu1  ;;  %v2630_v22 = vadd.f32 %v7608_v53, %v6965_v0  ;;  %v7609_v56 = vld [vmem:[#allocation25_spill] sm:$0xff]  ;;  %v3242_v0 = vadd.f32 %v7106_v28, %v2935_v61 }
 0x2bd   : > { %3674 = vst [vmem:[%s7166_s10 + $0x18] sm:$0xff] %v3642_v33  ;;  %v3641_v17 = vmax.f32 %v3609_v41, 0.0  ;;  %v3612_v7 = vadd.f32 %v5332_v25, %v3580_v10  ;;  %v3579_v57 = vadd.f32 %v7147_v23, %v3540_v31  ;;  %v3543_v38 = vadd.f32 %v5282_v39, %v3236_v35  ;;  %v5336_v35 = vld [vmem:[%s5427_s6 + $0x48] sm:$0xff]  ;;  %v7612_v41 = vld [vmem:[#allocation34_spill] sm:$0xff]  ;;  %v7613_v31 = vld [vmem:[#allocation41_spill] sm:$0xff] }
 0x2be   : > { %v3407_v63 = vpop.f32.mrf.mxu1  ;;  %v3239_v29 = vadd.f32 %v7609_v56, %v2932_v58  ;;  %v2629_v10 = vadd.f32 %v7612_v41, %v7611_v48  ;;  %v2937_v6 = vadd.f32 %v7613_v31, %v2630_v22  ;;  %v5337_v39 = vld [vmem:[%s5427_s6 + $0x40] sm:$0xff]  ;;  %v7618_v58 = vld [vmem:[#allocation6_spill] sm:$0xff]  ;;  %v5339_v61 = vld [vmem:[%s5427_s6 + $0x50] sm:$0xff] }
 0x2bf   : > { %3673 = vst [vmem:[%s7166_s10 + $0x10] sm:$0xff] %v3641_v17  ;;  %v3644_v11 = vmax.f32 %v3612_v7, 0.0  ;;  %v3611_v19 = vadd.f32 %v5333_v42, %v3579_v57  ;;  %v3582_v40 = vadd.f32 %v7147_v23, %v3543_v38  ;;  %v3542_v9 = vadd.f32 %v3407_v63, %v3235_v30  ;;  %v7614_v57 = vld [vmem:[#allocation32_spill] sm:$0xff]  ;;  %v7615_v38 = vld [vmem:[#allocation5_spill] sm:$0xff]  ;;  %v7242_v42 = vpop.f32.mrf.mxu0  ;;  %v7625_v56 = vld [vmem:[#allocation46_spill] sm:$0xff] }
 0x2c0   : > { %v5285_v50 = vpop.f32.mrf.mxu1  ;;  %v2632_v12 = vadd.f32 %v7615_v38, %v7614_v57  ;;  %v7617_v63 = vld [vmem:[#allocation44_spill] sm:$0xff]  ;;  %v7624_v53 = vld [vmem:[#allocation57_spill] sm:$0xff]  ;;  %v7627_v48 = vld [vmem:[#allocation11_spill] sm:$0xff] }
 0x2c1   : > { %3676 = vst [vmem:[%s7166_s10 + $0x28] sm:$0xff] %v3644_v11  ;;  %v3643_v14 = vmax.f32 %v3611_v19, 0.0  ;;  %v3614_v54 = vadd.f32 %v5334_v1, %v3582_v40  ;;  %v3581_v16 = vadd.f32 %v7147_v23, %v3542_v9  ;;  %v3545_v49 = vadd.f32 %v5285_v50, %v3238_v4  ;;  %v7616_v4 = vld [vmem:[#allocation51_spill] sm:$0xff]  ;;  %v5338_v40 = vld [vmem:[%s5427_s6 + $0x58] sm:$0xff]  ;;  %v7630_v57 = vld [vmem:[#allocation13_spill] sm:$0xff] }
 0x2c2   : > { %v3417_v55 = vpop.f32.mrf.mxu1  ;;  %v3241_v3 = vadd.f32 %v7616_v4, %v2934_v26  ;;  %v2936_v28 = vadd.f32 %v7617_v63, %v2629_v10  ;;  %v7619_v50 = vld [vmem:[#allocation7_spill] sm:$0xff]  ;;  %v7620_v1 = vld [vmem:[#allocation54_spill] sm:$0xff]  ;;  %v7258_v26 = vpop.f32.mrf.mxu0 }
 0x2c3   : > { %3675 = vst [vmem:[%s7166_s10 + $0x20] sm:$0xff] %v3643_v14  ;;  %v3646_v32 = vmax.f32 %v3614_v54, 0.0  ;;  %v3613_v24 = vadd.f32 %v5335_v52, %v3581_v16  ;;  %v3584_v45 = vadd.f32 %v7147_v23, %v3545_v49  ;;  %v3544_v43 = vadd.f32 %v3417_v55, %v3237_v5  ;;  %v7621_v16 = vld [vmem:[#allocation43_spill] sm:$0xff] }
 0x2c4   : > { %v5288_v51 = vpop.f32.mrf.mxu1  ;;  %v2631_v14 = vadd.f32 %v7619_v50, %v7618_v58  ;;  %v3244_v54 = vadd.f32 %v7620_v1, %v2937_v6  ;;  %v2939_v49 = vadd.f32 %v7621_v16, %v2632_v12  ;;  %v3243_v22 = vadd.f32 %v7624_v53, %v2936_v28  ;;  %v7631_v4 = vld [vmem:[#allocation3_spill] sm:$0xff]  ;;  %v7274_v63 = vpop.f32.mrf.mxu0  ;;  %v5343_v16 = vld [vmem:[%s5427_s6 + $0x70] sm:$0xff] }
 0x2c5   : > { %3678 = vst [vmem:[%s7166_s10 + $0x38] sm:$0xff] %v3646_v32  ;;  %v3645_v36 = vmax.f32 %v3613_v24, 0.0  ;;  %v3616_v27 = vadd.f32 %v5336_v35, %v3584_v45  ;;  %v3583_v34 = vadd.f32 %v7147_v23, %v3544_v43  ;;  %v3547_v33 = vadd.f32 %v5288_v51, %v3240_v15  ;;  %v7622_v24 = vld [vmem:[#allocation8_spill] sm:$0xff]  ;;  %v7623_v45 = vld [vmem:[#allocation9_spill] sm:$0xff] }
 0x2c6   : > { %v3427_v30 = vpop.f32.mrf.mxu1  ;;  %v2634_v43 = vadd.f32 %v7623_v45, %v7622_v24  ;;  %v3246_v10 = vadd.f32 %v7136_v18, %v2939_v49  ;;  %v7637_v24 = vld [vmem:[#allocation47_spill] sm:$0xff] }
 0x2c7   : > { %3677 = vst [vmem:[%s7166_s10 + $0x30] sm:$0xff] %v3645_v36  ;;  %v3648_v62 = vmax.f32 %v3616_v27, 0.0  ;;  %v3615_v17 = vadd.f32 %v5337_v39, %v3583_v34  ;;  %v3586_v25 = vadd.f32 %v7147_v23, %v3547_v33  ;;  %v3546_v7 = vadd.f32 %v3427_v30, %v3239_v29  ;;  %v5340_v36 = vld [vmem:[%s5427_s6 + $0x68] sm:$0xff]  ;;  %v7626_v33 = vld [vmem:[#allocation10_spill] sm:$0xff] }
 0x2c8   : > { %v5291_v11 = vpop.f32.mrf.mxu1  ;;  %v2938_v29 = vadd.f32 %v7625_v56, %v2631_v14  ;;  %v2633_v41 = vadd.f32 %v7627_v48, %v7626_v33 }
 0x2c9   : > { %3680 = vst [vmem:[%s7166_s10 + $0x48] sm:$0xff] %v3648_v62  ;;  %v3647_v19 = vmax.f32 %v3615_v17, 0.0  ;;  %v3618_v9 = vadd.f32 %v5338_v40, %v3586_v25  ;;  %v3585_v37 = vadd.f32 %v7147_v23, %v3546_v7  ;;  %v3549_v5 = vadd.f32 %v5291_v11, %v3242_v0  ;;  %v7628_v0 = vld [vmem:[#allocation45_spill] sm:$0xff]  ;;  %v5341_v62 = vld [vmem:[%s5427_s6 + $0x60] sm:$0xff]  ;;  %v7629_v7 = vld [vmem:[#allocation12_spill] sm:$0xff] }
 0x2ca   : > { %v3437_v44 = vpop.f32.mrf.mxu1  ;;  %v2941_v31 = vadd.f32 %v7628_v0, %v2634_v43  ;;  %v2636_v38 = vadd.f32 %v7630_v57, %v7629_v7  ;;  %v3245_v12 = vadd.f32 %v7149_v20, %v2938_v29  ;;  %v2940_v18 = vadd.f32 %v7631_v4, %v2633_v41  ;;  %v5342_v11 = vld [vmem:[%s5427_s6 + $0x78] sm:$0xff]  ;;  %v7634_v20 = vld [vmem:[#allocation4_spill] sm:$0xff]  ;;  %v7290_v43 = vpop.f32.mrf.mxu0  ;;  %v5345_v41 = vld [vmem:[%s5427_s6 + $0x80] sm:$0xff] }
 0x2cb   : > { %3679 = vst [vmem:[%s7166_s10 + $0x40] sm:$0xff] %v3647_v19  ;;  %v3650_v15 = vmax.f32 %v3618_v9, 0.0  ;;  %v3617_v55 = vadd.f32 %v5339_v61, %v3585_v37  ;;  %v3588_v32 = vadd.f32 %v7147_v23, %v3549_v5  ;;  %v3548_v52 = vadd.f32 %v3437_v44, %v3241_v3  ;;  %v7632_v37 = vld [vmem:[#allocation14_spill] sm:$0xff]  ;;  %v7633_v5 = vld [vmem:[#allocation15_spill] sm:$0xff]  ;;  %v7635_v61 = vld [vmem:[#allocation16_spill] sm:$0xff] }
 0x2cc   : > { %v5294_v21 = vpop.f32.mrf.mxu1  ;;  %v2635_v58 = vadd.f32 %v7633_v5, %v7632_v37  ;;  %v3248_v50 = vadd.f32 %v7157_v2, %v2941_v31  ;;  %v2943_v14 = vadd.f32 %v7634_v20, %v2636_v38  ;;  %v3200_v7 = vpop.f32.mrf.mxu0  ;;  %v5346_v38 = vld [vmem:[%s5427_s6 + $0x98] sm:$0xff]  ;;  %v5347_v5 = vld [vmem:[%s5427_s6 + $0x90] sm:$0xff] }
 0x2cd   : > { %3682 = vst [vmem:[%s7166_s10 + $0x58] sm:$0xff] %v3650_v15  ;;  %v3649_v51 = vmax.f32 %v3617_v55, 0.0  ;;  %v3620_v35 = vadd.f32 %v5340_v36, %v3588_v32  ;;  %v3587_v27 = vadd.f32 %v7147_v23, %v3548_v52  ;;  %v3551_v34 = vadd.f32 %v5294_v21, %v3244_v54  ;;  %v7636_v55 = vld [vmem:[#allocation17_spill] sm:$0xff]  ;;  %v7639_v36 = vld [vmem:[#allocation19_spill] sm:$0xff] }
 0x2ce   : > { %v3447_v6 = vpop.f32.mrf.mxu1  ;;  %v2638_v32 = vadd.f32 %v7636_v55, %v7635_v61  ;;  %v3247_v52 = vadd.f32 %v7178_v13, %v2940_v18  ;;  %v2942_v2 = vadd.f32 %v7637_v24, %v2635_v58  ;;  %v7640_v13 = vld [vmem:[#allocation48_spill] sm:$0xff] }
 0x2cf   : > { %3681 = vst [vmem:[%s7166_s10 + $0x50] sm:$0xff] %v3649_v51  ;;  %v3652_v30 = vmax.f32 %v3620_v35, 0.0  ;;  %v3619_v39 = vadd.f32 %v5341_v62, %v3587_v27  ;;  %v3590_v17 = vadd.f32 %v7147_v23, %v3551_v34  ;;  %v3550_v25 = vadd.f32 %v3447_v6, %v3243_v22  ;;  %v5344_v22 = vld [vmem:[%s5427_s6 + $0x88] sm:$0xff]  ;;  %v7638_v51 = vld [vmem:[#allocation18_spill] sm:$0xff] }
 0x2d0   : > { %v5297_v3 = vpop.f32.mrf.mxu1  ;;  %v2637_v35 = vadd.f32 %v7639_v36, %v7638_v51  ;;  %v3250_v27 = vadd.f32 %v7194_v46, %v2943_v14  ;;  %v2945_v34 = vadd.f32 %v7640_v13, %v2638_v32  ;;  %v7641_v6 = vld [vmem:[#allocation20_spill] sm:$0xff]  ;;  %v5349_v51 = vld [vmem:[%s5427_s6 + $0xa0] sm:$0xff] }
 0x2d1   : > { %3684 = vst [vmem:[%s7166_s10 + $0x68] sm:$0xff] %v3652_v30  ;;  %v3651_v28 = vmax.f32 %v3619_v39, 0.0  ;;  %v3622_v19 = vadd.f32 %v5342_v11, %v3590_v17  ;;  %v3589_v40 = vadd.f32 %v7147_v23, %v3550_v25  ;;  %v3553_v9 = vadd.f32 %v5297_v3, %v3246_v10  ;;  %v7642_v30 = vld [vmem:[#allocation21_spill] sm:$0xff]  ;;  %v7644_v3 = vld [vmem:[#allocation22_spill] sm:$0xff]  ;;  %v7647_v14 = vld [vmem:[#allocation24_spill] sm:$0xff] }
 0x2d2   : > { %v3457_v1 = vpop.f32.mrf.mxu1  ;;  %v2640_v62 = vadd.f32 %v7642_v30, %v7641_v6  ;;  %v3249_v39 = vadd.f32 %v7210_v47, %v2942_v2  ;;  %v7643_v17 = vld [vmem:[#allocation49_spill] sm:$0xff]  ;;  %v5348_v55 = vld [vmem:[%s5427_s6 + $0xa8] sm:$0xff]  ;;  %v7650_v2 = vld [vmem:[#allocation27_spill] sm:$0xff] }
 0x2d3   : > { %3683 = vst [vmem:[%s7166_s10 + $0x60] sm:$0xff] %v3651_v28  ;;  %v3654_v54 = vmax.f32 %v3622_v19, 0.0  ;;  %v3621_v49 = vadd.f32 %v5343_v16, %v3589_v40  ;;  %v3592_v44 = vadd.f32 %v7147_v23, %v3553_v9  ;;  %v3552_v15 = vadd.f32 %v3457_v1, %v3245_v12  ;;  %v7645_v28 = vld [vmem:[#allocation23_spill] sm:$0xff]  ;;  %v7646_v40 = vld [vmem:[#allocation50_spill] sm:$0xff] }
 0x2d4   : > { %v5300_v45 = vpop.f32.mrf.mxu1  ;;  %v2944_v46 = vadd.f32 %v7643_v17, %v2637_v35  ;;  %v2639_v11 = vadd.f32 %v7645_v28, %v7644_v3  ;;  %v3252_v19 = vadd.f32 %v7226_v59, %v2945_v34  ;;  %v2947_v47 = vadd.f32 %v7646_v40, %v2640_v62  ;;  %v7648_v1 = vld [vmem:[#allocation26_spill] sm:$0xff]  ;;  %v7653_v13 = vld [vmem:[#allocation31_spill] sm:$0xff]  ;;  %v7654_v34 = vld [vmem:[#allocation33_spill] sm:$0xff] }
 0x2d5   : > { %3686 = vst [vmem:[%s7166_s10 + $0x78] sm:$0xff] %v3654_v54  ;;  %v3653_v53 = vmax.f32 %v3621_v49, 0.0  ;;  %v3624_v56 = vadd.f32 %v5344_v22, %v3592_v44  ;;  %v3591_v29 = vadd.f32 %v7147_v23, %v3552_v15  ;;  %v3555_v21 = vadd.f32 %v5300_v45, %v3248_v50  ;;  %v7649_v49 = vld [vmem:[#allocation52_spill] sm:$0xff]  ;;  %v5235_v15 = vpop.f32.mrf.mxu0  ;;  %v7651_v45 = vld [vmem:[#allocation29_spill] sm:$0xff]  ;;  %v5350_v6 = vld [vmem:[%s5427_s6 + $0xb8] sm:$0xff] }
 0x2d6   : > { %v3467_v33 = vpop.f32.mrf.mxu1  ;;  %v2642_v54 = vadd.f32 %v7648_v1, %v7647_v14  ;;  %v3251_v16 = vadd.f32 %v7242_v42, %v2944_v46  ;;  %v2946_v59 = vadd.f32 %v7649_v49, %v2639_v11  ;;  %v3254_v22 = vadd.f32 %v7258_v26, %v2947_v47  ;;  %v7656_v17 = vld [vmem:[#allocation35_spill] sm:$0xff]  ;;  %v7657_v46 = vld [vmem:[#allocation36_spill] sm:$0xff]  ;;  %v7660_v40 = vld [vmem:[#allocation38_spill] sm:$0xff] }
 0x2d7   : > { %3685 = vst [vmem:[%s7166_s10 + $0x70] sm:$0xff] %v3653_v53  ;;  %v3656_v48 = vmax.f32 %v3624_v56, 0.0  ;;  %v3623_v10 = vadd.f32 %v5345_v41, %v3591_v29  ;;  %v3594_v0 = vadd.f32 %v7147_v23, %v3555_v21  ;;  %v3554_v31 = vadd.f32 %v3467_v33, %v3247_v52  ;;  %v7652_v56 = vld [vmem:[#allocation53_spill] sm:$0xff]  ;;  %v7655_v41 = vld [vmem:[#allocation55_spill] sm:$0xff] }
 0x2d8   : > { %v5303_v25 = vpop.f32.mrf.mxu1  ;;  %v2641_v53 = vadd.f32 %v7651_v45, %v7650_v2  ;;  %v2949_v42 = vadd.f32 %v7652_v56, %v2642_v54  ;;  %v2644_v33 = vadd.f32 %v7654_v34, %v7653_v13  ;;  %v7663_v49 = vld [vmem:[#allocation39_spill] sm:$0xff] }
 0x2d9   : > { %3688 = vst [vmem:[%s7166_s10 + $0x88] sm:$0xff] %v3656_v48  ;;  %v3655_v57 = vmax.f32 %v3623_v10, 0.0  ;;  %v3626_v12 = vadd.f32 %v5346_v38, %v3594_v0  ;;  %v3593_v4 = vadd.f32 %v7147_v23, %v3554_v31  ;;  %v3557_v18 = vadd.f32 %v5303_v25, %v3250_v27  ;;  %v3210_v0 = vpop.f32.mrf.mxu0  ;;  %v7658_v38 = vld [vmem:[#allocation56_spill] sm:$0xff] }
 0x2da   : > { %v3477_v9 = vpop.f32.mrf.mxu1  ;;  %v3253_v48 = vadd.f32 %v7274_v63, %v2946_v59  ;;  %v2948_v26 = vadd.f32 %v7655_v41, %v2641_v53  ;;  %v2643_v25 = vadd.f32 %v7657_v46, %v7656_v17  ;;  %v2951_v63 = vadd.f32 %v7658_v38, %v2644_v33 }
 0x2db   : > { %3687 = vst [vmem:[%s7166_s10 + $0x80] sm:$0xff] %v3655_v57  ;;  %v3658_v37 = vmax.f32 %v3626_v12, 0.0  ;;  %v3625_v58 = vadd.f32 %v5347_v5, %v3593_v4  ;;  %v3596_v50 = vadd.f32 %v7147_v23, %v3557_v18  ;;  %v3556_v20 = vadd.f32 %v3477_v9, %v3249_v39  ;;  %v5351_v18 = vld [vmem:[%s5427_s6 + $0xb0] sm:$0xff] }
 0x2dc   : > { %v5306_v44 = vpop.f32.mrf.mxu1  ;;  %v3256_v57 = vadd.f32 %v7290_v43, %v2949_v42  ;;  %v3255_v9 = vadd.f32 %v3200_v7, %v2948_v26  ;;  %v5354_v42 = vld [vmem:[%s5427_s6 + $0xd8] sm:$0xff]  ;;  %v5356_v26 = vld [vmem:[%s5427_s6 + $0xe8] sm:$0xff] }
 0x2dd   : > { %3690 = vst [vmem:[%s7166_s10 + $0x98] sm:$0xff] %v3658_v37  ;;  %v3657_v61 = vmax.f32 %v3625_v58, 0.0  ;;  %v3628_v32 = vadd.f32 %v5348_v55, %v3596_v50  ;;  %v3595_v52 = vadd.f32 %v7147_v23, %v3556_v20  ;;  %v3559_v24 = vadd.f32 %v5306_v44, %v3252_v19  ;;  %v7659_v19 = vld [vmem:[#allocation37_spill] sm:$0xff]  ;;  %v7661_v37 = vld [vmem:[#allocation58_spill] sm:$0xff]  ;;  %v5238_v58 = vpop.f32.mrf.mxu0  ;;  %v5352_v20 = vld [vmem:[%s5427_s6 + $0xc8] sm:$0xff] }
 0x2de   : > { %v3487_v29 = vpop.f32.mrf.mxu1  ;;  %v2646_v47 = vadd.f32 %v7660_v40, %v7659_v19  ;;  %v2950_v5 = vadd.f32 %v7661_v37, %v2643_v25  ;;  %v3258_v44 = vadd.f32 %v5235_v15, %v2951_v63 }
 0x2df   : > { %3689 = vst [vmem:[%s7166_s10 + $0x90] sm:$0xff] %v3657_v61  ;;  %v3660_v21 = vmax.f32 %v3628_v32, 0.0  ;;  %v3627_v36 = vadd.f32 %v5349_v51, %v3595_v52  ;;  %v3598_v35 = vadd.f32 %v7147_v23, %v3559_v24  ;;  %v3558_v27 = vadd.f32 %v3487_v29, %v3251_v16  ;;  %v7662_v16 = vld [vmem:[#allocation40_spill] sm:$0xff]  ;;  %v5353_v32 = vld [vmem:[%s5427_s6 + $0xc0] sm:$0xff]  ;;  %v3220_v56 = vpop.f32.mrf.mxu0 }
 0x2e0   : > { %v5309_v10 = vpop.f32.mrf.mxu1  ;;  %v2645_v59 = vadd.f32 %v7663_v49, %v7662_v16  ;;  %v2953_v7 = vadd.f32 %v7132_v8, %v2646_v47  ;;  %v3257_v45 = vadd.f32 %v3210_v0, %v2950_v5 }
 0x2e1   : > { %3692 = vst [vmem:[%s7166_s10 + $0xa8] sm:$0xff] %v3660_v21  ;;  %v3659_v31 = vmax.f32 %v3627_v36, 0.0  ;;  %v3630_v30 = vadd.f32 %v5350_v6, %v3598_v35  ;;  %v3597_v62 = vadd.f32 %v7147_v23, %v3558_v27  ;;  %v3561_v39 = vadd.f32 %v5309_v10, %v3254_v22  ;;  %v5355_v27 = vld [vmem:[%s5427_s6 + $0xd0] sm:$0xff] }
 0x2e2   : > { %v3497_v12 = vpop.f32.mrf.mxu1  ;;  %v2952_v53 = vadd.f32 %v7138_v60, %v2645_v59  ;;  %v3260_v51 = vadd.f32 %v5238_v58, %v2953_v7 }
 0x2e3   : > { %3691 = vst [vmem:[%s7166_s10 + $0xa0] sm:$0xff] %v3659_v31  ;;  %v3662_v4 = vmax.f32 %v3630_v30, 0.0  ;;  %v3629_v3 = vadd.f32 %v5351_v18, %v3597_v62  ;;  %v3600_v28 = vadd.f32 %v7147_v23, %v3561_v39  ;;  %v3560_v11 = vadd.f32 %v3497_v12, %v3253_v48  ;;  %v5357_v62 = vld [vmem:[%s5427_s6 + $0xe0] sm:$0xff] }
 0x2e4   : > { %v5312_v43 = vpop.f32.mrf.mxu1  ;;  %v3259_v33 = vadd.f32 %v3220_v56, %v2952_v53 }
 0x2e5   : > { %3694 = vst [vmem:[%s7166_s10 + $0xb8] sm:$0xff] %v3662_v4  ;;  %v3661_v50 = vmax.f32 %v3629_v3, 0.0  ;;  %v3632_v14 = vadd.f32 %v5352_v20, %v3600_v28  ;;  %v3599_v1 = vadd.f32 %v7147_v23, %v3560_v11  ;;  %v3563_v54 = vadd.f32 %v5312_v43, %v3256_v57  ;;  %v5358_v57 = vld [vmem:[%s5427_s6 + $0xf8] sm:$0xff]  ;;  %v5359_v4 = vld [vmem:[%s5427_s6 + $0xf0] sm:$0xff] }
 0x2e6   : > { %v3507_v61 = vpop.f32.mrf.mxu1 }
 0x2e7   : > { %3693 = vst [vmem:[%s7166_s10 + $0xb0] sm:$0xff] %v3661_v50  ;;  %v3664_v55 = vmax.f32 %v3632_v14, 0.0  ;;  %v3631_v52 = vadd.f32 %v5353_v32, %v3599_v1  ;;  %v3602_v24 = vadd.f32 %v7147_v23, %v3563_v54  ;;  %v3562_v2 = vadd.f32 %v3507_v61, %v3255_v9 }
 0x2e8   : > { %v5315_v22 = vpop.f32.mrf.mxu1 }
 0x2e9   : > { %3696 = vst [vmem:[%s7166_s10 + $0xc8] sm:$0xff] %v3664_v55  ;;  %v3663_v15 = vmax.f32 %v3631_v52, 0.0  ;;  %v3634_v8 = vadd.f32 %v5354_v42, %v3602_v24  ;;  %v3601_v29 = vadd.f32 %v7147_v23, %v3562_v2  ;;  %v3565_v21 = vadd.f32 %v5315_v22, %v3258_v44 }
 0x2ea   : > { %v3517_v36 = vpop.f32.mrf.mxu1 }
 0x2eb   : > { %3695 = vst [vmem:[%s7166_s10 + $0xc0] sm:$0xff] %v3663_v15  ;;  %v3666_v35 = vmax.f32 %v3634_v8, 0.0  ;;  %v3633_v13 = vadd.f32 %v5355_v27, %v3601_v29  ;;  %v3604_v60 = vadd.f32 %v7147_v23, %v3565_v21  ;;  %v3564_v34 = vadd.f32 %v3517_v36, %v3257_v45 }
 0x2ec   : > { %v5318_v48 = vpop.f32.mrf.mxu1 }
 0x2ed   : > { %3698 = vst [vmem:[%s7166_s10 + $0xd8] sm:$0xff] %v3666_v35  ;;  %v3665_v41 = vmax.f32 %v3633_v13, 0.0  ;;  %v3636_v10 = vadd.f32 %v5356_v26, %v3604_v60  ;;  %v3603_v0 = vadd.f32 %v7147_v23, %v3564_v34  ;;  %v3567_v31 = vadd.f32 %v5318_v48, %v3260_v51 }
 0x2ee   : > { %v3527_v6 = vpop.f32.mrf.mxu1 }
 0x2ef   : > { %3697 = vst [vmem:[%s7166_s10 + $0xd0] sm:$0xff] %v3665_v41  ;;  %v3668_v30 = vmax.f32 %v3636_v10, 0.0  ;;  %v3635_v39 = vadd.f32 %v5357_v62, %v3603_v0  ;;  %v3606_v17 = vadd.f32 %v7147_v23, %v3567_v31  ;;  %v3566_v46 = vadd.f32 %v3527_v6, %v3259_v33 }
 0x2f1   : > { %3700 = vst [vmem:[%s7166_s10 + $0xe8] sm:$0xff] %v3668_v30  ;;  %v3667_v25 = vmax.f32 %v3635_v39, 0.0  ;;  %v3638_v38 = vadd.f32 %v5358_v57, %v3606_v17  ;;  %v3605_v63 = vadd.f32 %v7147_v23, %v3566_v46 }
 0x2f3   : > { %3699 = vst [vmem:[%s7166_s10 + $0xe0] sm:$0xff] %v3667_v25  ;;  %v3670_v12 = vmax.f32 %v3638_v38, 0.0  ;;  %v3637_v18 = vadd.f32 %v5359_v4, %v3605_v63 }
 0x2f5   : > { %3702 = vst [vmem:[%s7166_s10 + $0xf8] sm:$0xff] %v3670_v12  ;;  %v3669_v3 = vmax.f32 %v3637_v18, 0.0 }
 0x2f7   : > { %3701 = vst [vmem:[%s7166_s10 + $0xf0] sm:$0xff] %v3669_v3 }
 0x2f8 PF: > { %s15_s18 = sadd.s32 1, %s5366_s18  }
 0x2f9   : > { %p12_p4 = scmp.ge.s32.totalorder %s15_s18, 4  }
 0x2fb   :  { %14 = sbr.rel (!%p12_p4) target bundleno = 1 (0x1), region = 86 }

</bundles_post_ra>
